<compile_context>
chip_gen: v7x
topology: tpu7x:2x2x1
jax: 0.10.0
libtpu: 0.0.40
codegen_flags: <defaults>
</compile_context>

<pallas_src>
import jax
import jax.numpy as jnp
from jax.experimental import pallas as pl
from jax.experimental.pallas import tpu as pltpu


# ---------------------------------------------------------------------------
# Kernel
# ---------------------------------------------------------------------------
def _lenet5_kernel(
    x_ref,      # (32, B*32)    rows = image y, lanes = (batch, x)
    a1_ref,     # (168, 160)    banded conv1 weights: rows (oc,y), cols (kw,r)
    b1_ref,     # (168, 1)
    p1y_ref,    # (88, 168)     pool1 along y (rows 84..87 are zero padding)
    px1_ref,    # (B*32, B*16)  pool1 along x + lane compaction
    a2_ref,     # (160, 440)    banded conv2 weights: rows (oc,y), cols (kw,ic,r)
    b2_ref,     # (160, 1)
    p2y_ref,    # (80, 160)     pool2 along y
    pxs_ref,    # (5, B*16, B)  pool2 along x + per-x batch selection
    wfc1_ref,   # (5, 120, 80)  fc1 weights split by flattened x position
    bfc1_ref,   # (120, 1)
    wfc2_ref,   # (84, 120)
    bfc2_ref,   # (84, 1)
    wfc3_ref,   # (C, 84)
    bfc3_ref,   # (C, 1)
    o_ref,      # (1, C, B)
    xall_ref,   # (160, B*32)   conv1 "im2col": 5 lane-rolled input copies
    h1_ref,     # (168, B*32)   conv1 + ReLU
    pall_ref,   # (440, B*16)   conv2 "im2col": 5 lane-rolled pooled maps
    h2_ref,     # (160, B*16)   conv2 + ReLU
):
    f32 = jnp.float32
    x = x_ref[...]
    nl = x.shape[1]

    # ---- conv1 + ReLU: one MXU matmul against the banded weight matrix ----
    xall_ref[0:32, :] = x
    for kw in range(1, 5):                       # kw shifts = cheap lane rolls
        xall_ref[kw * 32:(kw + 1) * 32, :] = pltpu.roll(x, nl - kw, axis=1)
    h1 = jnp.dot(a1_ref[...], xall_ref[...], preferred_element_type=f32)
    h1_ref[...] = jnp.maximum(h1 + b1_ref[...], 0.0)        # (168, B*32)

    # ---- 2x2 avg-pool: y-pool (left matmul), x-pool + compaction (right) ----
    p1 = jnp.dot(p1y_ref[...], h1_ref[...], preferred_element_type=f32)
    p1 = jnp.dot(p1, px1_ref[...], preferred_element_type=f32)   # (88, B*16)

    # ---- conv2 + ReLU: one MXU matmul, kw enumerated by lane rolls ----
    nl2 = p1.shape[1]
    pall_ref[0:88, :] = p1
    for kw in range(1, 5):
        pall_ref[kw * 88:(kw + 1) * 88, :] = pltpu.roll(p1, nl2 - kw, axis=1)
    h2 = jnp.dot(a2_ref[...], pall_ref[...], preferred_element_type=f32)
    h2_ref[...] = jnp.maximum(h2 + b2_ref[...], 0.0)         # (160, B*16)

    # ---- pool2 along y ----
    fy = jnp.dot(p2y_ref[...], h2_ref[...], preferred_element_type=f32)  # (80, B*16)

    # ---- fc1: pool2-x + (lane -> contraction) transpose via selection matmuls ----
    h = bfc1_ref[...]                                         # (120, 1) broadcast
    for xp in range(5):
        fxp = jnp.dot(fy, pxs_ref[xp], preferred_element_type=f32)        # (80, B)
        h = h + jnp.dot(wfc1_ref[xp], fxp, preferred_element_type=f32)    # (120, B)
    h = jnp.maximum(h, 0.0)

    # ---- fc2 + ReLU, fc3 ----
    h = jnp.maximum(
        jnp.dot(wfc2_ref[...], h, preferred_element_type=f32) + bfc2_ref[...], 0.0)
    o_ref[0] = jnp.dot(wfc3_ref[...], h, preferred_element_type=f32) + bfc3_ref[...]


# ---------------------------------------------------------------------------
# Host-side constant / weight packing
# ---------------------------------------------------------------------------
def _pool_y_matrix(channels, in_h, pad_rows):
    """Block-diagonal matrix that averages row pairs per channel (0.5 entries)."""
    out_h = in_h // 2
    rows = jnp.arange(channels * out_h)
    cols = jnp.arange(channels * in_h)
    rc, ry = rows // out_h, rows % out_h
    cc, cy = cols // in_h, cols % in_h
    m = ((rc[:, None] == cc[None, :]) & ((cy[None, :] // 2) == ry[:, None]))
    m = m.astype(jnp.float32) * 0.5
    if pad_rows > channels * out_h:
        m = jnp.concatenate(
            [m, jnp.zeros((pad_rows - channels * out_h, channels * in_h), jnp.float32)], 0)
    return m


def _pool_x_matrix(B):
    """(B*32, B*16): averages conv1-output lane pairs (x<=27) and compacts x."""
    r = jnp.arange(B * 32)
    c = jnp.arange(B * 16)
    rb, rx = r // 32, r % 32
    cb, cx = c // 16, c % 16
    m = ((rb[:, None] == cb[None, :]) & ((rx[:, None] // 2) == cx[None, :])
         & (rx[:, None] <= 27))
    return m.astype(jnp.float32) * 0.5


def _pool_select_matrices(B):
    """(5, B*16, B): per pooled-x position, average lanes 2x,2x+1 per image."""
    xp = jnp.arange(5)[:, None, None]
    r = jnp.arange(B * 16)[None, :, None]
    c = jnp.arange(B)[None, None, :]
    rb, rx = r // 16, r % 16
    m = (rb == c) & ((rx // 2) == xp)
    return m.astype(jnp.float32) * 0.5


def pack_params(params):
    """One-time repack of torch-layout params into the fused kernel's layouts."""
    f32 = jnp.float32
    num_classes = params['fc3_w'].shape[0]

    # conv1 -> banded matrix a1[(oc,y), (kw,r)] = w1[oc, r-y, kw]
    w1 = params['conv1_w'].astype(f32).reshape(6, 5, 5)
    y = jnp.arange(28)
    r = jnp.arange(32)
    dy = r[None, :] - y[:, None]
    valid = ((dy >= 0) & (dy <= 4)).astype(f32)
    a1 = w1[:, jnp.clip(dy, 0, 4), :] * valid[None, :, :, None]   # (6,28,32,5)
    a1 = a1.transpose(0, 1, 3, 2).reshape(6 * 28, 5 * 32)

    # conv2 -> banded matrix a2[(oc,y), (kw, ic, r)] = w2[oc, ic, r-y, kw]
    w2 = params['conv2_w'].astype(f32)                            # (16,6,5,5)
    y2 = jnp.arange(10)
    r2 = jnp.arange(14)
    dy2 = r2[None, :] - y2[:, None]
    valid2 = ((dy2 >= 0) & (dy2 <= 4)).astype(f32)
    a2 = w2[:, :, jnp.clip(dy2, 0, 4), :] * valid2[None, None, :, :, None]  # (16,6,10,14,5)
    a2 = a2.transpose(0, 2, 4, 1, 3).reshape(160, 5, 84)
    a2 = jnp.concatenate([a2, jnp.zeros((160, 5, 4), f32)], axis=2).reshape(160, 440)

    # fc1 columns are torch-flatten order (c, y, x); split by x -> (5, 120, 80)
    wfc1 = params['fc1_w'].astype(f32).reshape(120, 16, 5, 5)
    wfc1 = wfc1.transpose(3, 0, 1, 2).reshape(5, 120, 80)

    return {
        'a1': a1,
        'b1e': jnp.repeat(params['conv1_b'].astype(f32), 28)[:, None],
        'p1y': _pool_y_matrix(6, 28, 88),
        'a2': a2,
        'b2e': jnp.repeat(params['conv2_b'].astype(f32), 10)[:, None],
        'p2y': _pool_y_matrix(16, 10, 80),
        'wfc1': wfc1,
        'bfc1': params['fc1_b'].astype(f32).reshape(120, 1),
        'wfc2': params['fc2_w'].astype(f32),
        'bfc2': params['fc2_b'].astype(f32).reshape(84, 1),
        'wfc3': params['fc3_w'].astype(f32),
        'bfc3': params['fc3_b'].astype(f32).reshape(num_classes, 1),
    }


_WEIGHT_ORDER = ('a1', 'b1e', 'p1y', 'px1', 'a2', 'b2e', 'p2y', 'pxs',
                 'wfc1', 'bfc1', 'wfc2', 'bfc2', 'wfc3', 'bfc3')


def _resident_spec(arr):
    nd = arr.ndim
    return pl.BlockSpec(arr.shape, lambda n: (0,) * nd)


def lenet5_forward(x, packed, batch_block=8):
    """x: (N, 1, 32, 32) NCHW float; packed: pack_params output -> (N, C) logits."""
    assert batch_block % 8 == 0
    N = x.shape[0]
    C = packed['wfc3'].shape[0]
    B = batch_block
    G = -(-N // B)                       # cdiv
    n_pad = G * B

    x2 = x.reshape(N, 32, 32).astype(jnp.float32)
    if n_pad != N:                       # ragged final block: zero-pad, slice later
        x2 = jnp.pad(x2, ((0, n_pad - N), (0, 0), (0, 0)))
    # (N, y, x) -> (y, (batch, x)): y in sublanes, batch*x lane-dense.
    xp = x2.transpose(1, 0, 2).reshape(32, n_pad * 32)

    consts = dict(packed)
    consts['px1'] = _pool_x_matrix(B)            # batch-block dependent constants
    consts['pxs'] = _pool_select_matrices(B)
    weights = [consts[k] for k in _WEIGHT_ORDER]

    in_specs = [pl.BlockSpec((32, B * 32), lambda n: (0, n))]
    in_specs += [_resident_spec(w) for w in weights]

    out = pl.pallas_call(
        _lenet5_kernel,
        out_shape=jax.ShapeDtypeStruct((G, C, B), jnp.float32),
        grid_spec=pltpu.PrefetchScalarGridSpec(
            num_scalar_prefetch=0,
            grid=(G,),
            in_specs=in_specs,
            out_specs=pl.BlockSpec((1, C, B), lambda n: (n, 0, 0)),
            scratch_shapes=[
                pltpu.VMEM((160, B * 32), jnp.float32),   # conv1 rolled inputs
                pltpu.VMEM((168, B * 32), jnp.float32),   # conv1 + relu
                pltpu.VMEM((440, B * 16), jnp.float32),   # conv2 rolled inputs
                pltpu.VMEM((160, B * 16), jnp.float32),   # conv2 + relu
            ],
        ),
        compiler_params=pltpu.CompilerParams(
            dimension_semantics=("parallel",)),
    )(xp, *weights)

    logits = out.transpose(0, 2, 1).reshape(n_pad, C)[:N]   # (C,B) slabs -> (N,C)
    return logits


# ---------------------------------------------------------------------------
# Reference, init, demo
# ---------------------------------------------------------------------------
def lenet5_reference(x, params):
    """Pure-JAX f32 reference matching the PyTorch forward."""
    f32 = jnp.float32
    hp = jax.lax.Precision.HIGHEST
    dn = ('NCHW', 'OIHW', 'NCHW')
    h = jax.lax.conv_general_dilated(x.astype(f32), params['conv1_w'].astype(f32),
                                     (1, 1), 'VALID', dimension_numbers=dn,
                                     precision=hp)
    h = jax.nn.relu(h + params['conv1_b'].reshape(1, 6, 1, 1))
    h = h.reshape(h.shape[0], 6, 14, 2, 14, 2).mean(axis=(3, 5))
    h = jax.lax.conv_general_dilated(h, params['conv2_w'].astype(f32),
                                     (1, 1), 'VALID', dimension_numbers=dn,
                                     precision=hp)
    h = jax.nn.relu(h + params['conv2_b'].reshape(1, 16, 1, 1))
    h = h.reshape(h.shape[0], 16, 5, 2, 5, 2).mean(axis=(3, 5))
    h = h.reshape(h.shape[0], -1)
    h = jax.nn.relu(jnp.dot(h, params['fc1_w'].T, precision=hp) + params['fc1_b'])
    h = jax.nn.relu(jnp.dot(h, params['fc2_w'].T, precision=hp) + params['fc2_b'])
    return jnp.dot(h, params['fc3_w'].T, precision=hp) + params['fc3_b']


def init_params(key, num_classes=10):
    # Deterministic init matching torch default: U(-1/sqrt(fan_in), 1/sqrt(fan_in)).
    ks = jax.random.split(key, 10)

    def u(k, shape, fan_in):
        bound = 1.0 / jnp.sqrt(jnp.float32(fan_in))
        return jax.random.uniform(k, shape, jnp.float32, -bound, bound)

    return {
        'conv1_w': u(ks[0], (6, 1, 5, 5), 1 * 5 * 5),
        'conv1_b': u(ks[1], (6,), 1 * 5 * 5),
        'conv2_w': u(ks[2], (16, 6, 5, 5), 6 * 5 * 5),
        'conv2_b': u(ks[3], (16,), 6 * 5 * 5),
        'fc1_w': u(ks[4], (120, 400), 400),
        'fc1_b': u(ks[5], (120,), 400),
        'fc2_w': u(ks[6], (84, 120), 120),
        'fc2_b': u(ks[7], (84,), 120),
        'fc3_w': u(ks[8], (num_classes, 84), 84),
        'fc3_b': u(ks[9], (num_classes,), 84),
    }


if __name__ == "__main__":
    key = jax.random.PRNGKey(0)
    kx, kp = jax.random.split(key)
    # Canonical LeNet-5 input: NCHW (2, 1, 32, 32) so flatten yields 16*5*5 = 400.
    x = jax.random.normal(kx, (2, 1, 32, 32), jnp.float32)
    params = init_params(kp)
    packed = pack_params(params)             # one-time weight repack (off hot path)

    out = jax.jit(lenet5_forward)(x, packed)
    jax.block_until_ready(out)
    assert out.shape == (2, 10), out.shape

    ref = lenet5_reference(x, params)
    err = float(jnp.max(jnp.abs(out - ref)))
    assert err < 1e-2, f"max abs error vs reference too large: {err}"
    print("KERNEL_OK")
</pallas_src>

<mosaic_0001>
module attributes {stable_mosaic.version = 11 : i64} {
  func.func @_lenet5_kernel(%arg0: i32, %arg1: memref<32x256xf32, #tpu.memory_space<vmem>>, %arg2: memref<168x160xf32, #tpu.memory_space<vmem>>, %arg3: memref<168x1xf32, #tpu.memory_space<vmem>>, %arg4: memref<88x168xf32, #tpu.memory_space<vmem>>, %arg5: memref<256x128xf32, #tpu.memory_space<vmem>>, %arg6: memref<160x440xf32, #tpu.memory_space<vmem>>, %arg7: memref<160x1xf32, #tpu.memory_space<vmem>>, %arg8: memref<80x160xf32, #tpu.memory_space<vmem>>, %arg9: memref<5x128x8xf32, #tpu.memory_space<vmem>>, %arg10: memref<5x120x80xf32, #tpu.memory_space<vmem>>, %arg11: memref<120x1xf32, #tpu.memory_space<vmem>>, %arg12: memref<84x120xf32, #tpu.memory_space<vmem>>, %arg13: memref<84x1xf32, #tpu.memory_space<vmem>>, %arg14: memref<10x84xf32, #tpu.memory_space<vmem>>, %arg15: memref<10x1xf32, #tpu.memory_space<vmem>>, %arg16: memref<1x10x8xf32, #tpu.memory_space<vmem>>, %arg17: memref<160x256xf32, #tpu.memory_space<vmem>>, %arg18: memref<168x256xf32, #tpu.memory_space<vmem>>, %arg19: memref<440x128xf32, #tpu.memory_space<vmem>>, %arg20: memref<160x128xf32, #tpu.memory_space<vmem>>) attributes {dimension_semantics = [#tpu.dimension_semantics<parallel>], iteration_bounds = array<i64: 1>, scalar_prefetch = 0 : i64, scratch_operands = 4 : i64, tpu.core_type = #tpu.core_type<tc>, window_params = [{transform_indices = @transform_0, window_bounds = array<i64: 32, 256>}, {pipeline_mode = #tpu.pipeline_mode<synchronous>, transform_indices = @transform_1, window_bounds = array<i64: 168, 160>}, {pipeline_mode = #tpu.pipeline_mode<synchronous>, transform_indices = @transform_2, window_bounds = array<i64: 168, 1>}, {pipeline_mode = #tpu.pipeline_mode<synchronous>, transform_indices = @transform_3, window_bounds = array<i64: 88, 168>}, {pipeline_mode = #tpu.pipeline_mode<synchronous>, transform_indices = @transform_4, window_bounds = array<i64: 256, 128>}, {pipeline_mode = #tpu.pipeline_mode<synchronous>, transform_indices = @transform_5, window_bounds = array<i64: 160, 440>}, {pipeline_mode = #tpu.pipeline_mode<synchronous>, transform_indices = @transform_6, window_bounds = array<i64: 160, 1>}, {pipeline_mode = #tpu.pipeline_mode<synchronous>, transform_indices = @transform_7, window_bounds = array<i64: 80, 160>}, {pipeline_mode = #tpu.pipeline_mode<synchronous>, transform_indices = @transform_8, window_bounds = array<i64: 5, 128, 8>}, {pipeline_mode = #tpu.pipeline_mode<synchronous>, transform_indices = @transform_9, window_bounds = array<i64: 5, 120, 80>}, {pipeline_mode = #tpu.pipeline_mode<synchronous>, transform_indices = @transform_10, window_bounds = array<i64: 120, 1>}, {pipeline_mode = #tpu.pipeline_mode<synchronous>, transform_indices = @transform_11, window_bounds = array<i64: 84, 120>}, {pipeline_mode = #tpu.pipeline_mode<synchronous>, transform_indices = @transform_12, window_bounds = array<i64: 84, 1>}, {pipeline_mode = #tpu.pipeline_mode<synchronous>, transform_indices = @transform_13, window_bounds = array<i64: 10, 84>}, {pipeline_mode = #tpu.pipeline_mode<synchronous>, transform_indices = @transform_14, window_bounds = array<i64: 10, 1>}, {transform_indices = @transform_15, window_bounds = array<i64: 1, 10, 8>}]} {
    %c0 = arith.constant 0 : index
    %c0_0 = arith.constant 0 : index
    %0 = vector.load %arg1[%c0, %c0_0] : memref<32x256xf32, #tpu.memory_space<vmem>>, vector<32x256xf32>
    %c0_1 = arith.constant 0 : index
    %c0_2 = arith.constant 0 : index
    %1 = vector.load %arg17[%c0_1, %c0_2] : memref<160x256xf32, #tpu.memory_space<vmem>>, vector<32x256xf32>
    tpu.vector_store %arg17[%c0_1, %c0_2], %0 {strides = array<i32>} : memref<160x256xf32, #tpu.memory_space<vmem>>, vector<32x256xf32>,
    %c255_i32 = arith.constant 255 : i32
    %2 = tpu.dynamic_rotate %0 by %c255_i32 dim 1 : vector<32x256xf32>, i32 -> vector<32x256xf32>
    %c32 = arith.constant 32 : index
    %c0_3 = arith.constant 0 : index
    %3 = vector.load %arg17[%c32, %c0_3] : memref<160x256xf32, #tpu.memory_space<vmem>>, vector<32x256xf32>
    tpu.vector_store %arg17[%c32, %c0_3], %2 {strides = array<i32>} : memref<160x256xf32, #tpu.memory_space<vmem>>, vector<32x256xf32>,
    %c254_i32 = arith.constant 254 : i32
    %4 = tpu.dynamic_rotate %0 by %c254_i32 dim 1 : vector<32x256xf32>, i32 -> vector<32x256xf32>
    %c64 = arith.constant 64 : index
    %c0_4 = arith.constant 0 : index
    %5 = vector.load %arg17[%c64, %c0_4] : memref<160x256xf32, #tpu.memory_space<vmem>>, vector<32x256xf32>
    tpu.vector_store %arg17[%c64, %c0_4], %4 {strides = array<i32>} : memref<160x256xf32, #tpu.memory_space<vmem>>, vector<32x256xf32>,
    %c253_i32 = arith.constant 253 : i32
    %6 = tpu.dynamic_rotate %0 by %c253_i32 dim 1 : vector<32x256xf32>, i32 -> vector<32x256xf32>
    %c96 = arith.constant 96 : index
    %c0_5 = arith.constant 0 : index
    %7 = vector.load %arg17[%c96, %c0_5] : memref<160x256xf32, #tpu.memory_space<vmem>>, vector<32x256xf32>
    tpu.vector_store %arg17[%c96, %c0_5], %6 {strides = array<i32>} : memref<160x256xf32, #tpu.memory_space<vmem>>, vector<32x256xf32>,
    %c252_i32 = arith.constant 252 : i32
    %8 = tpu.dynamic_rotate %0 by %c252_i32 dim 1 : vector<32x256xf32>, i32 -> vector<32x256xf32>
    %c128 = arith.constant 128 : index
    %c0_6 = arith.constant 0 : index
    %9 = vector.load %arg17[%c128, %c0_6] : memref<160x256xf32, #tpu.memory_space<vmem>>, vector<32x256xf32>
    tpu.vector_store %arg17[%c128, %c0_6], %8 {strides = array<i32>} : memref<160x256xf32, #tpu.memory_space<vmem>>, vector<32x256xf32>,
    %c0_7 = arith.constant 0 : index
    %c0_8 = arith.constant 0 : index
    %10 = vector.load %arg2[%c0_7, %c0_8] : memref<168x160xf32, #tpu.memory_space<vmem>>, vector<168x160xf32>
    %c0_9 = arith.constant 0 : index
    %c0_10 = arith.constant 0 : index
    %11 = vector.load %arg17[%c0_9, %c0_10] : memref<160x256xf32, #tpu.memory_space<vmem>>, vector<160x256xf32>
    %cst = arith.constant dense<0.000000e+00> : vector<168x256xf32>
    %12 = tpu.matmul %10, %11, %cst {dimension_numbers = #tpu.dot_dimension_numbers<[1], [0], [0], [1], [0, 0, 1, 1], [], []>} : vector<168x160xf32>, vector<160x256xf32>, vector<168x256xf32> -> vector<168x256xf32>
    %c0_11 = arith.constant 0 : index
    %c0_12 = arith.constant 0 : index
    %13 = vector.load %arg3[%c0_11, %c0_12] : memref<168x1xf32, #tpu.memory_space<vmem>>, vector<168x1xf32>
    %14 = vector.broadcast %13 : vector<168x1xf32> to vector<168x256xf32>
    %15 = arith.addf %12, %14 : vector<168x256xf32>
    %cst_13 = arith.constant 0.000000e+00 : f32
    %16 = vector.broadcast %cst_13 : f32 to vector<168x256xf32>
    %17 = arith.maximumf %15, %16 : vector<168x256xf32>
    %c0_14 = arith.constant 0 : index
    %c0_15 = arith.constant 0 : index
    %18 = vector.load %arg18[%c0_14, %c0_15] : memref<168x256xf32, #tpu.memory_space<vmem>>, vector<168x256xf32>
    tpu.vector_store %arg18[%c0_14, %c0_15], %17 {strides = array<i32>} : memref<168x256xf32, #tpu.memory_space<vmem>>, vector<168x256xf32>,
    %c0_16 = arith.constant 0 : index
    %c0_17 = arith.constant 0 : index
    %19 = vector.load %arg4[%c0_16, %c0_17] : memref<88x168xf32, #tpu.memory_space<vmem>>, vector<88x168xf32>
    %c0_18 = arith.constant 0 : index
    %c0_19 = arith.constant 0 : index
    %20 = vector.load %arg18[%c0_18, %c0_19] : memref<168x256xf32, #tpu.memory_space<vmem>>, vector<168x256xf32>
    %cst_20 = arith.constant dense<0.000000e+00> : vector<88x256xf32>
    %21 = tpu.matmul %19, %20, %cst_20 {dimension_numbers = #tpu.dot_dimension_numbers<[1], [0], [0], [1], [0, 0, 1, 1], [], []>} : vector<88x168xf32>, vector<168x256xf32>, vector<88x256xf32> -> vector<88x256xf32>
    %c0_21 = arith.constant 0 : index
    %c0_22 = arith.constant 0 : index
    %22 = vector.load %arg5[%c0_21, %c0_22] : memref<256x128xf32, #tpu.memory_space<vmem>>, vector<256x128xf32>
    %cst_23 = arith.constant dense<0.000000e+00> : vector<88x128xf32>
    %23 = tpu.matmul %21, %22, %cst_23 {dimension_numbers = #tpu.dot_dimension_numbers<[1], [0], [0], [1], [0, 0, 1, 1], [], []>} : vector<88x256xf32>, vector<256x128xf32>, vector<88x128xf32> -> vector<88x128xf32>
    %c0_24 = arith.constant 0 : index
    %c0_25 = arith.constant 0 : index
    %24 = vector.load %arg19[%c0_24, %c0_25] : memref<440x128xf32, #tpu.memory_space<vmem>>, vector<88x128xf32>
    tpu.vector_store %arg19[%c0_24, %c0_25], %23 {strides = array<i32>} : memref<440x128xf32, #tpu.memory_space<vmem>>, vector<88x128xf32>,
    %c127_i32 = arith.constant 127 : i32
    %25 = tpu.dynamic_rotate %23 by %c127_i32 dim 1 : vector<88x128xf32>, i32 -> vector<88x128xf32>
    %c88 = arith.constant 88 : index
    %c0_26 = arith.constant 0 : index
    %26 = vector.load %arg19[%c88, %c0_26] : memref<440x128xf32, #tpu.memory_space<vmem>>, vector<88x128xf32>
    tpu.vector_store %arg19[%c88, %c0_26], %25 {strides = array<i32>} : memref<440x128xf32, #tpu.memory_space<vmem>>, vector<88x128xf32>,
    %c126_i32 = arith.constant 126 : i32
    %27 = tpu.dynamic_rotate %23 by %c126_i32 dim 1 : vector<88x128xf32>, i32 -> vector<88x128xf32>
    %c176 = arith.constant 176 : index
    %c0_27 = arith.constant 0 : index
    %28 = vector.load %arg19[%c176, %c0_27] : memref<440x128xf32, #tpu.memory_space<vmem>>, vector<88x128xf32>
    tpu.vector_store %arg19[%c176, %c0_27], %27 {strides = array<i32>} : memref<440x128xf32, #tpu.memory_space<vmem>>, vector<88x128xf32>,
    %c125_i32 = arith.constant 125 : i32
    %29 = tpu.dynamic_rotate %23 by %c125_i32 dim 1 : vector<88x128xf32>, i32 -> vector<88x128xf32>
    %c264 = arith.constant 264 : index
    %c0_28 = arith.constant 0 : index
    %30 = vector.load %arg19[%c264, %c0_28] : memref<440x128xf32, #tpu.memory_space<vmem>>, vector<88x128xf32>
    tpu.vector_store %arg19[%c264, %c0_28], %29 {strides = array<i32>} : memref<440x128xf32, #tpu.memory_space<vmem>>, vector<88x128xf32>,
    %c124_i32 = arith.constant 124 : i32
    %31 = tpu.dynamic_rotate %23 by %c124_i32 dim 1 : vector<88x128xf32>, i32 -> vector<88x128xf32>
    %c352 = arith.constant 352 : index
    %c0_29 = arith.constant 0 : index
    %32 = vector.load %arg19[%c352, %c0_29] : memref<440x128xf32, #tpu.memory_space<vmem>>, vector<88x128xf32>
    tpu.vector_store %arg19[%c352, %c0_29], %31 {strides = array<i32>} : memref<440x128xf32, #tpu.memory_space<vmem>>, vector<88x128xf32>,
    %c0_30 = arith.constant 0 : index
    %c0_31 = arith.constant 0 : index
    %33 = vector.load %arg6[%c0_30, %c0_31] : memref<160x440xf32, #tpu.memory_space<vmem>>, vector<160x440xf32>
    %c0_32 = arith.constant 0 : index
    %c0_33 = arith.constant 0 : index
    %34 = vector.load %arg19[%c0_32, %c0_33] : memref<440x128xf32, #tpu.memory_space<vmem>>, vector<440x128xf32>
    %cst_34 = arith.constant dense<0.000000e+00> : vector<160x128xf32>
    %35 = tpu.matmul %33, %34, %cst_34 {dimension_numbers = #tpu.dot_dimension_numbers<[1], [0], [0], [1], [0, 0, 1, 1], [], []>} : vector<160x440xf32>, vector<440x128xf32>, vector<160x128xf32> -> vector<160x128xf32>
    %c0_35 = arith.constant 0 : index
    %c0_36 = arith.constant 0 : index
    %36 = vector.load %arg7[%c0_35, %c0_36] : memref<160x1xf32, #tpu.memory_space<vmem>>, vector<160x1xf32>
    %37 = vector.broadcast %36 : vector<160x1xf32> to vector<160x128xf32>
    %38 = arith.addf %35, %37 : vector<160x128xf32>
    %cst_37 = arith.constant 0.000000e+00 : f32
    %39 = vector.broadcast %cst_37 : f32 to vector<160x128xf32>
    %40 = arith.maximumf %38, %39 : vector<160x128xf32>
    %c0_38 = arith.constant 0 : index
    %c0_39 = arith.constant 0 : index
    %41 = vector.load %arg20[%c0_38, %c0_39] : memref<160x128xf32, #tpu.memory_space<vmem>>, vector<160x128xf32>
    tpu.vector_store %arg20[%c0_38, %c0_39], %40 {strides = array<i32>} : memref<160x128xf32, #tpu.memory_space<vmem>>, vector<160x128xf32>,
    %c0_40 = arith.constant 0 : index
    %c0_41 = arith.constant 0 : index
    %42 = vector.load %arg8[%c0_40, %c0_41] : memref<80x160xf32, #tpu.memory_space<vmem>>, vector<80x160xf32>
    %c0_42 = arith.constant 0 : index
    %c0_43 = arith.constant 0 : index
    %43 = vector.load %arg20[%c0_42, %c0_43] : memref<160x128xf32, #tpu.memory_space<vmem>>, vector<160x128xf32>
    %cst_44 = arith.constant dense<0.000000e+00> : vector<80x128xf32>
    %44 = tpu.matmul %42, %43, %cst_44 {dimension_numbers = #tpu.dot_dimension_numbers<[1], [0], [0], [1], [0, 0, 1, 1], [], []>} : vector<80x160xf32>, vector<160x128xf32>, vector<80x128xf32> -> vector<80x128xf32>
    %c0_45 = arith.constant 0 : index
    %c0_46 = arith.constant 0 : index
    %45 = vector.load %arg11[%c0_45, %c0_46] : memref<120x1xf32, #tpu.memory_space<vmem>>, vector<120x1xf32>
    %c0_47 = arith.constant 0 : index
    %c0_48 = arith.constant 0 : index
    %c0_49 = arith.constant 0 : index
    %46 = vector.load %arg9[%c0_47, %c0_48, %c0_49] : memref<5x128x8xf32, #tpu.memory_space<vmem>>, vector<1x128x8xf32>
    %47 = vector.shape_cast %46 : vector<1x128x8xf32> to vector<128x8xf32>
    %cst_50 = arith.constant dense<0.000000e+00> : vector<80x8xf32>
    %48 = tpu.matmul %44, %47, %cst_50 {dimension_numbers = #tpu.dot_dimension_numbers<[1], [0], [0], [1], [0, 0, 1, 1], [], []>} : vector<80x128xf32>, vector<128x8xf32>, vector<80x8xf32> -> vector<80x8xf32>
    %c0_51 = arith.constant 0 : index
    %c0_52 = arith.constant 0 : index
    %c0_53 = arith.constant 0 : index
    %49 = vector.load %arg10[%c0_51, %c0_52, %c0_53] : memref<5x120x80xf32, #tpu.memory_space<vmem>>, vector<1x120x80xf32>
    %50 = vector.shape_cast %49 : vector<1x120x80xf32> to vector<120x80xf32>
    %cst_54 = arith.constant dense<0.000000e+00> : vector<120x8xf32>
    %51 = tpu.matmul %50, %48, %cst_54 {dimension_numbers = #tpu.dot_dimension_numbers<[1], [0], [0], [1], [0, 0, 1, 1], [], []>} : vector<120x80xf32>, vector<80x8xf32>, vector<120x8xf32> -> vector<120x8xf32>
    %52 = vector.broadcast %45 : vector<120x1xf32> to vector<120x8xf32>
    %53 = arith.addf %52, %51 : vector<120x8xf32>
    %c1 = arith.constant 1 : index
    %c0_55 = arith.constant 0 : index
    %c0_56 = arith.constant 0 : index
    %54 = vector.load %arg9[%c1, %c0_55, %c0_56] : memref<5x128x8xf32, #tpu.memory_space<vmem>>, vector<1x128x8xf32>
    %55 = vector.shape_cast %54 : vector<1x128x8xf32> to vector<128x8xf32>
    %cst_57 = arith.constant dense<0.000000e+00> : vector<80x8xf32>
    %56 = tpu.matmul %44, %55, %cst_57 {dimension_numbers = #tpu.dot_dimension_numbers<[1], [0], [0], [1], [0, 0, 1, 1], [], []>} : vector<80x128xf32>, vector<128x8xf32>, vector<80x8xf32> -> vector<80x8xf32>
    %c1_58 = arith.constant 1 : index
    %c0_59 = arith.constant 0 : index
    %c0_60 = arith.constant 0 : index
    %57 = vector.load %arg10[%c1_58, %c0_59, %c0_60] : memref<5x120x80xf32, #tpu.memory_space<vmem>>, vector<1x120x80xf32>
    %58 = vector.shape_cast %57 : vector<1x120x80xf32> to vector<120x80xf32>
    %cst_61 = arith.constant dense<0.000000e+00> : vector<120x8xf32>
    %59 = tpu.matmul %58, %56, %cst_61 {dimension_numbers = #tpu.dot_dimension_numbers<[1], [0], [0], [1], [0, 0, 1, 1], [], []>} : vector<120x80xf32>, vector<80x8xf32>, vector<120x8xf32> -> vector<120x8xf32>
    %60 = arith.addf %53, %59 : vector<120x8xf32>
    %c2 = arith.constant 2 : index
    %c0_62 = arith.constant 0 : index
    %c0_63 = arith.constant 0 : index
    %61 = vector.load %arg9[%c2, %c0_62, %c0_63] : memref<5x128x8xf32, #tpu.memory_space<vmem>>, vector<1x128x8xf32>
    %62 = vector.shape_cast %61 : vector<1x128x8xf32> to vector<128x8xf32>
    %cst_64 = arith.constant dense<0.000000e+00> : vector<80x8xf32>
    %63 = tpu.matmul %44, %62, %cst_64 {dimension_numbers = #tpu.dot_dimension_numbers<[1], [0], [0], [1], [0, 0, 1, 1], [], []>} : vector<80x128xf32>, vector<128x8xf32>, vector<80x8xf32> -> vector<80x8xf32>
    %c2_65 = arith.constant 2 : index
    %c0_66 = arith.constant 0 : index
    %c0_67 = arith.constant 0 : index
    %64 = vector.load %arg10[%c2_65, %c0_66, %c0_67] : memref<5x120x80xf32, #tpu.memory_space<vmem>>, vector<1x120x80xf32>
    %65 = vector.shape_cast %64 : vector<1x120x80xf32> to vector<120x80xf32>
    %cst_68 = arith.constant dense<0.000000e+00> : vector<120x8xf32>
    %66 = tpu.matmul %65, %63, %cst_68 {dimension_numbers = #tpu.dot_dimension_numbers<[1], [0], [0], [1], [0, 0, 1, 1], [], []>} : vector<120x80xf32>, vector<80x8xf32>, vector<120x8xf32> -> vector<120x8xf32>
    %67 = arith.addf %60, %66 : vector<120x8xf32>
    %c3 = arith.constant 3 : index
    %c0_69 = arith.constant 0 : index
    %c0_70 = arith.constant 0 : index
    %68 = vector.load %arg9[%c3, %c0_69, %c0_70] : memref<5x128x8xf32, #tpu.memory_space<vmem>>, vector<1x128x8xf32>
    %69 = vector.shape_cast %68 : vector<1x128x8xf32> to vector<128x8xf32>
    %cst_71 = arith.constant dense<0.000000e+00> : vector<80x8xf32>
    %70 = tpu.matmul %44, %69, %cst_71 {dimension_numbers = #tpu.dot_dimension_numbers<[1], [0], [0], [1], [0, 0, 1, 1], [], []>} : vector<80x128xf32>, vector<128x8xf32>, vector<80x8xf32> -> vector<80x8xf32>
    %c3_72 = arith.constant 3 : index
    %c0_73 = arith.constant 0 : index
    %c0_74 = arith.constant 0 : index
    %71 = vector.load %arg10[%c3_72, %c0_73, %c0_74] : memref<5x120x80xf32, #tpu.memory_space<vmem>>, vector<1x120x80xf32>
    %72 = vector.shape_cast %71 : vector<1x120x80xf32> to vector<120x80xf32>
    %cst_75 = arith.constant dense<0.000000e+00> : vector<120x8xf32>
    %73 = tpu.matmul %72, %70, %cst_75 {dimension_numbers = #tpu.dot_dimension_numbers<[1], [0], [0], [1], [0, 0, 1, 1], [], []>} : vector<120x80xf32>, vector<80x8xf32>, vector<120x8xf32> -> vector<120x8xf32>
    %74 = arith.addf %67, %73 : vector<120x8xf32>
    %c4 = arith.constant 4 : index
    %c0_76 = arith.constant 0 : index
    %c0_77 = arith.constant 0 : index
    %75 = vector.load %arg9[%c4, %c0_76, %c0_77] : memref<5x128x8xf32, #tpu.memory_space<vmem>>, vector<1x128x8xf32>
    %76 = vector.shape_cast %75 : vector<1x128x8xf32> to vector<128x8xf32>
    %cst_78 = arith.constant dense<0.000000e+00> : vector<80x8xf32>
    %77 = tpu.matmul %44, %76, %cst_78 {dimension_numbers = #tpu.dot_dimension_numbers<[1], [0], [0], [1], [0, 0, 1, 1], [], []>} : vector<80x128xf32>, vector<128x8xf32>, vector<80x8xf32> -> vector<80x8xf32>
    %c4_79 = arith.constant 4 : index
    %c0_80 = arith.constant 0 : index
    %c0_81 = arith.constant 0 : index
    %78 = vector.load %arg10[%c4_79, %c0_80, %c0_81] : memref<5x120x80xf32, #tpu.memory_space<vmem>>, vector<1x120x80xf32>
    %79 = vector.shape_cast %78 : vector<1x120x80xf32> to vector<120x80xf32>
    %cst_82 = arith.constant dense<0.000000e+00> : vector<120x8xf32>
    %80 = tpu.matmul %79, %77, %cst_82 {dimension_numbers = #tpu.dot_dimension_numbers<[1], [0], [0], [1], [0, 0, 1, 1], [], []>} : vector<120x80xf32>, vector<80x8xf32>, vector<120x8xf32> -> vector<120x8xf32>
    %81 = arith.addf %74, %80 : vector<120x8xf32>
    %cst_83 = arith.constant 0.000000e+00 : f32
    %82 = vector.broadcast %cst_83 : f32 to vector<120x8xf32>
    %83 = arith.maximumf %81, %82 : vector<120x8xf32>
    %c0_84 = arith.constant 0 : index
    %c0_85 = arith.constant 0 : index
    %84 = vector.load %arg12[%c0_84, %c0_85] : memref<84x120xf32, #tpu.memory_space<vmem>>, vector<84x120xf32>
    %cst_86 = arith.constant dense<0.000000e+00> : vector<84x8xf32>
    %85 = tpu.matmul %84, %83, %cst_86 {dimension_numbers = #tpu.dot_dimension_numbers<[1], [0], [0], [1], [0, 0, 1, 1], [], []>} : vector<84x120xf32>, vector<120x8xf32>, vector<84x8xf32> -> vector<84x8xf32>
    %c0_87 = arith.constant 0 : index
    %c0_88 = arith.constant 0 : index
    %86 = vector.load %arg13[%c0_87, %c0_88] : memref<84x1xf32, #tpu.memory_space<vmem>>, vector<84x1xf32>
    %87 = vector.broadcast %86 : vector<84x1xf32> to vector<84x8xf32>
    %88 = arith.addf %85, %87 : vector<84x8xf32>
    %cst_89 = arith.constant 0.000000e+00 : f32
    %89 = vector.broadcast %cst_89 : f32 to vector<84x8xf32>
    %90 = arith.maximumf %88, %89 : vector<84x8xf32>
    %c0_90 = arith.constant 0 : index
    %c0_91 = arith.constant 0 : index
    %91 = vector.load %arg14[%c0_90, %c0_91] : memref<10x84xf32, #tpu.memory_space<vmem>>, vector<10x84xf32>
    %cst_92 = arith.constant dense<0.000000e+00> : vector<10x8xf32>
    %92 = tpu.matmul %91, %90, %cst_92 {dimension_numbers = #tpu.dot_dimension_numbers<[1], [0], [0], [1], [0, 0, 1, 1], [], []>} : vector<10x84xf32>, vector<84x8xf32>, vector<10x8xf32> -> vector<10x8xf32>
    %c0_93 = arith.constant 0 : index
    %c0_94 = arith.constant 0 : index
    %93 = vector.load %arg15[%c0_93, %c0_94] : memref<10x1xf32, #tpu.memory_space<vmem>>, vector<10x1xf32>
    %94 = vector.broadcast %93 : vector<10x1xf32> to vector<10x8xf32>
    %95 = arith.addf %92, %94 : vector<10x8xf32>
    %c0_95 = arith.constant 0 : index
    %c0_96 = arith.constant 0 : index
    %c0_97 = arith.constant 0 : index
    %96 = vector.load %arg16[%c0_95, %c0_96, %c0_97] : memref<1x10x8xf32, #tpu.memory_space<vmem>>, vector<1x10x8xf32>
    %97 = vector.shape_cast %96 : vector<1x10x8xf32> to vector<10x8xf32>
    %98 = vector.shape_cast %95 : vector<10x8xf32> to vector<1x10x8xf32>
    tpu.vector_store %arg16[%c0_95, %c0_96, %c0_97], %98 {strides = array<i32>} : memref<1x10x8xf32, #tpu.memory_space<vmem>>, vector<1x10x8xf32>,
    return
  }
  func.func @transform_0(%arg0: i32) -> (i32, i32) {
    %c0_i32 = arith.constant 0 : i32
    %c0_i32_0 = arith.constant 0 : i32
    return %c0_i32, %arg0 : i32, i32
  }
  func.func @transform_1(%arg0: i32) -> (i32, i32) {
    %c0_i32 = arith.constant 0 : i32
    %c0_i32_0 = arith.constant 0 : i32
    %c0_i32_1 = arith.constant 0 : i32
    return %c0_i32, %c0_i32_0 : i32, i32
  }
  func.func @transform_2(%arg0: i32) -> (i32, i32) {
    %c0_i32 = arith.constant 0 : i32
    %c0_i32_0 = arith.constant 0 : i32
    %c0_i32_1 = arith.constant 0 : i32
    return %c0_i32, %c0_i32_0 : i32, i32
  }
  func.func @transform_3(%arg0: i32) -> (i32, i32) {
    %c0_i32 = arith.constant 0 : i32
    %c0_i32_0 = arith.constant 0 : i32
    %c0_i32_1 = arith.constant 0 : i32
    return %c0_i32, %c0_i32_0 : i32, i32
  }
  func.func @transform_4(%arg0: i32) -> (i32, i32) {
    %c0_i32 = arith.constant 0 : i32
    %c0_i32_0 = arith.constant 0 : i32
    %c0_i32_1 = arith.constant 0 : i32
    return %c0_i32, %c0_i32_0 : i32, i32
  }
  func.func @transform_5(%arg0: i32) -> (i32, i32) {
    %c0_i32 = arith.constant 0 : i32
    %c0_i32_0 = arith.constant 0 : i32
    %c0_i32_1 = arith.constant 0 : i32
    return %c0_i32, %c0_i32_0 : i32, i32
  }
  func.func @transform_6(%arg0: i32) -> (i32, i32) {
    %c0_i32 = arith.constant 0 : i32
    %c0_i32_0 = arith.constant 0 : i32
    %c0_i32_1 = arith.constant 0 : i32
    return %c0_i32, %c0_i32_0 : i32, i32
  }
  func.func @transform_7(%arg0: i32) -> (i32, i32) {
    %c0_i32 = arith.constant 0 : i32
    %c0_i32_0 = arith.constant 0 : i32
    %c0_i32_1 = arith.constant 0 : i32
    return %c0_i32, %c0_i32_0 : i32, i32
  }
  func.func @transform_8(%arg0: i32) -> (i32, i32, i32) {
    %c0_i32 = arith.constant 0 : i32
    %c0_i32_0 = arith.constant 0 : i32
    %c0_i32_1 = arith.constant 0 : i32
    %c0_i32_2 = arith.constant 0 : i32
    return %c0_i32, %c0_i32_0, %c0_i32_1 : i32, i32, i32
  }
  func.func @transform_9(%arg0: i32) -> (i32, i32, i32) {
    %c0_i32 = arith.constant 0 : i32
    %c0_i32_0 = arith.constant 0 : i32
    %c0_i32_1 = arith.constant 0 : i32
    %c0_i32_2 = arith.constant 0 : i32
    return %c0_i32, %c0_i32_0, %c0_i32_1 : i32, i32, i32
  }
  func.func @transform_10(%arg0: i32) -> (i32, i32) {
    %c0_i32 = arith.constant 0 : i32
    %c0_i32_0 = arith.constant 0 : i32
    %c0_i32_1 = arith.constant 0 : i32
    return %c0_i32, %c0_i32_0 : i32, i32
  }
  func.func @transform_11(%arg0: i32) -> (i32, i32) {
    %c0_i32 = arith.constant 0 : i32
    %c0_i32_0 = arith.constant 0 : i32
    %c0_i32_1 = arith.constant 0 : i32
    return %c0_i32, %c0_i32_0 : i32, i32
  }
  func.func @transform_12(%arg0: i32) -> (i32, i32) {
    %c0_i32 = arith.constant 0 : i32
    %c0_i32_0 = arith.constant 0 : i32
    %c0_i32_1 = arith.constant 0 : i32
    return %c0_i32, %c0_i32_0 : i32, i32
  }
  func.func @transform_13(%arg0: i32) -> (i32, i32) {
    %c0_i32 = arith.constant 0 : i32
    %c0_i32_0 = arith.constant 0 : i32
    %c0_i32_1 = arith.constant 0 : i32
    return %c0_i32, %c0_i32_0 : i32, i32
  }
  func.func @transform_14(%arg0: i32) -> (i32, i32) {
    %c0_i32 = arith.constant 0 : i32
    %c0_i32_0 = arith.constant 0 : i32
    %c0_i32_1 = arith.constant 0 : i32
    return %c0_i32, %c0_i32_0 : i32, i32
  }
  func.func @transform_15(%arg0: i32) -> (i32, i32, i32) {
    %c0_i32 = arith.constant 0 : i32
    %c0_i32_0 = arith.constant 0 : i32
    %c0_i32_1 = arith.constant 0 : i32
    return %arg0, %c0_i32, %c0_i32_0 : i32, i32, i32
  }
}

</mosaic_0001>

<bundles_post_ra>
// kernel: lenet5_forward.1
= control target key start
LH: loop header
LB: loop body
LE: loop exit
PB: predicated region body
PF: predicated region fallthrough
CT: control target
= control target key end

     0   :  { %s6501_s19 = smov 127   ;;  %s6502_s20 = smov 126   ;;  %vm408_vm0 = vcmask 261120   ;;  %v82_v17 = vlaneseq  ;;  %v6505_v18 = vmov 0   ;;  %vm811_vm5 = vcmask 326656   ;;  %s8631_s0 = inlined_call_operand.vmem [shape: f32[32,256], index: 0, kind: input, shape index: {}]   ;;  %s8632_s1 = inlined_call_operand.vmem [shape: f32[168,160], index: 1, kind: input, shape index: {}]   ;;  %s8633_s2 = inlined_call_operand.vmem [shape: f32[168,1], index: 2, kind: input, shape index: {}]   ;;  %s8634_s3 = inlined_call_operand.vmem [shape: f32[88,168], index: 3, kind: input, shape index: {}]   ;;  %s8635_s4 = inlined_call_operand.vmem [shape: f32[256,128], index: 4, kind: input, shape index: {}]   ;;  %s8636_s5 = inlined_call_operand.vmem [shape: f32[160,440], index: 5, kind: input, shape index: {}]   ;;  %s8637_s6 = inlined_call_operand.vmem [shape: f32[160,1], index: 6, kind: input, shape index: {}]   ;;  %s8638_s10 = inlined_call_operand.vmem [shape: f32[120,1], index: 10, kind: input, shape index: {}]   ;;  %s8639_s12 = inlined_call_operand.vmem [shape: f32[84,1], index: 12, kind: input, shape index: {}]   ;;  %s8640_s14 = inlined_call_operand.vmem [shape: f32[10,1], index: 14, kind: input, shape index: {}]   ;;  %s8641_s7 = inlined_call_operand.vmem [shape: f32[80,160], index: 7, kind: input, shape index: {}]   ;;  %s8642_s8 = inlined_call_operand.vmem [shape: f32[5,128,8], index: 8, kind: input, shape index: {}]   ;;  %s8643_s9 = inlined_call_operand.vmem [shape: f32[5,120,80], index: 9, kind: input, shape index: {}]   ;;  %s8644_s11 = inlined_call_operand.vmem [shape: f32[84,120], index: 11, kind: input, shape index: {}]   ;;  %s8645_s13 = inlined_call_operand.vmem [shape: f32[10,84], index: 13, kind: input, shape index: {}]   ;;  %s8646_s15 = inlined_call_operand.vmem [shape: f32[1,10,8], index: 15, kind: output, shape index: {}]  }
   0x1   :  { %v54_v0 = vld [vmem:[%s8631_s0 + $0x20] sm:$0xff]  ;;  %v56_v1 = vld [vmem:[%s8631_s0 + $0x30] sm:$0xff]  ;;  %v55_v5 = vld [vmem:[%s8631_s0 + $0x28] sm:$0xff]  ;;  %s6504_s21 = smov 124   ;;  %6399 = vset.pattern.permute.xlu0 %v6505_v18  ;;  %6400 = vset.pattern.permute.xlu1 %v6505_v18  ;;  %vm1526_vm6 = vcmask 457728   ;;  %vm6508_vm7 = vmmov 0  }
   0x2   :  { %v50_v2 = vld [vmem:[%s8631_s0] sm:$0xff]  ;;  %v6329_v3 = vpack.i.bf16 %v56_v1, %v54_v0  ;;  %v52_v4 = vld [vmem:[%s8631_s0 + $0x10] sm:$0xff]  ;;  %v57_v6 = vld [vmem:[%s8631_s0 + $0x38] sm:$0xff]  ;;  %v5624_v15 = vpack.c.bf16 %v56_v1, %v54_v0  ;;  %v6645_v24 = vand.u32 127, %v82_v17  ;;  %vm2303_vm8 = vcmask 654336  }
   0x3   :  { %v6319_v7 = vpack.i.bf16 %v52_v4, %v50_v2  ;;  %v51_v8 = vld [vmem:[%s8631_s0 + $0x8] sm:$0xff]  ;;  %v53_v9 = vld [vmem:[%s8631_s0 + $0x18] sm:$0xff]  ;;  %v6334_v10 = vpack.i.bf16 %v57_v6, %v55_v5  ;;  %v5620_v13 = vpack.c.bf16 %v52_v4, %v50_v2  ;;  %v5622_v14 = vpack.c.bf16 %v57_v6, %v55_v5  ;;  %s6503_s0 = smov 125   ;;  %v282_v19 = vld [vmem:[%s8633_s2] sm:$0xff] }
   0x4   :  { %6330 = vrot.lane.b32.xlu1 %v6329_v3, %s6501_s19  ;;  %v6324_v11 = vpack.i.bf16 %v53_v9, %v51_v8  ;;  %v5618_v12 = vpack.c.bf16 %v53_v9, %v51_v8  ;;  %v201_v16 = vld [vmem:[%s8632_s1 + $0x8] sm:$0xff]  ;;  %v284_v21 = vld [vmem:[%s8633_s2 + $0x10] sm:$0xff]  ;;  %v285_v22 = vld [vmem:[%s8633_s2 + $0x18] sm:$0xff]  ;;  %vm84_vm1 = vcmp.lt.s32.totalorder %v6645_v24, 127  ;;  %vm117_vm2 = vcmp.lt.s32.totalorder %v6645_v24, 126 }
   0x5   :  { %6320 = vrot.lane.b32.xlu0 %v6319_v7, %s6501_s19  ;;  %4336 = vmatprep.mubr.msk.f32.mxu0 %vm408_vm0, %v201_v16  ;;  %v283_v20 = vld [vmem:[%s8633_s2 + $0x8] sm:$0xff]  ;;  %v286_v26 = vld [vmem:[%s8633_s2 + $0x20] sm:$0xff]  ;;  %v288_v38 = vld [vmem:[%s8633_s2 + $0x30] sm:$0xff]  ;;  %vm150_vm3 = vcmp.lt.s32.totalorder %v6645_v24, 125  ;;  %vm183_vm4 = vcmp.lt.s32.totalorder %v6645_v24, 124  ;;  %vm4063_vm9 = vcmask 982016  }
   0x6   :  { %5619 = vmatprep.subr.bf16.mxu0 %v5618_v12  ;;  %v287_v27 = vld [vmem:[%s8633_s2 + $0x28] sm:$0xff]  ;;  %v289_v39 = vld [vmem:[%s8633_s2 + $0x38] sm:$0xff]  ;;  %v290_v54 = vld [vmem:[%s8633_s2 + $0x40] sm:$0xff]  ;;  %vm4242_vm10 = vcmask 687104   ;;  %vm4249_vm11 = vcmask 1043456   ;;  %vm4330_vm12 = vcmask 58368  }
   0x7   :  { %5621 = vmatpush1.bf16.msra.mxu0 %v5620_v13  ;;  %v291_v58 = vld [vmem:[%s8633_s2 + $0x48] sm:$0xff]  ;;  %v293_v8 = vld [vmem:[%s8633_s2 + $0x58] sm:$0xff]  ;;  %vm4328_vm13 = vcmask 64512  }
   0x8   :  { %6335 = vrot.lane.b32.xlu1 %v6334_v10, %s6501_s19  ;;  %5623 = vmatprep.subr.bf16.mxu0 %v5622_v14  ;;  %v203_v24 = vld [vmem:[%s8632_s1 + $0x18] sm:$0xff] }
   0x9   :  { %6325 = vrot.lane.b32.xlu0 %v6324_v11, %s6501_s19 }
   0xb   :  { %5625 = vmatpush1.bf16.msra.mxu0 %v5624_v15 }
   0xc   :  { %6345 = vrot.lane.b32.xlu1 %v6324_v11, %s6502_s20 }
   0xd   :  { %6340 = vrot.lane.b32.xlu0 %v6319_v7, %s6502_s20 }
  0x10   :  { %6355 = vrot.lane.b32.xlu1 %v6334_v10, %s6502_s20 }
  0x11   :  { %6350 = vrot.lane.b32.xlu0 %v6329_v3, %s6502_s20 }
  0x14   :  { %6365 = vrot.lane.b32.xlu1 %v6324_v11, %s6503_s0 }
  0x15   :  { %6360 = vrot.lane.b32.xlu0 %v6319_v7, %s6503_s0 }
  0x18   :  { %6375 = vrot.lane.b32.xlu1 %v6334_v10, %s6503_s0 }
  0x19   :  { %6370 = vrot.lane.b32.xlu0 %v6329_v3, %s6503_s0 }
  0x1c   :  { %6385 = vrot.lane.b32.xlu1 %v6324_v11, %s6504_s21 }
  0x1d   :  { %6380 = vrot.lane.b32.xlu0 %v6319_v7, %s6504_s21  ;;  %v292_v7 = vld [vmem:[%s8633_s2 + $0x50] sm:$0xff] }
  0x20   :  { %6395 = vrot.lane.b32.xlu1 %v6334_v10, %s6504_s21 }
  0x21   :  { %6390 = vrot.lane.b32.xlu0 %v6329_v3, %s6504_s21 }
  0x24   :  { %310 = vperm.xlu1 %6400, %v283_v20  }
  0x25   :  { %305 = vperm.xlu0 %6399, %v282_v19  }
  0x28   :  { %315 = vperm.xlu1 %6400, %v284_v21   ;;  %v294_v21 = vld [vmem:[%s8633_s2 + $0x60] sm:$0xff] }
  0x29   :  { %320 = vperm.xlu0 %6399, %v285_v22   ;;  %v295_v22 = vld [vmem:[%s8633_s2 + $0x68] sm:$0xff] }
  0x2c   :  { %325 = vperm.xlu1 %6400, %v286_v26  }
  0x2d   :  { %330 = vperm.xlu0 %6399, %v287_v27  }
  0x30   :  { %335 = vperm.xlu1 %6400, %v288_v38  }
  0x31   :  { %340 = vperm.xlu0 %6399, %v289_v39  }
  0x34   :  { %345 = vperm.xlu1 %6400, %v290_v54  }
  0x35   :  { %350 = vperm.xlu0 %6399, %v291_v58  }
  0x38   :  { %355 = vperm.xlu1 %6400, %v292_v7  }
  0x39   :  { %360 = vperm.xlu0 %6399, %v293_v8   ;;  %v302_v8 = vld [vmem:[%s8633_s2 + $0xa0] sm:$0xff] }
  0x3c   :  { %365 = vperm.xlu1 %6400, %v294_v21   ;;  %v212_v21 = vld [vmem:[%s8632_s1 + $0x60] sm:$0xff] }
  0x3d   :  { %370 = vperm.xlu0 %6399, %v295_v22   ;;  %v215_v22 = vld [vmem:[%s8632_s1 + $0x78] sm:$0xff] }
  0x76   :  { %v6331_v23 = vpop.permute.xlu1 %6330 }
  0x77   :  { %v6321_v25 = vpop.permute.xlu0 %6320  ;;  %v6333_v28 = vunpack.i.h.bf16 %v6331_v23  ;;  %v6332_v29 = vunpack.i.l.bf16 %v6331_v23 }
  0x78   :  { %v6323_v34 = vunpack.i.h.bf16 %v6321_v25  ;;  %v6322_v35 = vunpack.i.l.bf16 %v6321_v25 }
  0x7a   :  { %v6336_v30 = vpop.permute.xlu1 %6335 }
  0x7b   :  { %v6338_v31 = vunpack.i.h.bf16 %v6336_v30  ;;  %v6337_v32 = vunpack.i.l.bf16 %v6336_v30  ;;  %v6326_v33 = vpop.permute.xlu0 %6325 }
  0x7c   :  { %v6328_v36 = vunpack.i.h.bf16 %v6326_v33  ;;  %v6327_v37 = vunpack.i.l.bf16 %v6326_v33 }
  0x7d   :  { %v91_v40 = vsel %vm84_vm1, %v6337_v32, %v6332_v29  ;;  %v92_v41 = vsel %vm84_vm1, %v6338_v31, %v6333_v28  ;;  %v87_v56 = vsel %vm84_vm1, %v6332_v29, %v6337_v32  ;;  %v88_v57 = vsel %vm84_vm1, %v6333_v28, %v6338_v31 }
  0x7e   :  { %v89_v42 = vsel %vm84_vm1, %v6327_v37, %v6322_v35  ;;  %v90_v43 = vsel %vm84_vm1, %v6328_v36, %v6323_v34  ;;  %v85_v44 = vsel %vm84_vm1, %v6322_v35, %v6327_v37  ;;  %v86_v45 = vsel %vm84_vm1, %v6323_v34, %v6328_v36  ;;  %v6346_v46 = vpop.permute.xlu1 %6345  ;;  %v296_v36 = vld [vmem:[%s8633_s2 + $0x70] sm:$0xff]  ;;  %v297_v37 = vld [vmem:[%s8633_s2 + $0x78] sm:$0xff] }
  0x7f   :  { %v5626_v47 = vpack.c.bf16 %v90_v43, %v89_v42  ;;  %v5628_v48 = vpack.c.bf16 %v86_v45, %v85_v44  ;;  %v6348_v49 = vunpack.i.h.bf16 %v6346_v46  ;;  %v6347_v50 = vunpack.i.l.bf16 %v6346_v46  ;;  %v6341_v51 = vpop.permute.xlu0 %6340  ;;  %375 = vperm.xlu1 %6400, %v296_v36   ;;  %380 = vperm.xlu0 %6399, %v297_v37   ;;  %v226_v36 = vld [vmem:[%s8632_s1 + $0xd0] sm:$0xff]  ;;  %v229_v37 = vld [vmem:[%s8632_s1 + $0xe8] sm:$0xff] }
  0x80   :  { %v6343_v52 = vunpack.i.h.bf16 %v6341_v51  ;;  %v6342_v53 = vunpack.i.l.bf16 %v6341_v51  ;;  %v5630_v55 = vpack.c.bf16 %v92_v41, %v91_v40  ;;  %v5632_v4 = vpack.c.bf16 %v88_v57, %v87_v56  ;;  %v299_v51 = vld [vmem:[%s8633_s2 + $0x88] sm:$0xff] }
  0x81   :  { %5627 = vmatprep.subr.bf16.mxu0 %v5626_v47 }
  0x82   :  { %5629 = vmatpush1.bf16.msra.mxu0 %v5628_v48  ;;  %v6356_v59 = vpop.permute.xlu1 %6355  ;;  %v122_v60 = vsel %vm117_vm2, %v6347_v50, %v6342_v53  ;;  %v123_v61 = vsel %vm117_vm2, %v6348_v49, %v6343_v52  ;;  %v118_v62 = vsel %vm117_vm2, %v6342_v53, %v6347_v50  ;;  %v119_v3 = vsel %vm117_vm2, %v6343_v52, %v6348_v49  ;;  %v298_v50 = vld [vmem:[%s8633_s2 + $0x80] sm:$0xff] }
  0x83   :  { %5631 = vmatprep.subr.bf16.mxu0 %v5630_v55  ;;  %v6358_v63 = vunpack.i.h.bf16 %v6356_v59  ;;  %v6357_v0 = vunpack.i.l.bf16 %v6356_v59  ;;  %v6351_v1 = vpop.permute.xlu0 %6350  ;;  %v5634_v2 = vpack.c.bf16 %v123_v61, %v122_v60  ;;  %v5636_v9 = vpack.c.bf16 %v119_v3, %v118_v62  ;;  %385 = vperm.xlu1 %6400, %v298_v50   ;;  %v240_v50 = vld [vmem:[%s8632_s1 + $0x140] sm:$0xff] }
  0x84   :  { %v6353_v5 = vunpack.i.h.bf16 %v6351_v1  ;;  %v6352_v6 = vunpack.i.l.bf16 %v6351_v1  ;;  %390 = vperm.xlu0 %6399, %v299_v51   ;;  %v301_v1 = vld [vmem:[%s8633_s2 + $0x98] sm:$0xff]  ;;  %v748_v51 = vld [vmem:[%s8634_s3 + $0x8] sm:$0xff] }
  0x85   :  { %4357 = vmatprep.mubr.msk.f32.mxu1 %vm811_vm5, %v748_v51 }
  0x86   :  { %5633 = vmatpush1.bf16.msra.mxu0 %v5632_v4  ;;  %v6366_v10 = vpop.permute.xlu1 %6365  ;;  %v124_v11 = vsel %vm117_vm2, %v6357_v0, %v6352_v6  ;;  %v125_v12 = vsel %vm117_vm2, %v6358_v63, %v6353_v5  ;;  %v120_v13 = vsel %vm117_vm2, %v6352_v6, %v6357_v0  ;;  %v121_v18 = vsel %vm117_vm2, %v6353_v5, %v6358_v63  ;;  %v300_v0 = vld [vmem:[%s8633_s2 + $0x90] sm:$0xff] }
  0x87   :  { %5635 = vmatprep.subr.bf16.mxu0 %v5634_v2  ;;  %v6368_v14 = vunpack.i.h.bf16 %v6366_v10  ;;  %v6367_v15 = vunpack.i.l.bf16 %v6366_v10  ;;  %v6361_v16 = vpop.permute.xlu0 %6360  ;;  %v5638_v17 = vpack.c.bf16 %v125_v12, %v124_v11  ;;  %v5640_v23 = vpack.c.bf16 %v121_v18, %v120_v13  ;;  %395 = vperm.xlu1 %6400, %v300_v0   ;;  %v200_v10 = vld [vmem:[%s8632_s1] sm:$0xff]  ;;  %v202_v11 = vld [vmem:[%s8632_s1 + $0x10] sm:$0xff]  ;;  %v205_v12 = vld [vmem:[%s8632_s1 + $0x28] sm:$0xff] }
  0x88   :  { %v6363_v19 = vunpack.i.h.bf16 %v6361_v16  ;;  %v6362_v20 = vunpack.i.l.bf16 %v6361_v16  ;;  %400 = vperm.xlu0 %6399, %v301_v1   ;;  %v204_v13 = vld [vmem:[%s8632_s1 + $0x20] sm:$0xff]  ;;  %v209_v16 = vld [vmem:[%s8632_s1 + $0x48] sm:$0xff]  ;;  %v211_v18 = vld [vmem:[%s8632_s1 + $0x58] sm:$0xff] }
  0x8a   :  { %5637 = vmatpush1.bf16.msra.mxu0 %v5636_v9  ;;  %v6376_v25 = vpop.permute.xlu1 %6375  ;;  %v155_v26 = vsel %vm150_vm3, %v6367_v15, %v6362_v20  ;;  %v156_v27 = vsel %vm150_vm3, %v6368_v14, %v6363_v19  ;;  %v151_v28 = vsel %vm150_vm3, %v6362_v20, %v6367_v15  ;;  %v152_v33 = vsel %vm150_vm3, %v6363_v19, %v6368_v14  ;;  %v207_v14 = vld [vmem:[%s8632_s1 + $0x38] sm:$0xff]  ;;  %v206_v15 = vld [vmem:[%s8632_s1 + $0x30] sm:$0xff]  ;;  %v213_v20 = vld [vmem:[%s8632_s1 + $0x68] sm:$0xff] }
  0x8b   :  { %5639 = vmatprep.subr.bf16.mxu0 %v5638_v17  ;;  %v6378_v29 = vunpack.i.h.bf16 %v6376_v25  ;;  %v6377_v30 = vunpack.i.l.bf16 %v6376_v25  ;;  %v6371_v31 = vpop.permute.xlu0 %6370  ;;  %v5642_v32 = vpack.c.bf16 %v156_v27, %v155_v26  ;;  %v5644_v38 = vpack.c.bf16 %v152_v33, %v151_v28  ;;  %405 = vperm.xlu1 %6400, %v302_v8   ;;  %v208_v17 = vld [vmem:[%s8632_s1 + $0x40] sm:$0xff]  ;;  %v210_v19 = vld [vmem:[%s8632_s1 + $0x50] sm:$0xff]  ;;  %v217_v25 = vld [vmem:[%s8632_s1 + $0x88] sm:$0xff] }
  0x8c   :  { %v6373_v34 = vunpack.i.h.bf16 %v6371_v31  ;;  %v6372_v35 = vunpack.i.l.bf16 %v6371_v31  ;;  %v216_v26 = vld [vmem:[%s8632_s1 + $0x80] sm:$0xff]  ;;  %v219_v27 = vld [vmem:[%s8632_s1 + $0x98] sm:$0xff]  ;;  %v218_v28 = vld [vmem:[%s8632_s1 + $0x90] sm:$0xff] }
  0x8d   :  { %v223_v31 = vld [vmem:[%s8632_s1 + $0xb8] sm:$0xff]  ;;  %v225_v33 = vld [vmem:[%s8632_s1 + $0xc8] sm:$0xff] }
  0x8e   :  { %5641 = vmatpush1.bf16.msra.mxu0 %v5640_v23  ;;  %v6386_v39 = vpop.permute.xlu1 %6385  ;;  %v157_v40 = vsel %vm150_vm3, %v6377_v30, %v6372_v35  ;;  %v158_v41 = vsel %vm150_vm3, %v6378_v29, %v6373_v34  ;;  %v153_v42 = vsel %vm150_vm3, %v6372_v35, %v6377_v30  ;;  %v154_v47 = vsel %vm150_vm3, %v6373_v34, %v6378_v29  ;;  %v214_v23 = vld [vmem:[%s8632_s1 + $0x70] sm:$0xff]  ;;  %v221_v29 = vld [vmem:[%s8632_s1 + $0xa8] sm:$0xff]  ;;  %v220_v30 = vld [vmem:[%s8632_s1 + $0xa0] sm:$0xff] }
  0x8f   :  { %5643 = vmatprep.subr.bf16.mxu0 %v5642_v32  ;;  %v6388_v43 = vunpack.i.h.bf16 %v6386_v39  ;;  %v6387_v44 = vunpack.i.l.bf16 %v6386_v39  ;;  %v6381_v45 = vpop.permute.xlu0 %6380  ;;  %v5646_v46 = vpack.c.bf16 %v158_v41, %v157_v40  ;;  %v5648_v52 = vpack.c.bf16 %v154_v47, %v153_v42  ;;  %v222_v32 = vld [vmem:[%s8632_s1 + $0xb0] sm:$0xff]  ;;  %v224_v34 = vld [vmem:[%s8632_s1 + $0xc0] sm:$0xff]  ;;  %v227_v35 = vld [vmem:[%s8632_s1 + $0xd8] sm:$0xff] }
  0x90   :  { %v6383_v48 = vunpack.i.h.bf16 %v6381_v45  ;;  %v6382_v49 = vunpack.i.l.bf16 %v6381_v45  ;;  %v231_v39 = vld [vmem:[%s8632_s1 + $0xf8] sm:$0xff]  ;;  %v230_v40 = vld [vmem:[%s8632_s1 + $0xf0] sm:$0xff]  ;;  %v233_v41 = vld [vmem:[%s8632_s1 + $0x108] sm:$0xff] }
  0x91   :  { %v232_v42 = vld [vmem:[%s8632_s1 + $0x100] sm:$0xff]  ;;  %v237_v45 = vld [vmem:[%s8632_s1 + $0x128] sm:$0xff]  ;;  %v239_v47 = vld [vmem:[%s8632_s1 + $0x138] sm:$0xff] }
  0x92   :  { %5645 = vmatpush1.bf16.msra.mxu0 %v5644_v38  ;;  %v6396_v53 = vpop.permute.xlu1 %6395  ;;  %v188_v54 = vsel %vm183_vm4, %v6387_v44, %v6382_v49  ;;  %v189_v55 = vsel %vm183_vm4, %v6388_v43, %v6383_v48  ;;  %v184_v56 = vsel %vm183_vm4, %v6382_v49, %v6387_v44  ;;  %v185_v61 = vsel %vm183_vm4, %v6383_v48, %v6388_v43  ;;  %v228_v38 = vld [vmem:[%s8632_s1 + $0xe0] sm:$0xff]  ;;  %v235_v43 = vld [vmem:[%s8632_s1 + $0x118] sm:$0xff]  ;;  %v234_v44 = vld [vmem:[%s8632_s1 + $0x110] sm:$0xff] }
  0x93   :  { %5647 = vmatprep.subr.bf16.mxu0 %v5646_v46  ;;  %v6398_v57 = vunpack.i.h.bf16 %v6396_v53  ;;  %v6397_v58 = vunpack.i.l.bf16 %v6396_v53  ;;  %v6391_v59 = vpop.permute.xlu0 %6390  ;;  %v5650_v60 = vpack.c.bf16 %v189_v55, %v188_v54  ;;  %v5652_v2 = vpack.c.bf16 %v185_v61, %v184_v56  ;;  %v236_v46 = vld [vmem:[%s8632_s1 + $0x120] sm:$0xff]  ;;  %v238_v48 = vld [vmem:[%s8632_s1 + $0x130] sm:$0xff]  ;;  %v241_v49 = vld [vmem:[%s8632_s1 + $0x148] sm:$0xff] }
  0x94   :  { %v6393_v62 = vunpack.i.h.bf16 %v6391_v59  ;;  %v6392_v63 = vunpack.i.l.bf16 %v6391_v59 }
  0x96   :  { %5649 = vmatpush1.bf16.msra.mxu0 %v5648_v52  ;;  %v190_v3 = vsel %vm183_vm4, %v6397_v58, %v6392_v63  ;;  %v191_v4 = vsel %vm183_vm4, %v6398_v57, %v6393_v62  ;;  %v186_v6 = vsel %vm183_vm4, %v6392_v63, %v6397_v58  ;;  %v187_v7 = vsel %vm183_vm4, %v6393_v62, %v6398_v57 }
  0x97   :  { %5651 = vmatprep.subr.bf16.mxu0 %v5650_v60  ;;  %v5654_v5 = vpack.c.bf16 %v191_v4, %v190_v3  ;;  %v5656_v9 = vpack.c.bf16 %v187_v7, %v186_v6 }
  0x9a   :  { %5653 = vmatpush1.bf16.msra.mxu0 %v5652_v2 }
  0x9b   :  { %5655 = vmatprep.subr.bf16.mxu0 %v5654_v5 }
  0x9e   :  { %5657 = vmatpush1.bf16.msra.mxu0 %v5656_v9 }
  0xa1   :  { %537 = vmatmul.mubr.f32.vlgmr.msra.gmra.mrb[0].mxu0 %v200_v10 }
  0xa2   :  { %4337 = vmatprep.mubr.msk.f32.mxu0 %vm408_vm0, %v203_v24 }
  0xa3   :  { %v311_v56 = vpop.permute.xlu1 %310 }
  0xa4   :  { %v306_v52 = vpop.permute.xlu0 %305 }
  0xa5   :  { %543 = vmatmul.mubr.f32.gmra.mrb[2].mxu0 %v202_v11 }
  0xa6   :  { %4338 = vmatprep.mubr.msk.f32.mxu0 %vm408_vm0, %v205_v12 }
  0xa7   :  { %v316_v5 = vpop.permute.xlu1 %315 }
  0xa8   :  { %v321_v8 = vpop.permute.xlu0 %320 }
  0xa9   :  { %549 = vmatmul.mubr.f32.gmra.mrb[4].mxu0 %v204_v13 }
  0xaa   :  { %4339 = vmatprep.mubr.msk.f32.mxu0 %vm408_vm0, %v207_v14 }
  0xad   :  { %555 = vmatmul.mubr.f32.gmra.mrb[6].mxu0 %v206_v15 }
  0xae   :  { %4340 = vmatprep.mubr.msk.f32.mxu0 %vm408_vm0, %v209_v16 }
  0xb1   :  { %561 = vmatmul.mubr.f32.gmra.mrb[8].mxu0 %v208_v17 }
  0xb2   :  { %4341 = vmatprep.mubr.msk.f32.mxu0 %vm408_vm0, %v211_v18 }
  0xb5   :  { %567 = vmatmul.mubr.f32.gmra.mrb[10].mxu0 %v210_v19 }
  0xb6   :  { %4342 = vmatprep.mubr.msk.f32.mxu0 %vm408_vm0, %v213_v20  ;;  %v326_v20 = vpop.permute.xlu1 %325 }
  0xb9   :  { %573 = vmatmul.mubr.f32.gmra.mrb[12].mxu0 %v212_v21 }
  0xba   :  { %4343 = vmatprep.mubr.msk.f32.mxu0 %vm408_vm0, %v215_v22 }
  0xbd   :  { %579 = vmatmul.mubr.f32.gmra.mrb[14].mxu0 %v214_v23  ;;  %v331_v23 = vpop.permute.xlu0 %330 }
  0xbe   :  { %4344 = vmatprep.mubr.msk.f32.mxu0 %vm408_vm0, %v217_v25 }
  0xc1   :  { %585 = vmatmul.mubr.f32.gmra.mrb[16].mxu0 %v216_v26 }
  0xc2   :  { %4345 = vmatprep.mubr.msk.f32.mxu0 %vm408_vm0, %v219_v27 }
  0xc5   :  { %591 = vmatmul.mubr.f32.gmra.mrb[18].mxu0 %v218_v28 }
  0xc6   :  { %4346 = vmatprep.mubr.msk.f32.mxu0 %vm408_vm0, %v221_v29 }
  0xc9   :  { %597 = vmatmul.mubr.f32.gmra.mrb[20].mxu0 %v220_v30 }
  0xca   :  { %4347 = vmatprep.mubr.msk.f32.mxu0 %vm408_vm0, %v223_v31 }
  0xcd   :  { %603 = vmatmul.mubr.f32.gmra.mrb[22].mxu0 %v222_v32 }
  0xce   :  { %4348 = vmatprep.mubr.msk.f32.mxu0 %vm408_vm0, %v225_v33 }
  0xd1   :  { %609 = vmatmul.mubr.f32.gmra.mrb[24].mxu0 %v224_v34 }
  0xd2   :  { %4349 = vmatprep.mubr.msk.f32.mxu0 %vm408_vm0, %v227_v35 }
  0xd5   :  { %615 = vmatmul.mubr.f32.gmra.mrb[26].mxu0 %v226_v36 }
  0xd6   :  { %4350 = vmatprep.mubr.msk.f32.mxu0 %vm408_vm0, %v229_v37  ;;  %v336_v37 = vpop.permute.xlu1 %335 }
  0xd9   :  { %621 = vmatmul.mubr.f32.gmra.mrb[28].mxu0 %v228_v38 }
  0xda   :  { %4351 = vmatprep.mubr.msk.f32.mxu0 %vm408_vm0, %v231_v39 }
  0xdd   :  { %627 = vmatmul.mubr.f32.gmra.mrb[30].mxu0 %v230_v40  ;;  %v341_v40 = vpop.permute.xlu0 %340 }
  0xde   :  { %4352 = vmatprep.mubr.msk.f32.mxu0 %vm408_vm0, %v233_v41 }
  0xe1   :  { %633 = vmatmul.mubr.f32.gmra.mrb[32].mxu0 %v232_v42 }
  0xe2   :  { %4353 = vmatprep.mubr.msk.f32.mxu0 %vm408_vm0, %v235_v43 }
  0xe5   :  { %639 = vmatmul.mubr.f32.gmra.mrb[34].mxu0 %v234_v44 }
  0xe6   :  { %4354 = vmatprep.mubr.msk.f32.mxu0 %vm408_vm0, %v237_v45 }
  0xe9   :  { %645 = vmatmul.mubr.f32.gmra.mrb[36].mxu0 %v236_v46 }
  0xea   :  { %4355 = vmatprep.mubr.msk.f32.mxu0 %vm408_vm0, %v239_v47 }
  0xed   :  { %651 = vmatmul.mubr.f32.gmra.mrb[38].mxu0 %v238_v48 }
  0xee   :  { %4356 = vmatprep.mubr.msk.f32.mxu0 %vm408_vm0, %v241_v49 }
  0xf1   :  { %657 = vmatmul.mubr.f32.gmra.mrb[40].mxu0 %v240_v50 }
 0x174   :  { %v538_v53 = vpop.f32.mrb[0].mxu0 }
 0x175   :  { %v540_v54 = vpop.f32.mrb[1].mxu0  ;;  %v539_v55 = vadd.f32 %v538_v53, %v306_v52  ;;  %v346_v53 = vpop.permute.xlu1 %345 }
 0x176   :  { %v541_v57 = vadd.f32 %v540_v54, %v306_v52 }
 0x177   :  { %v663_v62 = vmax.f32 %v539_v55, 0.0 }
 0x178   :  { %v544_v58 = vpop.f32.mrb[2].mxu0  ;;  %v664_v0 = vmax.f32 %v541_v57, 0.0 }
 0x179   :  { %v545_v59 = vadd.f32 %v544_v58, %v311_v56  ;;  %v546_v60 = vpop.f32.mrb[3].mxu0 }
 0x17a   :  { %v547_v61 = vadd.f32 %v546_v60, %v311_v56  ;;  %v351_v56 = vpop.permute.xlu0 %350 }
 0x17b   :  { %v665_v63 = vmax.f32 %v545_v59, 0.0 }
 0x17c   :  { %v666_v1 = vmax.f32 %v547_v61, 0.0  ;;  %v550_v2 = vpop.f32.mrb[4].mxu0 }
 0x17d   :  { %v552_v3 = vpop.f32.mrb[5].mxu0  ;;  %v5660_v4 = vpack.c.bf16 %v665_v63, %v663_v62  ;;  %v551_v7 = vadd.f32 %v550_v2, %v316_v5 }
 0x17e   :  { %v5658_v6 = vpack.c.bf16 %v666_v1, %v664_v0  ;;  %v553_v9 = vadd.f32 %v552_v3, %v316_v5  ;;  %v356_v5 = vpop.permute.xlu1 %355 }
 0x17f   :  { %v667_v13 = vmax.f32 %v551_v7, 0.0 }
 0x180   :  { %v556_v10 = vpop.f32.mrb[6].mxu0  ;;  %5659 = vmatprep.subr.bf16.mxu1 %v5658_v6  ;;  %v668_v15 = vmax.f32 %v553_v9, 0.0 }
 0x181   :  { %v557_v24 = vadd.f32 %v556_v10, %v321_v8  ;;  %v558_v11 = vpop.f32.mrb[7].mxu0  ;;  %5661 = vmatpush1.bf16.msra.mxu1 %v5660_v4 }
 0x182   :  { %v559_v12 = vadd.f32 %v558_v11, %v321_v8  ;;  %v361_v8 = vpop.permute.xlu0 %360 }
 0x183   :  { %v669_v14 = vmax.f32 %v557_v24, 0.0 }
 0x184   :  { %v670_v16 = vmax.f32 %v559_v12, 0.0  ;;  %v562_v17 = vpop.f32.mrb[8].mxu0 }
 0x185   :  { %v5664_v18 = vpack.c.bf16 %v669_v14, %v667_v13  ;;  %v564_v19 = vpop.f32.mrb[9].mxu0  ;;  %v563_v22 = vadd.f32 %v562_v17, %v326_v20 }
 0x186   :  { %v5662_v21 = vpack.c.bf16 %v670_v16, %v668_v15  ;;  %v565_v25 = vadd.f32 %v564_v19, %v326_v20  ;;  %v366_v20 = vpop.permute.xlu1 %365 }
 0x187   :  { %v671_v30 = vmax.f32 %v563_v22, 0.0 }
 0x188   :  { %v568_v26 = vpop.f32.mrb[10].mxu0  ;;  %5663 = vmatprep.subr.bf16.mxu1 %v5662_v21  ;;  %v672_v32 = vmax.f32 %v565_v25, 0.0 }
 0x189   :  { %v569_v27 = vadd.f32 %v568_v26, %v331_v23  ;;  %v570_v28 = vpop.f32.mrb[11].mxu0  ;;  %5665 = vmatpush1.bf16.msra.mxu1 %v5664_v18 }
 0x18a   :  { %v571_v29 = vadd.f32 %v570_v28, %v331_v23  ;;  %v371_v23 = vpop.permute.xlu0 %370 }
 0x18b   :  { %v673_v31 = vmax.f32 %v569_v27, 0.0 }
 0x18c   :  { %v674_v33 = vmax.f32 %v571_v29, 0.0  ;;  %v574_v34 = vpop.f32.mrb[12].mxu0 }
 0x18d   :  { %v5668_v35 = vpack.c.bf16 %v673_v31, %v671_v30  ;;  %v576_v36 = vpop.f32.mrb[13].mxu0  ;;  %v575_v39 = vadd.f32 %v574_v34, %v336_v37 }
 0x18e   :  { %v5666_v38 = vpack.c.bf16 %v674_v33, %v672_v32  ;;  %v577_v41 = vadd.f32 %v576_v36, %v336_v37  ;;  %v376_v37 = vpop.permute.xlu1 %375 }
 0x18f   :  { %v675_v46 = vmax.f32 %v575_v39, 0.0 }
 0x190   :  { %v580_v42 = vpop.f32.mrb[14].mxu0  ;;  %5667 = vmatprep.subr.bf16.mxu1 %v5666_v38  ;;  %v676_v48 = vmax.f32 %v577_v41, 0.0 }
 0x191   :  { %v581_v43 = vadd.f32 %v580_v42, %v341_v40  ;;  %v582_v44 = vpop.f32.mrb[15].mxu0  ;;  %5669 = vmatpush1.bf16.msra.mxu1 %v5668_v35 }
 0x192   :  { %v583_v45 = vadd.f32 %v582_v44, %v341_v40  ;;  %v381_v40 = vpop.permute.xlu0 %380 }
 0x193   :  { %v677_v47 = vmax.f32 %v581_v43, 0.0 }
 0x194   :  { %v678_v49 = vmax.f32 %v583_v45, 0.0  ;;  %v586_v50 = vpop.f32.mrb[16].mxu0 }
 0x195   :  { %v5672_v51 = vpack.c.bf16 %v677_v47, %v675_v46  ;;  %v588_v52 = vpop.f32.mrb[17].mxu0  ;;  %v587_v55 = vadd.f32 %v586_v50, %v346_v53 }
 0x196   :  { %v5670_v54 = vpack.c.bf16 %v678_v49, %v676_v48  ;;  %v589_v57 = vadd.f32 %v588_v52, %v346_v53  ;;  %v386_v53 = vpop.permute.xlu1 %385 }
 0x197   :  { %v679_v62 = vmax.f32 %v587_v55, 0.0 }
 0x198   :  { %v592_v58 = vpop.f32.mrb[18].mxu0  ;;  %5671 = vmatprep.subr.bf16.mxu1 %v5670_v54  ;;  %v680_v0 = vmax.f32 %v589_v57, 0.0 }
 0x199   :  { %v593_v59 = vadd.f32 %v592_v58, %v351_v56  ;;  %v594_v60 = vpop.f32.mrb[19].mxu0  ;;  %5673 = vmatpush1.bf16.msra.mxu1 %v5672_v51 }
 0x19a   :  { %v595_v61 = vadd.f32 %v594_v60, %v351_v56  ;;  %v391_v56 = vpop.permute.xlu0 %390 }
 0x19b   :  { %v681_v63 = vmax.f32 %v593_v59, 0.0 }
 0x19c   :  { %v682_v1 = vmax.f32 %v595_v61, 0.0  ;;  %v598_v2 = vpop.f32.mrb[20].mxu0 }
 0x19d   :  { %v5676_v3 = vpack.c.bf16 %v681_v63, %v679_v62  ;;  %v600_v4 = vpop.f32.mrb[21].mxu0  ;;  %v599_v7 = vadd.f32 %v598_v2, %v356_v5 }
 0x19e   :  { %v5674_v6 = vpack.c.bf16 %v682_v1, %v680_v0  ;;  %v601_v9 = vadd.f32 %v600_v4, %v356_v5  ;;  %v396_v5 = vpop.permute.xlu1 %395 }
 0x19f   :  { %v683_v13 = vmax.f32 %v599_v7, 0.0 }
 0x1a0   :  { %v604_v10 = vpop.f32.mrb[22].mxu0  ;;  %5675 = vmatprep.subr.bf16.mxu1 %v5674_v6  ;;  %v684_v15 = vmax.f32 %v601_v9, 0.0 }
 0x1a1   :  { %v605_v24 = vadd.f32 %v604_v10, %v361_v8  ;;  %v606_v11 = vpop.f32.mrb[23].mxu0  ;;  %5677 = vmatpush1.bf16.msra.mxu1 %v5676_v3 }
 0x1a2   :  { %v607_v12 = vadd.f32 %v606_v11, %v361_v8  ;;  %v401_v8 = vpop.permute.xlu0 %400 }
 0x1a3   :  { %v685_v14 = vmax.f32 %v605_v24, 0.0 }
 0x1a4   :  { %v686_v16 = vmax.f32 %v607_v12, 0.0  ;;  %v610_v17 = vpop.f32.mrb[24].mxu0 }
 0x1a5   :  { %v5680_v18 = vpack.c.bf16 %v685_v14, %v683_v13  ;;  %v612_v19 = vpop.f32.mrb[25].mxu0  ;;  %v611_v22 = vadd.f32 %v610_v17, %v366_v20 }
 0x1a6   :  { %v5678_v21 = vpack.c.bf16 %v686_v16, %v684_v15  ;;  %v613_v25 = vadd.f32 %v612_v19, %v366_v20 }
 0x1a7   :  { %v687_v30 = vmax.f32 %v611_v22, 0.0 }
 0x1a8   :  { %v616_v26 = vpop.f32.mrb[26].mxu0  ;;  %5679 = vmatprep.subr.bf16.mxu1 %v5678_v21  ;;  %v688_v32 = vmax.f32 %v613_v25, 0.0  ;;  %v992_v25 = vld [vmem:[%s8635_s4 + $0x80] sm:$0xff] }
 0x1a9   :  { %v617_v27 = vadd.f32 %v616_v26, %v371_v23  ;;  %v618_v28 = vpop.f32.mrb[27].mxu0  ;;  %5681 = vmatpush1.bf16.msra.mxu1 %v5680_v18  ;;  %v406_v18 = vpop.permute.xlu1 %405  ;;  %v993_v26 = vld [vmem:[%s8635_s4 + $0x88] sm:$0xff] }
 0x1aa   :  { %v619_v29 = vadd.f32 %v618_v28, %v371_v23  ;;  %v976_v28 = vld [vmem:[%s8635_s4] sm:$0xff] }
 0x1ab   :  { %v689_v31 = vmax.f32 %v617_v27, 0.0 }
 0x1ac   :  { %v690_v33 = vmax.f32 %v619_v29, 0.0  ;;  %v622_v34 = vpop.f32.mrb[28].mxu0  ;;  %v977_v29 = vld [vmem:[%s8635_s4 + $0x8] sm:$0xff] }
 0x1ad   :  { %v5684_v35 = vpack.c.bf16 %v689_v31, %v687_v30  ;;  %v624_v36 = vpop.f32.mrb[29].mxu0  ;;  %v623_v39 = vadd.f32 %v622_v34, %v376_v37  ;;  %v994_v30 = vld [vmem:[%s8635_s4 + $0x90] sm:$0xff]  ;;  %v995_v31 = vld [vmem:[%s8635_s4 + $0x98] sm:$0xff]  ;;  %v747_v34 = vld [vmem:[%s8634_s3] sm:$0xff] }
 0x1ae   :  { %v5682_v38 = vpack.c.bf16 %v690_v33, %v688_v32  ;;  %v625_v41 = vadd.f32 %v624_v36, %v376_v37  ;;  %v5698_v32 = vpack.c.bf16 %v993_v26, %v992_v25  ;;  %v750_v36 = vld [vmem:[%s8634_s3 + $0x18] sm:$0xff]  ;;  %v5702_v37 = vpack.c.bf16 %v995_v31, %v994_v30  ;;  %v765_v26 = vld [vmem:[%s8634_s3 + $0x90] sm:$0xff] }
 0x1af   :  { %v691_v46 = vmax.f32 %v623_v39, 0.0  ;;  %v979_v39 = vld [vmem:[%s8635_s4 + $0x18] sm:$0xff] }
 0x1b0   :  { %v628_v42 = vpop.f32.mrb[30].mxu0  ;;  %5683 = vmatprep.subr.bf16.mxu1 %v5682_v38  ;;  %v692_v48 = vmax.f32 %v625_v41, 0.0  ;;  %v978_v38 = vld [vmem:[%s8635_s4 + $0x10] sm:$0xff]  ;;  %v997_v41 = vld [vmem:[%s8635_s4 + $0xa8] sm:$0xff]  ;;  %v766_v25 = vld [vmem:[%s8634_s3 + $0x98] sm:$0xff] }
 0x1b1   :  { %v629_v43 = vadd.f32 %v628_v42, %v381_v40  ;;  %v630_v44 = vpop.f32.mrb[31].mxu0  ;;  %5685 = vmatpush1.bf16.msra.mxu1 %v5684_v35  ;;  %v5700_v35 = vpack.c.bf16 %v977_v29, %v976_v28  ;;  %v749_v42 = vld [vmem:[%s8634_s3 + $0x10] sm:$0xff]  ;;  %v767_v28 = vld [vmem:[%s8634_s3 + $0xa0] sm:$0xff]  ;;  %v991_v30 = vld [vmem:[%s8635_s4 + $0x78] sm:$0xff] }
 0x1b2   :  { %v631_v45 = vadd.f32 %v630_v44, %v381_v40  ;;  %v996_v40 = vld [vmem:[%s8635_s4 + $0xa0] sm:$0xff]  ;;  %v752_v44 = vld [vmem:[%s8634_s3 + $0x28] sm:$0xff]  ;;  %v990_v29 = vld [vmem:[%s8635_s4 + $0x70] sm:$0xff] }
 0x1b3   :  { %v693_v47 = vmax.f32 %v629_v43, 0.0  ;;  %v5704_v43 = vpack.c.bf16 %v979_v39, %v978_v38  ;;  %v5728_v31 = vpack.c.bf16 %v991_v30, %v990_v29 }
 0x1b4   :  { %v694_v49 = vmax.f32 %v631_v45, 0.0  ;;  %v634_v50 = vpop.f32.mrb[32].mxu0  ;;  %v5706_v45 = vpack.c.bf16 %v997_v41, %v996_v40 }
 0x1b5   :  { %v5688_v51 = vpack.c.bf16 %v693_v47, %v691_v46  ;;  %v636_v52 = vpop.f32.mrb[33].mxu0  ;;  %v635_v55 = vadd.f32 %v634_v50, %v386_v53  ;;  %v980_v46 = vld [vmem:[%s8635_s4 + $0x20] sm:$0xff]  ;;  %v981_v47 = vld [vmem:[%s8635_s4 + $0x28] sm:$0xff] }
 0x1b6   :  { %v5686_v54 = vpack.c.bf16 %v694_v49, %v692_v48  ;;  %v637_v57 = vadd.f32 %v636_v52, %v386_v53  ;;  %v998_v48 = vld [vmem:[%s8635_s4 + $0xb0] sm:$0xff]  ;;  %v999_v49 = vld [vmem:[%s8635_s4 + $0xb8] sm:$0xff]  ;;  %v751_v50 = vld [vmem:[%s8634_s3 + $0x20] sm:$0xff] }
 0x1b7   :  { %v695_v62 = vmax.f32 %v635_v55, 0.0  ;;  %v754_v52 = vld [vmem:[%s8634_s3 + $0x38] sm:$0xff]  ;;  %v5710_v53 = vpack.c.bf16 %v999_v49, %v998_v48 }
 0x1b8   :  { %v640_v58 = vpop.f32.mrb[34].mxu0  ;;  %5687 = vmatprep.subr.bf16.mxu1 %v5686_v54  ;;  %v696_v0 = vmax.f32 %v637_v57, 0.0  ;;  %v982_v54 = vld [vmem:[%s8635_s4 + $0x30] sm:$0xff]  ;;  %v983_v55 = vld [vmem:[%s8635_s4 + $0x38] sm:$0xff]  ;;  %v1001_v57 = vld [vmem:[%s8635_s4 + $0xc8] sm:$0xff] }
 0x1b9   :  { %v641_v59 = vadd.f32 %v640_v58, %v391_v56  ;;  %v642_v60 = vpop.f32.mrb[35].mxu0  ;;  %5689 = vmatpush1.bf16.msra.mxu1 %v5688_v51  ;;  %v5708_v51 = vpack.c.bf16 %v981_v47, %v980_v46  ;;  %v753_v58 = vld [vmem:[%s8634_s3 + $0x30] sm:$0xff] }
 0x1ba   :  { %v643_v61 = vadd.f32 %v642_v60, %v391_v56  ;;  %v1000_v56 = vld [vmem:[%s8635_s4 + $0xc0] sm:$0xff]  ;;  %v756_v60 = vld [vmem:[%s8634_s3 + $0x48] sm:$0xff] }
 0x1bb   :  { %v697_v63 = vmax.f32 %v641_v59, 0.0  ;;  %v5712_v59 = vpack.c.bf16 %v983_v55, %v982_v54  ;;  %v6506_v54 = vmov 0.0|0.0  }
 0x1bc   :  { %v698_v1 = vmax.f32 %v643_v61, 0.0  ;;  %v646_v2 = vpop.f32.mrb[36].mxu0  ;;  %v5714_v61 = vpack.c.bf16 %v1001_v57, %v1000_v56  ;;  %5730 = vmatprep.subr.bf16.mxu0 %v6506_v54 }
 0x1bd   :  { %v5692_v3 = vpack.c.bf16 %v697_v63, %v695_v62  ;;  %v648_v4 = vpop.f32.mrb[37].mxu0  ;;  %v647_v7 = vadd.f32 %v646_v2, %v396_v5  ;;  %v984_v62 = vld [vmem:[%s8635_s4 + $0x40] sm:$0xff]  ;;  %v985_v63 = vld [vmem:[%s8635_s4 + $0x48] sm:$0xff] }
 0x1be   :  { %v5690_v6 = vpack.c.bf16 %v698_v1, %v696_v0  ;;  %v649_v9 = vadd.f32 %v648_v4, %v396_v5  ;;  %v1002_v0 = vld [vmem:[%s8635_s4 + $0xd0] sm:$0xff]  ;;  %v1003_v1 = vld [vmem:[%s8635_s4 + $0xd8] sm:$0xff]  ;;  %v755_v2 = vld [vmem:[%s8634_s3 + $0x40] sm:$0xff] }
 0x1bf   :  { %v699_v13 = vmax.f32 %v647_v7, 0.0  ;;  %v758_v4 = vld [vmem:[%s8634_s3 + $0x58] sm:$0xff]  ;;  %v5718_v5 = vpack.c.bf16 %v1003_v1, %v1002_v0 }
 0x1c0   :  { %v652_v10 = vpop.f32.mrb[38].mxu0  ;;  %5691 = vmatprep.subr.bf16.mxu1 %v5690_v6  ;;  %v700_v15 = vmax.f32 %v649_v9, 0.0  ;;  %v986_v6 = vld [vmem:[%s8635_s4 + $0x50] sm:$0xff]  ;;  %v987_v7 = vld [vmem:[%s8635_s4 + $0x58] sm:$0xff]  ;;  %v1005_v9 = vld [vmem:[%s8635_s4 + $0xe8] sm:$0xff] }
 0x1c1   :  { %v653_v24 = vadd.f32 %v652_v10, %v401_v8  ;;  %v654_v11 = vpop.f32.mrb[39].mxu0  ;;  %5693 = vmatpush1.bf16.msra.mxu1 %v5692_v3  ;;  %v5716_v3 = vpack.c.bf16 %v985_v63, %v984_v62  ;;  %v757_v10 = vld [vmem:[%s8634_s3 + $0x50] sm:$0xff] }
 0x1c2   :  { %v655_v12 = vadd.f32 %v654_v11, %v401_v8  ;;  %v1004_v8 = vld [vmem:[%s8635_s4 + $0xe0] sm:$0xff]  ;;  %v760_v11 = vld [vmem:[%s8634_s3 + $0x68] sm:$0xff] }
 0x1c3   :  { %v701_v14 = vmax.f32 %v653_v24, 0.0  ;;  %v5720_v24 = vpack.c.bf16 %v987_v7, %v986_v6 }
 0x1c4   :  { %v702_v16 = vmax.f32 %v655_v12, 0.0  ;;  %v658_v17 = vpop.f32.mrb[40].mxu0  ;;  %v5722_v12 = vpack.c.bf16 %v1005_v9, %v1004_v8 }
 0x1c5   :  { %v5696_v19 = vpack.c.bf16 %v701_v14, %v699_v13  ;;  %v660_v20 = vpop.f32.mrb[41].mxu0  ;;  %v659_v23 = vadd.f32 %v658_v17, %v406_v18  ;;  %v988_v13 = vld [vmem:[%s8635_s4 + $0x60] sm:$0xff]  ;;  %v989_v14 = vld [vmem:[%s8635_s4 + $0x68] sm:$0xff] }
 0x1c6   :  { %v5694_v21 = vpack.c.bf16 %v702_v16, %v700_v15  ;;  %v661_v22 = vadd.f32 %v660_v20, %v406_v18  ;;  %v1006_v15 = vld [vmem:[%s8635_s4 + $0xf0] sm:$0xff]  ;;  %v1007_v16 = vld [vmem:[%s8635_s4 + $0xf8] sm:$0xff]  ;;  %v759_v17 = vld [vmem:[%s8634_s3 + $0x60] sm:$0xff]  ;;  %v5724_v18 = vpack.c.bf16 %v989_v14, %v988_v13 }
 0x1c7   :  { %v703_v33 = vmax.f32 %v659_v23, 0.0  ;;  %v5726_v20 = vpack.c.bf16 %v1007_v16, %v1006_v15  ;;  %v763_v23 = vld [vmem:[%s8634_s3 + $0x80] sm:$0xff] }
 0x1c8   :  { %v704_v27 = vmax.f32 %v661_v22, 0.0  ;;  %5695 = vmatprep.subr.bf16.mxu1 %v5694_v21  ;;  %v761_v21 = vld [vmem:[%s8634_s3 + $0x70] sm:$0xff]  ;;  %v764_v22 = vld [vmem:[%s8634_s3 + $0x88] sm:$0xff] }
 0x1c9   :  { %5697 = vmatpush1.bf16.msra.mxu1 %v5696_v19  ;;  %v762_v19 = vld [vmem:[%s8634_s3 + $0x78] sm:$0xff] }
 0x1ca   :  { %885 = vmatprep.subr.mxu1 %v704_v27  ;;  %v768_v27 = vld [vmem:[%s8634_s3 + $0xa8] sm:$0xff] }
 0x1cd   :  { %886 = vmatpush1.msra.mxu1 %v703_v33 }
 0x1ce   :  { %910 = vmatmul.mubr.f32.vlgmr.msra.gmra.mrb[0].mxu1 %v747_v34  ;;  %5699 = vmatprep.subr.bf16.mxu1 %v5698_v32 }
 0x1cf   :  { %4358 = vmatprep.mubr.msk.f32.mxu1 %vm811_vm5, %v750_v36  ;;  %5701 = vmatpush3.bf16.msra.mxu1 %v5700_v35 }
 0x1d0   :  { %5703 = vmatprep.subr.bf16.mxu1 %v5702_v37 }
 0x1d2   :  { %916 = vmatmul.mubr.f32.gmra.mrb[2].mxu1 %v749_v42 }
 0x1d3   :  { %4359 = vmatprep.mubr.msk.f32.mxu1 %vm811_vm5, %v752_v44  ;;  %5705 = vmatpush3.bf16.msra.mxu1 %v5704_v43 }
 0x1d4   :  { %5707 = vmatprep.subr.bf16.mxu1 %v5706_v45 }
 0x1d6   :  { %922 = vmatmul.mubr.f32.gmra.mrb[4].mxu1 %v751_v50 }
 0x1d7   :  { %4360 = vmatprep.mubr.msk.f32.mxu1 %vm811_vm5, %v754_v52  ;;  %5709 = vmatpush3.bf16.msra.mxu1 %v5708_v51 }
 0x1d8   :  { %5711 = vmatprep.subr.bf16.mxu1 %v5710_v53 }
 0x1da   :  { %928 = vmatmul.mubr.f32.gmra.mrb[6].mxu1 %v753_v58 }
 0x1db   :  { %4361 = vmatprep.mubr.msk.f32.mxu1 %vm811_vm5, %v756_v60  ;;  %5713 = vmatpush3.bf16.msra.mxu1 %v5712_v59 }
 0x1dc   :  { %5715 = vmatprep.subr.bf16.mxu1 %v5714_v61 }
 0x1de   :  { %934 = vmatmul.mubr.f32.gmra.mrb[8].mxu1 %v755_v2 }
 0x1df   :  { %4362 = vmatprep.mubr.msk.f32.mxu1 %vm811_vm5, %v758_v4  ;;  %5717 = vmatpush3.bf16.msra.mxu1 %v5716_v3 }
 0x1e0   :  { %5719 = vmatprep.subr.bf16.mxu1 %v5718_v5 }
 0x1e2   :  { %940 = vmatmul.mubr.f32.gmra.mrb[10].mxu1 %v757_v10 }
 0x1e3   :  { %4363 = vmatprep.mubr.msk.f32.mxu1 %vm811_vm5, %v760_v11  ;;  %5721 = vmatpush3.bf16.msra.mxu1 %v5720_v24 }
 0x1e4   :  { %5723 = vmatprep.subr.bf16.mxu1 %v5722_v12 }
 0x1e6   :  { %946 = vmatmul.mubr.f32.gmra.mrb[12].mxu1 %v759_v17 }
 0x1e7   :  { %4364 = vmatprep.mubr.msk.f32.mxu1 %vm811_vm5, %v762_v19  ;;  %5725 = vmatpush3.bf16.msra.mxu1 %v5724_v18 }
 0x1e8   :  { %5727 = vmatprep.subr.bf16.mxu1 %v5726_v20 }
 0x1ea   :  { %952 = vmatmul.mubr.f32.gmra.mrb[14].mxu1 %v761_v21 }
 0x1eb   :  { %4365 = vmatprep.mubr.msk.f32.mxu1 %vm811_vm5, %v764_v22  ;;  %5729 = vmatpush3.bf16.msra.mxu1 %v5728_v31 }
 0x1ec   :  { %5811 = vmatprep.subr.bf16.mxu1 %v6506_v54 }
 0x1ee   :  { %958 = vmatmul.mubr.f32.gmra.mrb[16].mxu1 %v763_v23 }
 0x1ef   :  { %4366 = vmatprep.mubr.msk.f32.mxu1 %vm811_vm5, %v766_v25 }
 0x1f2   :  { %964 = vmatmul.mubr.f32.gmra.mrb[18].mxu1 %v765_v26 }
 0x1f3   :  { %4367 = vmatprep.mubr.msk.f32.mxu1 %vm811_vm5, %v768_v27 }
 0x1f6   :  { %970 = vmatmul.mubr.f32.gmra.mrb[20].mxu1 %v767_v28 }
 0x2a1   :  { %v911_v32 = vpop.f32.mrb[0].mxu1 }
 0x2a2   :  { %v913_v33 = vpop.f32.mrb[1].mxu1 }
 0x2a3   :  { %1072 = vmatprep.mubr.f32.mxu1 %v913_v33 }
 0x2a4   :  { %1073 = vmatmul.mubr.f32.vlgmr.msra.gmra.mrb[22].mxu1 %v911_v32 }
 0x2a5   :  { %v917_v34 = vpop.f32.mrb[2].mxu1 }
 0x2a6   :  { %v919_v35 = vpop.f32.mrb[3].mxu1 }
 0x2a7   :  { %1077 = vmatprep.mubr.f32.mxu1 %v919_v35 }
 0x2a8   :  { %1078 = vmatmul.mubr.f32.gmra.mrb[24].mxu1 %v917_v34 }
 0x2a9   :  { %v923_v36 = vpop.f32.mrb[4].mxu1 }
 0x2aa   :  { %v925_v37 = vpop.f32.mrb[5].mxu1 }
 0x2ab   :  { %1082 = vmatprep.mubr.f32.mxu1 %v925_v37 }
 0x2ac   :  { %1083 = vmatmul.mubr.f32.gmra.mrb[26].mxu1 %v923_v36 }
 0x2ad   :  { %v929_v38 = vpop.f32.mrb[6].mxu1 }
 0x2ae   :  { %v931_v39 = vpop.f32.mrb[7].mxu1 }
 0x2af   :  { %1087 = vmatprep.mubr.f32.mxu1 %v931_v39  ;;  %v1272_v39 = vld [vmem:[%s8636_s5 + $0x8] sm:$0xff] }
 0x2b0   :  { %1088 = vmatmul.mubr.f32.gmra.mrb[28].mxu1 %v929_v38  ;;  %1651 = vmatprep.mubr.f32.mxu0 %v1272_v39 }
 0x2b1   :  { %v935_v40 = vpop.f32.mrb[8].mxu1 }
 0x2b2   :  { %v937_v41 = vpop.f32.mrb[9].mxu1 }
 0x2b3   :  { %1092 = vmatprep.mubr.f32.mxu1 %v937_v41  ;;  %v1408_v41 = vld [vmem:[%s8637_s6 + $0x10] sm:$0xff] }
 0x2b4   :  { %1093 = vmatmul.mubr.f32.gmra.mrb[30].mxu1 %v935_v40  ;;  %v1406_v40 = vld [vmem:[%s8637_s6] sm:$0xff] }
 0x2b5   :  { %v941_v42 = vpop.f32.mrb[10].mxu1 }
 0x2b6   :  { %v943_v43 = vpop.f32.mrb[11].mxu1 }
 0x2b7   :  { %1097 = vmatprep.mubr.f32.mxu1 %v943_v43  ;;  %v1410_v43 = vld [vmem:[%s8637_s6 + $0x20] sm:$0xff] }
 0x2b8   :  { %1098 = vmatmul.mubr.f32.gmra.mrb[32].mxu1 %v941_v42  ;;  %v1407_v42 = vld [vmem:[%s8637_s6 + $0x8] sm:$0xff] }
 0x2b9   :  { %v947_v44 = vpop.f32.mrb[12].mxu1 }
 0x2ba   :  { %v949_v45 = vpop.f32.mrb[13].mxu1 }
 0x2bb   :  { %1102 = vmatprep.mubr.f32.mxu1 %v949_v45  ;;  %v1412_v45 = vld [vmem:[%s8637_s6 + $0x30] sm:$0xff] }
 0x2bc   :  { %1103 = vmatmul.mubr.f32.gmra.mrb[34].mxu1 %v947_v44  ;;  %v1409_v44 = vld [vmem:[%s8637_s6 + $0x18] sm:$0xff] }
 0x2bd   :  { %v953_v46 = vpop.f32.mrb[14].mxu1 }
 0x2be   :  { %v955_v47 = vpop.f32.mrb[15].mxu1 }
 0x2bf   :  { %1107 = vmatprep.mubr.f32.mxu1 %v955_v47  ;;  %v1414_v47 = vld [vmem:[%s8637_s6 + $0x40] sm:$0xff] }
 0x2c0   :  { %1108 = vmatmul.mubr.f32.gmra.mrb[36].mxu1 %v953_v46  ;;  %v1411_v46 = vld [vmem:[%s8637_s6 + $0x28] sm:$0xff] }
 0x2c1   :  { %v959_v48 = vpop.f32.mrb[16].mxu1 }
 0x2c2   :  { %v961_v49 = vpop.f32.mrb[17].mxu1 }
 0x2c3   :  { %1112 = vmatprep.mubr.f32.mxu1 %v961_v49  ;;  %v1416_v49 = vld [vmem:[%s8637_s6 + $0x50] sm:$0xff] }
 0x2c4   :  { %1113 = vmatmul.mubr.f32.gmra.mrb[38].mxu1 %v959_v48  ;;  %v1413_v48 = vld [vmem:[%s8637_s6 + $0x38] sm:$0xff] }
 0x2c5   :  { %v965_v50 = vpop.f32.mrb[18].mxu1 }
 0x2c6   :  { %v967_v51 = vpop.f32.mrb[19].mxu1 }
 0x2c7   :  { %1117 = vmatprep.mubr.f32.mxu1 %v967_v51  ;;  %v1418_v51 = vld [vmem:[%s8637_s6 + $0x60] sm:$0xff] }
 0x2c8   :  { %1118 = vmatmul.mubr.f32.gmra.mrb[40].mxu1 %v965_v50  ;;  %v1415_v50 = vld [vmem:[%s8637_s6 + $0x48] sm:$0xff] }
 0x2c9   :  { %v971_v52 = vpop.f32.mrb[20].mxu1 }
 0x2ca   :  { %v973_v53 = vpop.f32.mrb[21].mxu1 }
 0x2cb   :  { %1122 = vmatprep.mubr.f32.mxu1 %v973_v53  ;;  %v1420_v53 = vld [vmem:[%s8637_s6 + $0x70] sm:$0xff] }
 0x2cc   :  { %1123 = vmatmul.mubr.f32.gmra.mrb[42].mxu1 %v971_v52  ;;  %v1417_v52 = vld [vmem:[%s8637_s6 + $0x58] sm:$0xff] }
 0x377   :  { %v4643_v55 = vpop.f32.mrb[22].mxu1 }
 0x378   :  { %v4644_v56 = vpop.f32.mrb[23].mxu1 }
 0x379   :  { %v7084_v57 = vadd.f32 %v4644_v56, %v4643_v55  ;;  %v1419_v55 = vld [vmem:[%s8637_s6 + $0x68] sm:$0xff]  ;;  %v1422_v56 = vld [vmem:[%s8637_s6 + $0x80] sm:$0xff] }
 0x37b   :  { %v4646_v58 = vpop.f32.mrb[24].mxu1  ;;  %1139 = vrot.lane.b32.xlu0 %v7084_v57, %s6501_s19 }
 0x37c   :  { %v4647_v59 = vpop.f32.mrb[25].mxu1 }
 0x37d   :  { %v4648_v60 = vadd.f32 %v4647_v59, %v4646_v58  ;;  %v1424_v58 = vld [vmem:[%s8637_s6 + $0x90] sm:$0xff]  ;;  %v1423_v59 = vld [vmem:[%s8637_s6 + $0x88] sm:$0xff] }
 0x37f   :  { %v4649_v61 = vpop.f32.mrb[26].mxu1  ;;  %v5731_v62 = vpack.c.bf16 %v4648_v60, %v7084_v57  ;;  %v7090_v63 = vpack.i.bf16 %v4648_v60, %v7084_v57 }
 0x380   :  { %v4650_v0 = vpop.f32.mrb[27].mxu1 }
 0x381   :  { %v4651_v1 = vadd.f32 %v4650_v0, %v4649_v61  ;;  %5732 = vmatpush1.bf16.msra.mxu0 %v5731_v62  ;;  %v2144_v0 = vld [vmem:[%s8638_s10 + $0x10] sm:$0xff] }
 0x382   :  { %5733 = vmatprep.subr.bf16.mxu0 %v6506_v54 }
 0x383   :  { %v4652_v2 = vpop.f32.mrb[28].mxu1  ;;  %v6401_v3 = vpack.i.bf16 %v4651_v1, %v4648_v60  ;;  %v2142_v60 = vld [vmem:[%s8638_s10] sm:$0xff] }
 0x384   :  { %v4653_v4 = vpop.f32.mrb[29].mxu1 }
 0x385   :  { %v4654_v5 = vadd.f32 %v4653_v4, %v4652_v2  ;;  %6402 = vrot.lane.b32.xlu1 %v6401_v3, %s6501_s19  ;;  %v2146_v2 = vld [vmem:[%s8638_s10 + $0x20] sm:$0xff]  ;;  %v2148_v4 = vld [vmem:[%s8638_s10 + $0x30] sm:$0xff] }
 0x387   :  { %v4655_v6 = vpop.f32.mrb[30].mxu1  ;;  %v5734_v7 = vpack.c.bf16 %v4654_v5, %v4651_v1  ;;  %v6431_v8 = vpack.i.bf16 %v4654_v5, %v4651_v1  ;;  %v2143_v1 = vld [vmem:[%s8638_s10 + $0x8] sm:$0xff] }
 0x388   :  { %v4656_v9 = vpop.f32.mrb[31].mxu1 }
 0x389   :  { %v4657_v10 = vadd.f32 %v4656_v9, %v4655_v6  ;;  %5735 = vmatpush1.bf16.msra.mxu0 %v5734_v7  ;;  %v2147_v9 = vld [vmem:[%s8638_s10 + $0x28] sm:$0xff] }
 0x38a   :  { %5736 = vmatprep.subr.bf16.mxu0 %v6506_v54 }
 0x38b   :  { %v4658_v24 = vpop.f32.mrb[32].mxu1  ;;  %v6406_v11 = vpack.i.bf16 %v4657_v10, %v4654_v5 }
 0x38c   :  { %v4659_v12 = vpop.f32.mrb[33].mxu1 }
 0x38d   :  { %v4660_v13 = vadd.f32 %v4659_v12, %v4658_v24  ;;  %6407 = vrot.lane.b32.xlu0 %v6406_v11, %s6501_s19  ;;  %v2149_v24 = vld [vmem:[%s8638_s10 + $0x38] sm:$0xff] }
 0x38f   :  { %v4661_v14 = vpop.f32.mrb[34].mxu1  ;;  %v5737_v15 = vpack.c.bf16 %v4660_v13, %v4657_v10  ;;  %v6436_v16 = vpack.i.bf16 %v4660_v13, %v4657_v10  ;;  %v2150_v10 = vld [vmem:[%s8638_s10 + $0x40] sm:$0xff] }
 0x390   :  { %v4662_v17 = vpop.f32.mrb[35].mxu1 }
 0x391   :  { %v4663_v18 = vadd.f32 %v4662_v17, %v4661_v14  ;;  %5738 = vmatpush1.bf16.msra.mxu0 %v5737_v15  ;;  %v2154_v17 = vld [vmem:[%s8638_s10 + $0x60] sm:$0xff] }
 0x392   :  { %5739 = vmatprep.subr.bf16.mxu0 %v6506_v54 }
 0x393   :  { %v4664_v19 = vpop.f32.mrb[36].mxu1  ;;  %v6411_v20 = vpack.i.bf16 %v4663_v18, %v4660_v13 }
 0x394   :  { %v4665_v21 = vpop.f32.mrb[37].mxu1 }
 0x395   :  { %v4666_v22 = vadd.f32 %v4665_v21, %v4664_v19  ;;  %6412 = vrot.lane.b32.xlu1 %v6411_v20, %s6501_s19  ;;  %v2156_v19 = vld [vmem:[%s8638_s10 + $0x70] sm:$0xff] }
 0x397   :  { %v4667_v23 = vpop.f32.mrb[38].mxu1  ;;  %v5740_v25 = vpack.c.bf16 %v4666_v22, %v4663_v18  ;;  %v6441_v26 = vpack.i.bf16 %v4666_v22, %v4663_v18  ;;  %v2153_v18 = vld [vmem:[%s8638_s10 + $0x58] sm:$0xff] }
 0x398   :  { %v4668_v27 = vpop.f32.mrb[39].mxu1 }
 0x399   :  { %v4669_v28 = vadd.f32 %v4668_v27, %v4667_v23  ;;  %5741 = vmatpush1.bf16.msra.mxu0 %v5740_v25  ;;  %v2155_v25 = vld [vmem:[%s8638_s10 + $0x68] sm:$0xff]  ;;  %v3997_v27 = vld [vmem:[%s8639_s12] sm:$0xff] }
 0x39a   :  { %5742 = vmatprep.subr.bf16.mxu0 %v6506_v54 }
 0x39b   :  { %v4670_v29 = vpop.f32.mrb[40].mxu1  ;;  %v6416_v30 = vpack.i.bf16 %v4669_v28, %v4666_v22 }
 0x39c   :  { %v4671_v31 = vpop.f32.mrb[41].mxu1 }
 0x39d   :  { %v4672_v32 = vadd.f32 %v4671_v31, %v4670_v29  ;;  %6417 = vrot.lane.b32.xlu0 %v6416_v30, %s6501_s19 }
 0x39f   :  { %v4673_v33 = vpop.f32.mrb[42].mxu1  ;;  %v5743_v34 = vpack.c.bf16 %v4672_v32, %v4669_v28  ;;  %v6446_v35 = vpack.i.bf16 %v4672_v32, %v4669_v28  ;;  %v4000_v28 = vld [vmem:[%s8639_s12 + $0x18] sm:$0xff] }
 0x3a0   :  { %v4674_v36 = vpop.f32.mrb[43].mxu1 }
 0x3a1   :  { %v7100_v37 = vadd.f32 %v4674_v36, %v4673_v33  ;;  %6427 = vrot.lane.b32.xlu0 %v7090_v63, %s6502_s20  ;;  %5744 = vmatpush1.bf16.msra.mxu0 %v5743_v34  ;;  %v3999_v33 = vld [vmem:[%s8639_s12 + $0x10] sm:$0xff]  ;;  %v4002_v34 = vld [vmem:[%s8639_s12 + $0x28] sm:$0xff]  ;;  %v4004_v36 = vld [vmem:[%s8639_s12 + $0x38] sm:$0xff] }
 0x3a2   :  { %5745 = vmatprep.subr.bf16.mxu0 %v6506_v54 }
 0x3a3   :  { %v6421_v38 = vpack.i.bf16 %v7100_v37, %v4672_v32 }
 0x3a5   :  { %6422 = vrot.lane.b32.xlu1 %v6421_v38, %s6501_s19  ;;  %6437 = vrot.lane.b32.xlu0 %v6436_v16, %s6502_s20 }
 0x3a9   :  { %6432 = vrot.lane.b32.xlu1 %v6431_v8, %s6502_s20  ;;  %6447 = vrot.lane.b32.xlu0 %v6446_v35, %s6502_s20 }
 0x3ad   :  { %6442 = vrot.lane.b32.xlu1 %v6441_v26, %s6502_s20  ;;  %1205 = vrot.lane.b32.xlu0 %v7084_v57, %s6503_s0  ;;  %v1421_v57 = vld [vmem:[%s8637_s6 + $0x78] sm:$0xff] }
 0x3b1   :  { %1192 = vrot.lane.b32.xlu1 %v7100_v37, %s6502_s20  ;;  %6457 = vrot.lane.b32.xlu0 %v6406_v11, %s6503_s0  ;;  %v2152_v11 = vld [vmem:[%s8638_s10 + $0x50] sm:$0xff] }
 0x3b5   :  { %6452 = vrot.lane.b32.xlu1 %v6401_v3, %s6503_s0  ;;  %6467 = vrot.lane.b32.xlu0 %v6416_v30, %s6503_s0  ;;  %v2145_v3 = vld [vmem:[%s8638_s10 + $0x18] sm:$0xff] }
 0x3b9   :  { %6462 = vrot.lane.b32.xlu1 %v6411_v20, %s6503_s0  ;;  %6477 = vrot.lane.b32.xlu0 %v7090_v63, %s6504_s21  ;;  %v1425_v63 = vld [vmem:[%s8637_s6 + $0x98] sm:$0xff] }
 0x3bd   :  { %6472 = vrot.lane.b32.xlu1 %v6421_v38, %s6503_s0  ;;  %6487 = vrot.lane.b32.xlu0 %v6436_v16, %s6504_s21  ;;  %v2151_v16 = vld [vmem:[%s8638_s10 + $0x48] sm:$0xff] }
 0x3c1   :  { %6482 = vrot.lane.b32.xlu1 %v6431_v8, %s6504_s21  ;;  %6497 = vrot.lane.b32.xlu0 %v6446_v35, %s6504_s21  ;;  %v4001_v35 = vld [vmem:[%s8639_s12 + $0x20] sm:$0xff] }
 0x3c5   :  { %6492 = vrot.lane.b32.xlu1 %v6441_v26, %s6504_s21  ;;  %1428 = vperm.xlu0 %6399, %v1406_v40   ;;  %v3998_v26 = vld [vmem:[%s8639_s12 + $0x8] sm:$0xff] }
 0x3c9   :  { %1258 = vrot.lane.b32.xlu1 %v7100_v37, %s6504_s21  ;;  %1438 = vperm.xlu0 %6399, %v1408_v41  }
 0x3cd   :  { %1433 = vperm.xlu1 %6400, %v1407_v42   ;;  %1448 = vperm.xlu0 %6399, %v1410_v43  }
 0x3d1   :  { %1443 = vperm.xlu1 %6400, %v1409_v44   ;;  %1458 = vperm.xlu0 %6399, %v1412_v45   ;;  %v4003_v44 = vld [vmem:[%s8639_s12 + $0x30] sm:$0xff]  ;;  %v4006_v45 = vld [vmem:[%s8639_s12 + $0x48] sm:$0xff] }
 0x3d5   :  { %1453 = vperm.xlu1 %6400, %v1411_v46   ;;  %1468 = vperm.xlu0 %6399, %v1414_v47  }
 0x3d9   :  { %1463 = vperm.xlu1 %6400, %v1413_v48   ;;  %1478 = vperm.xlu0 %6399, %v1416_v49  }
 0x3dd   :  { %1473 = vperm.xlu1 %6400, %v1415_v50   ;;  %1488 = vperm.xlu0 %6399, %v1418_v51   ;;  %v4005_v50 = vld [vmem:[%s8639_s12 + $0x40] sm:$0xff] }
 0x3de   :  { %v4230_v51 = vld [vmem:[%s8640_s14] sm:$0xff] }
 0x3e1   :  { %1483 = vperm.xlu1 %6400, %v1417_v52   ;;  %1498 = vperm.xlu0 %6399, %v1420_v53  }
 0x3e5   :  { %1493 = vperm.xlu1 %6400, %v1419_v55   ;;  %1508 = vperm.xlu0 %6399, %v1422_v56  }
 0x3e9   :  { %1503 = vperm.xlu1 %6400, %v1421_v57   ;;  %1518 = vperm.xlu0 %6399, %v1424_v58   ;;  %v4007_v57 = vld [vmem:[%s8639_s12 + $0x50] sm:$0xf] }
 0x3ed   :  { %1513 = vperm.xlu1 %6400, %v1423_v59   ;;  %2491 = vperm.xlu0 %6399, %v2142_v60   ;;  %v1140_v61 = vpop.permute.xlu0 %1139 }
 0x3ee   :  { %v5746_v62 = vpack.c.bf16 %v1140_v61, %v7100_v37 }
 0x3f0   :  { %5747 = vmatpush1.bf16.msra.mxu0 %v5746_v62  ;;  %v4231_v62 = vld [vmem:[%s8640_s14 + $0x8] sm:$0x3] }
 0x3f1   :  { %1523 = vperm.xlu1 %6400, %v1425_v63   ;;  %2501 = vperm.xlu0 %6399, %v2144_v0  }
 0x3f2   :  { %5748 = vmatprep.subr.bf16.mxu0 %v6506_v54 }
 0x3f5   :  { %2496 = vperm.xlu1 %6400, %v2143_v1   ;;  %2511 = vperm.xlu0 %6399, %v2146_v2  }
 0x3f7   :  { %v6403_v5 = vpop.permute.xlu1 %6402 }
 0x3f8   :  { %v6405_v6 = vunpack.i.h.bf16 %v6403_v5  ;;  %v6404_v7 = vunpack.i.l.bf16 %v6403_v5 }
 0x3f9   :  { %2506 = vperm.xlu1 %6400, %v2145_v3   ;;  %2521 = vperm.xlu0 %6399, %v2148_v4  }
 0x3fa   :  { %v5749_v8 = vpack.c.bf16 %v6405_v6, %v6404_v7  ;;  %v1271_v7 = vld [vmem:[%s8636_s5] sm:$0xff] }
 0x3fc   :  { %5750 = vmatpush1.bf16.msra.mxu0 %v5749_v8  ;;  %v1276_v8 = vld [vmem:[%s8636_s5 + $0x28] sm:$0xff] }
 0x3fd   :  { %2516 = vperm.xlu1 %6400, %v2147_v9   ;;  %2531 = vperm.xlu0 %6399, %v2150_v10  }
 0x3fe   :  { %5751 = vmatprep.subr.bf16.mxu0 %v6506_v54 }
 0x3ff   :  { %v6408_v12 = vpop.permute.xlu0 %6407 }
 0x400   :  { %v6410_v13 = vunpack.i.h.bf16 %v6408_v12  ;;  %v6409_v14 = vunpack.i.l.bf16 %v6408_v12  ;;  %v1275_v12 = vld [vmem:[%s8636_s5 + $0x20] sm:$0xff] }
 0x401   :  { %2526 = vperm.xlu1 %6400, %v2149_v24   ;;  %2541 = vperm.xlu0 %6399, %v2152_v11  }
 0x402   :  { %v5752_v15 = vpack.c.bf16 %v6410_v13, %v6409_v14  ;;  %v1280_v13 = vld [vmem:[%s8636_s5 + $0x48] sm:$0xff] }
 0x404   :  { %5753 = vmatpush1.bf16.msra.mxu0 %v5752_v15 }
 0x405   :  { %2536 = vperm.xlu1 %6400, %v2151_v16   ;;  %2551 = vperm.xlu0 %6399, %v2154_v17  }
 0x406   :  { %5754 = vmatprep.subr.bf16.mxu0 %v6506_v54 }
 0x407   :  { %v6413_v20 = vpop.permute.xlu1 %6412 }
 0x408   :  { %v6415_v21 = vunpack.i.h.bf16 %v6413_v20  ;;  %v6414_v22 = vunpack.i.l.bf16 %v6413_v20 }
 0x409   :  { %2546 = vperm.xlu1 %6400, %v2153_v18   ;;  %2561 = vperm.xlu0 %6399, %v2156_v19   ;;  %v1279_v18 = vld [vmem:[%s8636_s5 + $0x40] sm:$0xff]  ;;  %v1284_v19 = vld [vmem:[%s8636_s5 + $0x68] sm:$0xff] }
 0x40a   :  { %v5755_v23 = vpack.c.bf16 %v6415_v21, %v6414_v22 }
 0x40c   :  { %5756 = vmatpush1.bf16.msra.mxu0 %v5755_v23 }
 0x40d   :  { %2556 = vperm.xlu1 %6400, %v2155_v25   ;;  %4015 = vperm.xlu0 %6399, %v3998_v26   ;;  %v1283_v25 = vld [vmem:[%s8636_s5 + $0x60] sm:$0xff]  ;;  %v1288_v26 = vld [vmem:[%s8636_s5 + $0x88] sm:$0xff] }
 0x40e   :  { %5757 = vmatprep.subr.bf16.mxu0 %v6506_v54 }
 0x40f   :  { %v6418_v29 = vpop.permute.xlu0 %6417 }
 0x410   :  { %v6420_v30 = vunpack.i.h.bf16 %v6418_v29  ;;  %v6419_v31 = vunpack.i.l.bf16 %v6418_v29 }
 0x411   :  { %4010 = vperm.xlu1 %6400, %v3997_v27   ;;  %4025 = vperm.xlu0 %6399, %v4000_v28  }
 0x412   :  { %v5758_v32 = vpack.c.bf16 %v6420_v30, %v6419_v31  ;;  %v1287_v31 = vld [vmem:[%s8636_s5 + $0x80] sm:$0xff] }
 0x413   :  { %v6428_v37 = vpop.permute.xlu0 %6427 }
 0x414   :  { %5759 = vmatpush1.bf16.msra.mxu0 %v5758_v32  ;;  %v6430_v41 = vunpack.i.h.bf16 %v6428_v37  ;;  %v6429_v42 = vunpack.i.l.bf16 %v6428_v37  ;;  %v1292_v32 = vld [vmem:[%s8636_s5 + $0xa8] sm:$0xff]  ;;  %v1291_v37 = vld [vmem:[%s8636_s5 + $0xa0] sm:$0xff] }
 0x415   :  { %4020 = vperm.xlu1 %6400, %v3999_v33   ;;  %4035 = vperm.xlu0 %6399, %v4002_v34  }
 0x416   :  { %5760 = vmatprep.subr.bf16.mxu0 %v6506_v54  ;;  %v5764_v47 = vpack.c.bf16 %v6430_v41, %v6429_v42 }
 0x417   :  { %v6423_v38 = vpop.permute.xlu1 %6422  ;;  %v6438_v52 = vpop.permute.xlu0 %6437 }
 0x418   :  { %v6425_v39 = vunpack.i.h.bf16 %v6423_v38  ;;  %v6424_v40 = vunpack.i.l.bf16 %v6423_v38  ;;  %v6440_v53 = vunpack.i.h.bf16 %v6438_v52  ;;  %v6439_v55 = vunpack.i.l.bf16 %v6438_v52  ;;  %v1296_v38 = vld [vmem:[%s8636_s5 + $0xc8] sm:$0xff] }
 0x419   :  { %4030 = vperm.xlu1 %6400, %v4001_v35   ;;  %4045 = vperm.xlu0 %6399, %v4004_v36  }
 0x41a   :  { %v5761_v43 = vpack.c.bf16 %v6425_v39, %v6424_v40  ;;  %v5770_v59 = vpack.c.bf16 %v6440_v53, %v6439_v55 }
 0x41b   :  { %v6433_v46 = vpop.permute.xlu1 %6432  ;;  %v6448_v63 = vpop.permute.xlu0 %6447 }
 0x41c   :  { %5762 = vmatpush1.bf16.msra.mxu0 %v5761_v43  ;;  %v6435_v48 = vunpack.i.h.bf16 %v6433_v46  ;;  %v6434_v49 = vunpack.i.l.bf16 %v6433_v46  ;;  %v6450_v1 = vunpack.i.h.bf16 %v6448_v63  ;;  %v6449_v2 = vunpack.i.l.bf16 %v6448_v63  ;;  %v1295_v43 = vld [vmem:[%s8636_s5 + $0xc0] sm:$0xff]  ;;  %v1312_v63 = vld [vmem:[%s8636_s5 + $0x148] sm:$0xff] }
 0x41d   :  { %4040 = vperm.xlu1 %6400, %v4003_v44   ;;  %4055 = vperm.xlu0 %6399, %v4006_v45   ;;  %v1300_v44 = vld [vmem:[%s8636_s5 + $0xe8] sm:$0xff] }
 0x41e   :  { %5763 = vmatprep.subr.bf16.mxu0 %v6506_v54  ;;  %v5767_v56 = vpack.c.bf16 %v6435_v48, %v6434_v49  ;;  %v5776_v5 = vpack.c.bf16 %v6450_v1, %v6449_v2  ;;  %v1299_v49 = vld [vmem:[%s8636_s5 + $0xe0] sm:$0xff] }
 0x41f   :  { %v6443_v58 = vpop.permute.xlu1 %6442  ;;  %v1206_v4 = vpop.permute.xlu0 %1205 }
 0x420   :  { %5765 = vmatpush1.bf16.msra.mxu0 %v5764_v47  ;;  %v6445_v60 = vunpack.i.h.bf16 %v6443_v58  ;;  %v6444_v61 = vunpack.i.l.bf16 %v6443_v58 }
 0x421   :  { %4050 = vperm.xlu1 %6400, %v4005_v50   ;;  %4234 = vperm.xlu0 %6399, %v4230_v51   ;;  %v1304_v50 = vld [vmem:[%s8636_s5 + $0x108] sm:$0xff] }
 0x422   :  { %5766 = vmatprep.subr.bf16.mxu0 %v6506_v54  ;;  %v5773_v3 = vpack.c.bf16 %v6445_v60, %v6444_v61 }
 0x423   :  { %v1193_v0 = vpop.permute.xlu1 %1192  ;;  %v6458_v11 = vpop.permute.xlu0 %6457 }
 0x424   :  { %5768 = vmatpush1.bf16.msra.mxu0 %v5767_v56  ;;  %v5779_v9 = vpack.c.bf16 %v1206_v4, %v1193_v0  ;;  %v6460_v14 = vunpack.i.h.bf16 %v6458_v11  ;;  %v6459_v15 = vunpack.i.l.bf16 %v6458_v11  ;;  %v1303_v56 = vld [vmem:[%s8636_s5 + $0x100] sm:$0xff]  ;;  %v1316_v4 = vld [vmem:[%s8636_s5 + $0x168] sm:$0xff] }
 0x425   :  { %4060 = vperm.xlu1 %6400, %v4007_v57   ;;  %5769 = vmatprep.subr.bf16.mxu0 %v6506_v54  ;;  %v1308_v57 = vld [vmem:[%s8636_s5 + $0x128] sm:$0xff]  ;;  %v1323_v11 = vld [vmem:[%s8636_s5 + $0x1a0] sm:$0xff] }
 0x426   :  { %v5785_v20 = vpack.c.bf16 %v6460_v14, %v6459_v15  ;;  %v1332_v14 = vld [vmem:[%s8636_s5 + $0x1e8] sm:$0xff]  ;;  %v1331_v15 = vld [vmem:[%s8636_s5 + $0x1e0] sm:$0xff] }
 0x427   :  { %v6453_v6 = vpop.permute.xlu1 %6452  ;;  %v6468_v23 = vpop.permute.xlu0 %6467 }
 0x428   :  { %5771 = vmatpush1.bf16.msra.mxu0 %v5770_v59  ;;  %v6455_v10 = vunpack.i.h.bf16 %v6453_v6  ;;  %v6454_v24 = vunpack.i.l.bf16 %v6453_v6  ;;  %v6470_v27 = vunpack.i.h.bf16 %v6468_v23  ;;  %v6469_v28 = vunpack.i.l.bf16 %v6468_v23  ;;  %v1315_v6 = vld [vmem:[%s8636_s5 + $0x160] sm:$0xff] }
 0x429   :  { %4239 = vperm.xlu1 %6400, %v4231_v62   ;;  %5772 = vmatprep.subr.bf16.mxu0 %v6506_v54  ;;  %v1307_v62 = vld [vmem:[%s8636_s5 + $0x120] sm:$0xff] }
 0x42a   :  { %v5782_v16 = vpack.c.bf16 %v6455_v10, %v6454_v24  ;;  %v5791_v33 = vpack.c.bf16 %v6470_v27, %v6469_v28  ;;  %v1319_v10 = vld [vmem:[%s8636_s5 + $0x180] sm:$0xff]  ;;  %v1324_v24 = vld [vmem:[%s8636_s5 + $0x1a8] sm:$0xff]  ;;  %v1278_v27 = vld [vmem:[%s8636_s5 + $0x38] sm:$0xff] }
 0x42b   :  { %v6463_v17 = vpop.permute.xlu1 %6462  ;;  %v6478_v36 = vpop.permute.xlu0 %6477  ;;  %v1347_v23 = vld [vmem:[%s8636_s5 + $0x260] sm:$0xff]  ;;  %v1277_v28 = vld [vmem:[%s8636_s5 + $0x30] sm:$0xff] }
 0x42c   :  { %5774 = vmatpush1.bf16.msra.mxu0 %v5773_v3  ;;  %v6465_v21 = vunpack.i.h.bf16 %v6463_v17  ;;  %v6464_v22 = vunpack.i.l.bf16 %v6463_v17  ;;  %v6480_v39 = vunpack.i.h.bf16 %v6478_v36  ;;  %v6479_v40 = vunpack.i.l.bf16 %v6478_v36  ;;  %v1311_v3 = vld [vmem:[%s8636_s5 + $0x140] sm:$0xff]  ;;  %v1293_v36 = vld [vmem:[%s8636_s5 + $0xb0] sm:$0xff] }
 0x42d   :  { %5775 = vmatprep.subr.bf16.mxu0 %v6506_v54  ;;  %v1335_v17 = vld [vmem:[%s8636_s5 + $0x200] sm:$0xff] }
 0x42e   :  { %v5788_v29 = vpack.c.bf16 %v6465_v21, %v6464_v22  ;;  %v5797_v45 = vpack.c.bf16 %v6480_v39, %v6479_v40  ;;  %v1343_v21 = vld [vmem:[%s8636_s5 + $0x240] sm:$0xff]  ;;  %v1348_v22 = vld [vmem:[%s8636_s5 + $0x268] sm:$0xff]  ;;  %v1302_v39 = vld [vmem:[%s8636_s5 + $0xf8] sm:$0xff] }
 0x42f   :  { %v6473_v30 = vpop.permute.xlu1 %6472  ;;  %v6488_v48 = vpop.permute.xlu0 %6487  ;;  %v1301_v40 = vld [vmem:[%s8636_s5 + $0xf0] sm:$0xff] }
 0x430   :  { %5777 = vmatpush1.bf16.msra.mxu0 %v5776_v5  ;;  %v6475_v34 = vunpack.i.h.bf16 %v6473_v30  ;;  %v6474_v35 = vunpack.i.l.bf16 %v6473_v30  ;;  %v6490_v51 = vunpack.i.h.bf16 %v6488_v48  ;;  %v6489_v52 = vunpack.i.l.bf16 %v6488_v48  ;;  %v1281_v30 = vld [vmem:[%s8636_s5 + $0x50] sm:$0xff] }
 0x431   :  { %5778 = vmatprep.subr.bf16.mxu0 %v6506_v54  ;;  %v1317_v48 = vld [vmem:[%s8636_s5 + $0x170] sm:$0xff] }
 0x432   :  { %v5794_v41 = vpack.c.bf16 %v6475_v34, %v6474_v35  ;;  %v5803_v58 = vpack.c.bf16 %v6490_v51, %v6489_v52  ;;  %v1289_v34 = vld [vmem:[%s8636_s5 + $0x90] sm:$0xff]  ;;  %v1294_v35 = vld [vmem:[%s8636_s5 + $0xb8] sm:$0xff] }
 0x433   :  { %1652 = vmatmul.mubr.f32.vlgmr.msra.gmra.mrb[42].mxu0 %v1271_v7  ;;  %v6483_v42 = vpop.permute.xlu1 %6482  ;;  %v6498_v61 = vpop.permute.xlu0 %6497  ;;  %v6507_v7 = vmov 0.0   ;;  %v1326_v51 = vld [vmem:[%s8636_s5 + $0x1b8] sm:$0xff]  ;;  %v1325_v52 = vld [vmem:[%s8636_s5 + $0x1b0] sm:$0xff] }
 0x434   :  { %5780 = vmatpush1.bf16.msra.mxu0 %v5779_v9  ;;  %1656 = vmatprep.mubr.f32.mxu0 %v1276_v8  ;;  %v6485_v46 = vunpack.i.h.bf16 %v6483_v42  ;;  %v6484_v47 = vunpack.i.l.bf16 %v6483_v42  ;;  %v6500_v0 = vunpack.i.h.bf16 %v6498_v61  ;;  %v6499_v1 = vunpack.i.l.bf16 %v6498_v61  ;;  %v1320_v8 = vld [vmem:[%s8636_s5 + $0x188] sm:$0xff]  ;;  %v1305_v42 = vld [vmem:[%s8636_s5 + $0x110] sm:$0xff] }
 0x435   :  { %5781 = vmatprep.subr.bf16.mxu0 %v6506_v54  ;;  %v1341_v61 = vld [vmem:[%s8636_s5 + $0x230] sm:$0xff] }
 0x436   :  { %v5800_v53 = vpack.c.bf16 %v6485_v46, %v6484_v47  ;;  %v5809_v5 = vpack.c.bf16 %v6500_v0, %v6499_v1  ;;  %v1313_v46 = vld [vmem:[%s8636_s5 + $0x150] sm:$0xff]  ;;  %v1318_v47 = vld [vmem:[%s8636_s5 + $0x178] sm:$0xff] }
 0x437   :  { %1657 = vmatmul.mubr.f32.gmra.mrb[44].mxu0 %v1275_v12  ;;  %v6493_v55 = vpop.permute.xlu1 %6492  ;;  %v1328_v12 = vld [vmem:[%s8636_s5 + $0x1c8] sm:$0xff]  ;;  %v1350_v0 = vld [vmem:[%s8636_s5 + $0x278] sm:$0xff]  ;;  %v1349_v1 = vld [vmem:[%s8636_s5 + $0x270] sm:$0xff] }
 0x438   :  { %5783 = vmatpush1.bf16.msra.mxu0 %v5782_v16  ;;  %1661 = vmatprep.mubr.f32.mxu0 %v1280_v13  ;;  %v6495_v59 = vunpack.i.h.bf16 %v6493_v55  ;;  %v6494_v60 = vunpack.i.l.bf16 %v6493_v55  ;;  %v1327_v13 = vld [vmem:[%s8636_s5 + $0x1c0] sm:$0xff]  ;;  %v1336_v16 = vld [vmem:[%s8636_s5 + $0x208] sm:$0xff]  ;;  %v1329_v55 = vld [vmem:[%s8636_s5 + $0x1d0] sm:$0xff] }
 0x439   :  { %5784 = vmatprep.subr.bf16.mxu0 %v6506_v54 }
 0x43a   :  { %v5806_v2 = vpack.c.bf16 %v6495_v59, %v6494_v60  ;;  %v1337_v59 = vld [vmem:[%s8636_s5 + $0x210] sm:$0xff]  ;;  %v1342_v60 = vld [vmem:[%s8636_s5 + $0x238] sm:$0xff] }
 0x43b   :  { %1662 = vmatmul.mubr.f32.gmra.mrb[46].mxu0 %v1279_v18  ;;  %v1259_v9 = vpop.permute.xlu1 %1258  ;;  %v1340_v18 = vld [vmem:[%s8636_s5 + $0x228] sm:$0xff] }
 0x43c   :  { %5786 = vmatpush1.bf16.msra.mxu0 %v5785_v20  ;;  %1666 = vmatprep.mubr.f32.mxu0 %v1284_v19  ;;  %v1339_v19 = vld [vmem:[%s8636_s5 + $0x220] sm:$0xff]  ;;  %v1344_v20 = vld [vmem:[%s8636_s5 + $0x248] sm:$0xff] }
 0x43d   :  { %5787 = vmatprep.subr.bf16.mxu0 %v6506_v54 }
 0x43f   :  { %1667 = vmatmul.mubr.f32.gmra.mrb[48].mxu0 %v1283_v25  ;;  %v1274_v25 = vld [vmem:[%s8636_s5 + $0x18] sm:$0xff] }
 0x440   :  { %5789 = vmatpush1.bf16.msra.mxu0 %v5788_v29  ;;  %1671 = vmatprep.mubr.f32.mxu0 %v1288_v26  ;;  %v1273_v26 = vld [vmem:[%s8636_s5 + $0x10] sm:$0xff]  ;;  %v1282_v29 = vld [vmem:[%s8636_s5 + $0x58] sm:$0xff] }
 0x441   :  { %5790 = vmatprep.subr.bf16.mxu0 %v6506_v54 }
 0x443   :  { %1672 = vmatmul.mubr.f32.gmra.mrb[50].mxu0 %v1287_v31  ;;  %v1286_v31 = vld [vmem:[%s8636_s5 + $0x78] sm:$0xff] }
 0x444   :  { %5792 = vmatpush1.bf16.msra.mxu0 %v5791_v33  ;;  %1676 = vmatprep.mubr.f32.mxu0 %v1292_v32  ;;  %v1285_v32 = vld [vmem:[%s8636_s5 + $0x70] sm:$0xff]  ;;  %v1290_v33 = vld [vmem:[%s8636_s5 + $0x98] sm:$0xff] }
 0x445   :  { %5793 = vmatprep.subr.bf16.mxu0 %v6506_v54 }
 0x447   :  { %1677 = vmatmul.mubr.f32.gmra.mrb[52].mxu0 %v1291_v37  ;;  %v1298_v37 = vld [vmem:[%s8636_s5 + $0xd8] sm:$0xff] }
 0x448   :  { %5795 = vmatpush1.bf16.msra.mxu0 %v5794_v41  ;;  %1681 = vmatprep.mubr.f32.mxu0 %v1296_v38  ;;  %v1297_v38 = vld [vmem:[%s8636_s5 + $0xd0] sm:$0xff]  ;;  %v1306_v41 = vld [vmem:[%s8636_s5 + $0x118] sm:$0xff] }
 0x449   :  { %5796 = vmatprep.subr.bf16.mxu0 %v6506_v54 }
 0x44b   :  { %1682 = vmatmul.mubr.f32.gmra.mrb[54].mxu0 %v1295_v43  ;;  %v1310_v43 = vld [vmem:[%s8636_s5 + $0x138] sm:$0xff] }
 0x44c   :  { %5798 = vmatpush1.bf16.msra.mxu0 %v5797_v45  ;;  %1686 = vmatprep.mubr.f32.mxu0 %v1300_v44  ;;  %v1309_v44 = vld [vmem:[%s8636_s5 + $0x130] sm:$0xff]  ;;  %v1314_v45 = vld [vmem:[%s8636_s5 + $0x158] sm:$0xff] }
 0x44d   :  { %5799 = vmatprep.subr.bf16.mxu0 %v6506_v54 }
 0x44f   :  { %1687 = vmatmul.mubr.f32.gmra.mrb[56].mxu0 %v1299_v49  ;;  %v1322_v49 = vld [vmem:[%s8636_s5 + $0x198] sm:$0xff] }
 0x450   :  { %5801 = vmatpush1.bf16.msra.mxu0 %v5800_v53  ;;  %1691 = vmatprep.mubr.f32.mxu0 %v1304_v50  ;;  %v1321_v50 = vld [vmem:[%s8636_s5 + $0x190] sm:$0xff]  ;;  %v1330_v53 = vld [vmem:[%s8636_s5 + $0x1d8] sm:$0xff] }
 0x451   :  { %5802 = vmatprep.subr.bf16.mxu0 %v6506_v54 }
 0x453   :  { %1692 = vmatmul.mubr.f32.gmra.mrb[58].mxu0 %v1303_v56  ;;  %v1334_v56 = vld [vmem:[%s8636_s5 + $0x1f8] sm:$0xff] }
 0x454   :  { %5804 = vmatpush1.bf16.msra.mxu0 %v5803_v58  ;;  %1696 = vmatprep.mubr.f32.mxu0 %v1308_v57  ;;  %v1333_v57 = vld [vmem:[%s8636_s5 + $0x1f0] sm:$0xff]  ;;  %v1338_v58 = vld [vmem:[%s8636_s5 + $0x218] sm:$0xff] }
 0x455   :  { %5805 = vmatprep.subr.bf16.mxu0 %v6506_v54 }
 0x457   :  { %1697 = vmatmul.mubr.f32.gmra.mrb[60].mxu0 %v1307_v62  ;;  %v1346_v62 = vld [vmem:[%s8636_s5 + $0x258] sm:$0xff] }
 0x458   :  { %5807 = vmatpush1.bf16.msra.mxu0 %v5806_v2  ;;  %1701 = vmatprep.mubr.f32.mxu0 %v1312_v63  ;;  %v1345_v63 = vld [vmem:[%s8636_s5 + $0x250] sm:$0xff]  ;;  %v1958_v2 = vld [vmem:[%s8641_s7 + $0x8] sm:$0xff] }
 0x459   :  { %5808 = vmatprep.subr.bf16.mxu0 %v6506_v54  ;;  %4388 = vmatprep.mubr.msk.f32.mxu1 %vm408_vm0, %v1958_v2 }
 0x45b   :  { %1702 = vmatmul.mubr.f32.gmra.mrb[62].mxu0 %v1311_v3  ;;  %v4459_v3 = vld [vmem:[%s8642_s8 + $0x100] sm:$0xff] }
 0x45c   :  { %5810 = vmatpush1.bf16.msra.mxu0 %v5809_v5  ;;  %1706 = vmatprep.mubr.f32.mxu0 %v1316_v4  ;;  %v4460_v4 = vld [vmem:[%s8642_s8 + $0x108] sm:$0xff] }
 0x45d   :  { %1796 = vmatprep.subr.mxu0 %v6507_v7  ;;  %v5935_v5 = vpack.c.bf16 %v4460_v4, %v4459_v3 }
 0x45f   :  { %1707 = vmatmul.mubr.f32.gmra.mrb[64].mxu0 %v1315_v6  ;;  %v4461_v6 = vld [vmem:[%s8642_s8 + $0x110] sm:$0xff] }
 0x460   :  { %1797 = vmatpush1.msra.mxu0 %v1259_v9  ;;  %1711 = vmatprep.mubr.f32.mxu0 %v1320_v8  ;;  %v4462_v8 = vld [vmem:[%s8642_s8 + $0x118] sm:$0xff] }
 0x461   :  { %v5939_v9 = vpack.c.bf16 %v4462_v8, %v4461_v6  ;;  %5936 = vmatprep.subr.bf16.mxu0 %v5935_v5 }
 0x463   :  { %1712 = vmatmul.mubr.f32.gmra.mrb[66].mxu0 %v1319_v10  ;;  %v4463_v10 = vld [vmem:[%s8642_s8 + $0x120] sm:$0xff] }
 0x464   :  { %1716 = vmatprep.mubr.f32.mxu0 %v1324_v24  ;;  %v4464_v24 = vld [vmem:[%s8642_s8 + $0x128] sm:$0xff] }
 0x467   :  { %1717 = vmatmul.mubr.f32.gmra.mrb[68].mxu0 %v1323_v11 }
 0x468   :  { %1721 = vmatprep.mubr.f32.mxu0 %v1328_v12 }
 0x46b   :  { %1722 = vmatmul.mubr.f32.gmra.mrb[70].mxu0 %v1327_v13  ;;  %v5943_v13 = vpack.c.bf16 %v4464_v24, %v4463_v10 }
 0x46c   :  { %1726 = vmatprep.mubr.f32.mxu0 %v1332_v14  ;;  %v1429_v14 = vpop.permute.xlu0 %1428 }
 0x46f   :  { %1727 = vmatmul.mubr.f32.gmra.mrb[72].mxu0 %v1331_v15  ;;  %v4465_v15 = vld [vmem:[%s8642_s8 + $0x130] sm:$0xff] }
 0x470   :  { %1731 = vmatprep.mubr.f32.mxu0 %v1336_v16  ;;  %v4466_v16 = vld [vmem:[%s8642_s8 + $0x138] sm:$0xff] }
 0x473   :  { %1732 = vmatmul.mubr.f32.gmra.mrb[74].mxu0 %v1335_v17 }
 0x474   :  { %1736 = vmatprep.mubr.f32.mxu0 %v1340_v18  ;;  %v1434_v18 = vpop.permute.xlu1 %1433 }
 0x477   :  { %1737 = vmatmul.mubr.f32.gmra.mrb[76].mxu0 %v1339_v19 }
 0x478   :  { %1741 = vmatprep.mubr.f32.mxu0 %v1344_v20 }
 0x47b   :  { %1742 = vmatmul.mubr.f32.gmra.mrb[78].mxu0 %v1343_v21 }
 0x47c   :  { %1746 = vmatprep.mubr.f32.mxu0 %v1348_v22  ;;  %v5947_v22 = vpack.c.bf16 %v4466_v16, %v4465_v15 }
 0x47f   :  { %1747 = vmatmul.mubr.f32.gmra.mrb[80].mxu0 %v1347_v23  ;;  %v4467_v23 = vld [vmem:[%s8642_s8 + $0x140] sm:$0xff] }
 0x480   :  { %4368 = vmatprep.mubr.msk.f32.mxu0 %vm1526_vm6, %v1274_v25  ;;  %v4468_v25 = vld [vmem:[%s8642_s8 + $0x148] sm:$0xff] }
 0x483   :  { %1817 = vmatmul.mubr.f32.vlgmr.msra.gmra.mrb[42].mxu0 %v1273_v26 }
 0x484   :  { %4369 = vmatprep.mubr.msk.f32.mxu0 %vm1526_vm6, %v1278_v27  ;;  %5938 = vmatpush3.bf16.msra.mxu0 %v5935_v5 }
 0x485   :  { %5940 = vmatprep.subr.bf16.mxu0 %v5939_v9 }
 0x487   :  { %1822 = vmatmul.mubr.f32.gmra.mrb[44].mxu0 %v1277_v28 }
 0x488   :  { %4370 = vmatprep.mubr.msk.f32.mxu0 %vm1526_vm6, %v1282_v29  ;;  %5942 = vmatpush3.bf16.msra.mxu0 %v5939_v9 }
 0x489   :  { %5944 = vmatprep.subr.bf16.mxu0 %v5943_v13 }
 0x48b   :  { %1827 = vmatmul.mubr.f32.gmra.mrb[46].mxu0 %v1281_v30 }
 0x48c   :  { %4371 = vmatprep.mubr.msk.f32.mxu0 %vm1526_vm6, %v1286_v31  ;;  %5946 = vmatpush3.bf16.msra.mxu0 %v5943_v13  ;;  %v5951_v31 = vpack.c.bf16 %v4468_v25, %v4467_v23 }
 0x48d   :  { %5948 = vmatprep.subr.bf16.mxu0 %v5947_v22 }
 0x48f   :  { %1832 = vmatmul.mubr.f32.gmra.mrb[48].mxu0 %v1285_v32  ;;  %v1439_v32 = vpop.permute.xlu0 %1438 }
 0x490   :  { %4372 = vmatprep.mubr.msk.f32.mxu0 %vm1526_vm6, %v1290_v33  ;;  %v4469_v33 = vld [vmem:[%s8642_s8 + $0x150] sm:$0xff]  ;;  %5950 = vmatpush3.bf16.msra.mxu0 %v5947_v22 }
 0x491   :  { %5952 = vmatprep.subr.bf16.mxu0 %v5951_v31 }
 0x493   :  { %1837 = vmatmul.mubr.f32.gmra.mrb[50].mxu0 %v1289_v34  ;;  %v4470_v34 = vld [vmem:[%s8642_s8 + $0x158] sm:$0xff] }
 0x494   :  { %4373 = vmatprep.mubr.msk.f32.mxu0 %vm1526_vm6, %v1294_v35  ;;  %5954 = vmatpush3.bf16.msra.mxu0 %v5951_v31 }
 0x497   :  { %1842 = vmatmul.mubr.f32.gmra.mrb[52].mxu0 %v1293_v36  ;;  %v1444_v36 = vpop.permute.xlu1 %1443 }
 0x498   :  { %4374 = vmatprep.mubr.msk.f32.mxu0 %vm1526_vm6, %v1298_v37 }
 0x49b   :  { %1847 = vmatmul.mubr.f32.gmra.mrb[54].mxu0 %v1297_v38 }
 0x49c   :  { %4375 = vmatprep.mubr.msk.f32.mxu0 %vm1526_vm6, %v1302_v39 }
 0x49f   :  { %1852 = vmatmul.mubr.f32.gmra.mrb[56].mxu0 %v1301_v40  ;;  %v5955_v40 = vpack.c.bf16 %v4470_v34, %v4469_v33 }
 0x4a0   :  { %4376 = vmatprep.mubr.msk.f32.mxu0 %vm1526_vm6, %v1306_v41  ;;  %v4471_v41 = vld [vmem:[%s8642_s8 + $0x160] sm:$0xff] }
 0x4a1   :  { %5956 = vmatprep.subr.bf16.mxu0 %v5955_v40 }
 0x4a2   :  { %5958 = vmatpush3.bf16.msra.mxu0 %v5955_v40 }
 0x4a3   :  { %1857 = vmatmul.mubr.f32.gmra.mrb[58].mxu0 %v1305_v42  ;;  %v4472_v42 = vld [vmem:[%s8642_s8 + $0x168] sm:$0xff] }
 0x4a4   :  { %4377 = vmatprep.mubr.msk.f32.mxu0 %vm1526_vm6, %v1310_v43 }
 0x4a7   :  { %1862 = vmatmul.mubr.f32.gmra.mrb[60].mxu0 %v1309_v44 }
 0x4a8   :  { %4378 = vmatprep.mubr.msk.f32.mxu0 %vm1526_vm6, %v1314_v45 }
 0x4ab   :  { %1867 = vmatmul.mubr.f32.gmra.mrb[62].mxu0 %v1313_v46 }
 0x4ac   :  { %4379 = vmatprep.mubr.msk.f32.mxu0 %vm1526_vm6, %v1318_v47 }
 0x4af   :  { %1872 = vmatmul.mubr.f32.gmra.mrb[64].mxu0 %v1317_v48  ;;  %v5959_v48 = vpack.c.bf16 %v4472_v42, %v4471_v41 }
 0x4b0   :  { %4380 = vmatprep.mubr.msk.f32.mxu0 %vm1526_vm6, %v1322_v49  ;;  %v1449_v49 = vpop.permute.xlu0 %1448 }
 0x4b1   :  { %5960 = vmatprep.subr.bf16.mxu0 %v5959_v48 }
 0x4b2   :  { %5962 = vmatpush3.bf16.msra.mxu0 %v5959_v48 }
 0x4b3   :  { %1877 = vmatmul.mubr.f32.gmra.mrb[66].mxu0 %v1321_v50 }
 0x4b4   :  { %4381 = vmatprep.mubr.msk.f32.mxu0 %vm1526_vm6, %v1326_v51  ;;  %v1454_v51 = vpop.permute.xlu1 %1453 }
 0x4b7   :  { %1882 = vmatmul.mubr.f32.gmra.mrb[68].mxu0 %v1325_v52 }
 0x4b8   :  { %4382 = vmatprep.mubr.msk.f32.mxu0 %vm1526_vm6, %v1330_v53 }
 0x4bb   :  { %1887 = vmatmul.mubr.f32.gmra.mrb[70].mxu0 %v1329_v55 }
 0x4bc   :  { %4383 = vmatprep.mubr.msk.f32.mxu0 %vm1526_vm6, %v1334_v56 }
 0x4bf   :  { %1892 = vmatmul.mubr.f32.gmra.mrb[72].mxu0 %v1333_v57 }
 0x4c0   :  { %4384 = vmatprep.mubr.msk.f32.mxu0 %vm1526_vm6, %v1338_v58 }
 0x4c3   :  { %1897 = vmatmul.mubr.f32.gmra.mrb[74].mxu0 %v1337_v59 }
 0x4c4   :  { %4385 = vmatprep.mubr.msk.f32.mxu0 %vm1526_vm6, %v1342_v60 }
 0x4c7   :  { %1902 = vmatmul.mubr.f32.gmra.mrb[76].mxu0 %v1341_v61  ;;  %v1459_v61 = vpop.permute.xlu0 %1458 }
 0x4c8   :  { %4386 = vmatprep.mubr.msk.f32.mxu0 %vm1526_vm6, %v1346_v62 }
 0x4cb   :  { %1907 = vmatmul.mubr.f32.gmra.mrb[78].mxu0 %v1345_v63  ;;  %v1464_v63 = vpop.permute.xlu1 %1463  ;;  %v1469_v9 = vpop.permute.xlu0 %1468 }
 0x4cc   :  { %4387 = vmatprep.mubr.msk.f32.mxu0 %vm1526_vm6, %v1350_v0 }
 0x4cf   :  { %1912 = vmatmul.mubr.f32.gmra.mrb[80].mxu0 %v1349_v1  ;;  %v1474_v24 = vpop.permute.xlu1 %1473 }
 0x556   :  { %v1818_v11 = vpop.f32.mrb[42].mxu0 }
 0x557   :  { %v1820_v12 = vpop.f32.mrb[43].mxu0  ;;  %v6127_v17 = vadd.f32 %v1818_v11, %v1429_v14 }
 0x559   :  { %v1917_v26 = vmax.f32 %v6127_v17, 0.0 }
 0x55a   :  { %v1823_v19 = vpop.f32.mrb[44].mxu0 }
 0x55b   :  { %v6128_v20 = vadd.f32 %v1823_v19, %v1434_v18  ;;  %v1825_v21 = vpop.f32.mrb[45].mxu0  ;;  %v1479_v19 = vpop.permute.xlu0 %1478 }
 0x55c   :  { %v1484_v21 = vpop.permute.xlu1 %1483 }
 0x55d   :  { %v1918_v27 = vmax.f32 %v6128_v20, 0.0 }
 0x55e   :  { %v1828_v28 = vpop.f32.mrb[46].mxu0 }
 0x55f   :  { %v5812_v29 = vpack.c.bf16 %v1918_v27, %v1917_v26  ;;  %v1830_v30 = vpop.f32.mrb[47].mxu0  ;;  %v6129_v35 = vadd.f32 %v1828_v28, %v1439_v32  ;;  %v1489_v31 = vpop.permute.xlu0 %1488 }
 0x560   :  { %v1494_v33 = vpop.permute.xlu1 %1493 }
 0x561   :  { %5813 = vmatpush1.bf16.msra.mxu1 %v5812_v29  ;;  %v1919_v43 = vmax.f32 %v6129_v35, 0.0 }
 0x562   :  { %v1833_v37 = vpop.f32.mrb[48].mxu0  ;;  %5814 = vmatprep.subr.bf16.mxu1 %v6506_v54 }
 0x563   :  { %v6130_v38 = vadd.f32 %v1833_v37, %v1444_v36  ;;  %v1835_v39 = vpop.f32.mrb[49].mxu0  ;;  %v1499_v42 = vpop.permute.xlu0 %1498 }
 0x565   :  { %v1920_v44 = vmax.f32 %v6130_v38, 0.0 }
 0x566   :  { %v1838_v45 = vpop.f32.mrb[50].mxu0 }
 0x567   :  { %v5815_v46 = vpack.c.bf16 %v1920_v44, %v1919_v43  ;;  %v1840_v47 = vpop.f32.mrb[51].mxu0  ;;  %v6131_v50 = vadd.f32 %v1838_v45, %v1449_v49  ;;  %v1504_v44 = vpop.permute.xlu1 %1503 }
 0x569   :  { %5816 = vmatpush1.bf16.msra.mxu1 %v5815_v46  ;;  %v1921_v56 = vmax.f32 %v6131_v50, 0.0 }
 0x56a   :  { %v1843_v52 = vpop.f32.mrb[52].mxu0  ;;  %5817 = vmatprep.subr.bf16.mxu1 %v6506_v54 }
 0x56b   :  { %v6132_v53 = vadd.f32 %v1843_v52, %v1454_v51  ;;  %v1845_v55 = vpop.f32.mrb[53].mxu0 }
 0x56d   :  { %v1922_v57 = vmax.f32 %v6132_v53, 0.0  ;;  %v1509_v53 = vpop.permute.xlu0 %1508 }
 0x56e   :  { %v1848_v58 = vpop.f32.mrb[54].mxu0 }
 0x56f   :  { %v5818_v59 = vpack.c.bf16 %v1922_v57, %v1921_v56  ;;  %v1850_v60 = vpop.f32.mrb[55].mxu0  ;;  %v6133_v62 = vadd.f32 %v1848_v58, %v1459_v61  ;;  %v1514_v56 = vpop.permute.xlu1 %1513 }
 0x571   :  { %5819 = vmatpush1.bf16.msra.mxu1 %v5818_v59  ;;  %v1923_v3 = vmax.f32 %v6133_v62, 0.0 }
 0x572   :  { %v1853_v0 = vpop.f32.mrb[56].mxu0  ;;  %5820 = vmatprep.subr.bf16.mxu1 %v6506_v54 }
 0x573   :  { %v6134_v1 = vadd.f32 %v1853_v0, %v1464_v63  ;;  %v1855_v2 = vpop.f32.mrb[57].mxu0 }
 0x575   :  { %v1924_v4 = vmax.f32 %v6134_v1, 0.0  ;;  %v1519_v1 = vpop.permute.xlu0 %1518 }
 0x576   :  { %v1858_v5 = vpop.f32.mrb[58].mxu0 }
 0x577   :  { %v5821_v6 = vpack.c.bf16 %v1924_v4, %v1923_v3  ;;  %v1860_v8 = vpop.f32.mrb[59].mxu0  ;;  %v6135_v10 = vadd.f32 %v1858_v5, %v1469_v9  ;;  %v1524_v3 = vpop.permute.xlu1 %1523  ;;  %v2158_v9 = vld [vmem:[%s8642_s8 + $0x8] sm:$0xff] }
 0x578   :  { %v2157_v8 = vld [vmem:[%s8642_s8] sm:$0xff] }
 0x579   :  { %5822 = vmatpush1.bf16.msra.mxu1 %v5821_v6  ;;  %v1925_v14 = vmax.f32 %v6135_v10, 0.0 }
 0x57a   :  { %v1863_v11 = vpop.f32.mrb[60].mxu0  ;;  %5823 = vmatprep.subr.bf16.mxu1 %v6506_v54 }
 0x57b   :  { %v6136_v12 = vadd.f32 %v1863_v11, %v1474_v24  ;;  %v1865_v13 = vpop.f32.mrb[61].mxu0  ;;  %v5841_v11 = vpack.c.bf16 %v2158_v9, %v2157_v8  ;;  %v4511_v9 = vld [vmem:[%s8642_s8 + $0x1b0] sm:$0xff] }
 0x57c   :  { %v2159_v13 = vld [vmem:[%s8642_s8 + $0x10] sm:$0xff] }
 0x57d   :  { %v1926_v15 = vmax.f32 %v6136_v12, 0.0 }
 0x57e   :  { %v1868_v16 = vpop.f32.mrb[62].mxu0 }
 0x57f   :  { %v5824_v17 = vpack.c.bf16 %v1926_v15, %v1925_v14  ;;  %v1870_v18 = vpop.f32.mrb[63].mxu0  ;;  %v6137_v20 = vadd.f32 %v1868_v16, %v1479_v19  ;;  %v2160_v14 = vld [vmem:[%s8642_s8 + $0x18] sm:$0xff]  ;;  %v1957_v15 = vld [vmem:[%s8641_s7] sm:$0xff]  ;;  %v2162_v19 = vld [vmem:[%s8642_s8 + $0x28] sm:$0xff] }
 0x580   :  { %v1960_v16 = vld [vmem:[%s8641_s7 + $0x18] sm:$0xff]  ;;  %v2161_v18 = vld [vmem:[%s8642_s8 + $0x20] sm:$0xff] }
 0x581   :  { %5825 = vmatpush1.bf16.msra.mxu1 %v5824_v17  ;;  %v1927_v26 = vmax.f32 %v6137_v20, 0.0  ;;  %v5845_v17 = vpack.c.bf16 %v2160_v14, %v2159_v13  ;;  %v1959_v20 = vld [vmem:[%s8641_s7 + $0x10] sm:$0xff]  ;;  %v4513_v13 = vld [vmem:[%s8642_s8 + $0x1c0] sm:$0xff]  ;;  %v4514_v14 = vld [vmem:[%s8642_s8 + $0x1c8] sm:$0xff] }
 0x582   :  { %v1873_v22 = vpop.f32.mrb[64].mxu0  ;;  %5826 = vmatprep.subr.bf16.mxu1 %v6506_v54 }
 0x583   :  { %v6138_v23 = vadd.f32 %v1873_v22, %v1484_v21  ;;  %v1875_v25 = vpop.f32.mrb[65].mxu0  ;;  %v1962_v21 = vld [vmem:[%s8641_s7 + $0x28] sm:$0xff]  ;;  %v5849_v22 = vpack.c.bf16 %v2162_v19, %v2161_v18  ;;  %v4515_v18 = vld [vmem:[%s8642_s8 + $0x1d0] sm:$0xff]  ;;  %v4516_v19 = vld [vmem:[%s8642_s8 + $0x1d8] sm:$0xff] }
 0x584   :  { %v2164_v25 = vld [vmem:[%s8642_s8 + $0x38] sm:$0xff] }
 0x585   :  { %v1928_v27 = vmax.f32 %v6138_v23, 0.0  ;;  %v2163_v23 = vld [vmem:[%s8642_s8 + $0x30] sm:$0xff] }
 0x586   :  { %v1878_v28 = vpop.f32.mrb[66].mxu0 }
 0x587   :  { %v5827_v29 = vpack.c.bf16 %v1928_v27, %v1927_v26  ;;  %v1880_v30 = vpop.f32.mrb[67].mxu0  ;;  %v6139_v32 = vadd.f32 %v1878_v28, %v1489_v31  ;;  %v1961_v26 = vld [vmem:[%s8641_s7 + $0x20] sm:$0xff]  ;;  %v1964_v27 = vld [vmem:[%s8641_s7 + $0x38] sm:$0xff]  ;;  %v5853_v28 = vpack.c.bf16 %v2164_v25, %v2163_v23  ;;  %v1963_v31 = vld [vmem:[%s8641_s7 + $0x30] sm:$0xff] }
 0x588   :  { %v2166_v30 = vld [vmem:[%s8642_s8 + $0x48] sm:$0xff]  ;;  %v4517_v23 = vld [vmem:[%s8642_s8 + $0x1e0] sm:$0xff] }
 0x589   :  { %5828 = vmatpush1.bf16.msra.mxu1 %v5827_v29  ;;  %v1929_v37 = vmax.f32 %v6139_v32, 0.0  ;;  %v2165_v29 = vld [vmem:[%s8642_s8 + $0x40] sm:$0xff]  ;;  %v1966_v32 = vld [vmem:[%s8641_s7 + $0x48] sm:$0xff] }
 0x58a   :  { %v1883_v34 = vpop.f32.mrb[68].mxu0  ;;  %5829 = vmatprep.subr.bf16.mxu1 %v6506_v54  ;;  %v4518_v25 = vld [vmem:[%s8642_s8 + $0x1e8] sm:$0xff] }
 0x58b   :  { %v6140_v35 = vadd.f32 %v1883_v34, %v1494_v33  ;;  %v1885_v36 = vpop.f32.mrb[69].mxu0  ;;  %v5857_v33 = vpack.c.bf16 %v2166_v30, %v2165_v29  ;;  %v2167_v34 = vld [vmem:[%s8642_s8 + $0x50] sm:$0xff]  ;;  %v4520_v30 = vld [vmem:[%s8642_s8 + $0x1f8] sm:$0xff] }
 0x58c   :  { %v1965_v36 = vld [vmem:[%s8641_s7 + $0x40] sm:$0xff]  ;;  %v4519_v29 = vld [vmem:[%s8642_s8 + $0x1f0] sm:$0xff] }
 0x58d   :  { %v1930_v38 = vmax.f32 %v6140_v35, 0.0  ;;  %v2168_v35 = vld [vmem:[%s8642_s8 + $0x58] sm:$0xff] }
 0x58e   :  { %v1888_v39 = vpop.f32.mrb[70].mxu0 }
 0x58f   :  { %v5830_v40 = vpack.c.bf16 %v1930_v38, %v1929_v37  ;;  %v1890_v41 = vpop.f32.mrb[71].mxu0  ;;  %v6141_v43 = vadd.f32 %v1888_v39, %v1499_v42  ;;  %v1968_v37 = vld [vmem:[%s8641_s7 + $0x58] sm:$0xff]  ;;  %v5861_v38 = vpack.c.bf16 %v2168_v35, %v2167_v34  ;;  %v2169_v39 = vld [vmem:[%s8642_s8 + $0x60] sm:$0xff]  ;;  %v1970_v42 = vld [vmem:[%s8641_s7 + $0x68] sm:$0xff] }
 0x590   :  { %v1967_v41 = vld [vmem:[%s8641_s7 + $0x50] sm:$0xff]  ;;  %v4551_v34 = vld [vmem:[%s8642_s8 + $0x200] sm:$0xff]  ;;  %v4552_v35 = vld [vmem:[%s8642_s8 + $0x208] sm:$0xff] }
 0x591   :  { %5831 = vmatpush1.bf16.msra.mxu1 %v5830_v40  ;;  %v1931_v48 = vmax.f32 %v6141_v43, 0.0  ;;  %v2170_v40 = vld [vmem:[%s8642_s8 + $0x68] sm:$0xff] }
 0x592   :  { %v1893_v45 = vpop.f32.mrb[72].mxu0  ;;  %5832 = vmatprep.subr.bf16.mxu1 %v6506_v54  ;;  %v5865_v43 = vpack.c.bf16 %v2170_v40, %v2169_v39 }
 0x593   :  { %v6142_v46 = vadd.f32 %v1893_v45, %v1504_v44  ;;  %v1895_v47 = vpop.f32.mrb[73].mxu0  ;;  %v1969_v44 = vld [vmem:[%s8641_s7 + $0x60] sm:$0xff]  ;;  %v1972_v45 = vld [vmem:[%s8641_s7 + $0x78] sm:$0xff] }
 0x594   :  { %v1974_v47 = vld [vmem:[%s8641_s7 + $0x88] sm:$0xff] }
 0x595   :  { %v1932_v49 = vmax.f32 %v6142_v46, 0.0  ;;  %v1971_v46 = vld [vmem:[%s8641_s7 + $0x70] sm:$0xff] }
 0x596   :  { %v1898_v50 = vpop.f32.mrb[74].mxu0 }
 0x597   :  { %v5833_v51 = vpack.c.bf16 %v1932_v49, %v1931_v48  ;;  %v1900_v52 = vpop.f32.mrb[75].mxu0  ;;  %v6143_v55 = vadd.f32 %v1898_v50, %v1509_v53  ;;  %v1973_v48 = vld [vmem:[%s8641_s7 + $0x80] sm:$0xff]  ;;  %v1976_v49 = vld [vmem:[%s8641_s7 + $0x98] sm:$0xff]  ;;  %v1975_v50 = vld [vmem:[%s8641_s7 + $0x90] sm:$0xff] }
 0x598   :  { %v2172_v52 = vld [vmem:[%s8642_s8 + $0x78] sm:$0xff]  ;;  %v4473_v53 = vld [vmem:[%s8642_s8 + $0x170] sm:$0xff] }
 0x599   :  { %5834 = vmatpush1.bf16.msra.mxu1 %v5833_v51  ;;  %v1933_v60 = vmax.f32 %v6143_v55, 0.0  ;;  %v2171_v51 = vld [vmem:[%s8642_s8 + $0x70] sm:$0xff] }
 0x59a   :  { %v1903_v57 = vpop.f32.mrb[76].mxu0  ;;  %5835 = vmatprep.subr.bf16.mxu1 %v6506_v54  ;;  %v5869_v55 = vpack.c.bf16 %v2172_v52, %v2171_v51  ;;  %v4559_v51 = vld [vmem:[%s8642_s8 + $0x240] sm:$0xff]  ;;  %v4560_v52 = vld [vmem:[%s8642_s8 + $0x248] sm:$0xff] }
 0x59b   :  { %v6144_v58 = vadd.f32 %v1903_v57, %v1514_v56  ;;  %v1905_v59 = vpop.f32.mrb[77].mxu0  ;;  %v4474_v56 = vld [vmem:[%s8642_s8 + $0x178] sm:$0xff] }
 0x59c   :  { %v5963_v57 = vpack.c.bf16 %v4474_v56, %v4473_v53  ;;  %v4506_v59 = vld [vmem:[%s8642_s8 + $0x188] sm:$0xff]  ;;  %v6045_v53 = vpack.c.bf16 %v4560_v52, %v4559_v51  ;;  %v4562_v56 = vld [vmem:[%s8642_s8 + $0x258] sm:$0xff]  ;;  %v4417_v51 = vld [vmem:[%s8642_s8 + $0xa0] sm:$0xff] }
 0x59d   :  { %v1934_v61 = vmax.f32 %v6144_v58, 0.0  ;;  %v4505_v58 = vld [vmem:[%s8642_s8 + $0x180] sm:$0xff]  ;;  %v4418_v52 = vld [vmem:[%s8642_s8 + $0xa8] sm:$0xff] }
 0x59e   :  { %v1908_v62 = vpop.f32.mrb[78].mxu0  ;;  %5964 = vmatprep.subr.bf16.mxu0 %v5963_v57 }
 0x59f   :  { %v5836_v63 = vpack.c.bf16 %v1934_v61, %v1933_v60  ;;  %v1910_v0 = vpop.f32.mrb[79].mxu0  ;;  %v6145_v2 = vadd.f32 %v1908_v62, %v1519_v1  ;;  %5966 = vmatpush3.bf16.msra.mxu0 %v5963_v57  ;;  %v5982_v60 = vpack.c.bf16 %v4506_v59, %v4505_v58  ;;  %v4507_v62 = vld [vmem:[%s8642_s8 + $0x190] sm:$0xff]  ;;  %v4563_v58 = vld [vmem:[%s8642_s8 + $0x260] sm:$0xff]  ;;  %v4564_v59 = vld [vmem:[%s8642_s8 + $0x268] sm:$0xff] }
 0x5a1   :  { %5837 = vmatpush1.bf16.msra.mxu1 %v5836_v63  ;;  %v1935_v10 = vmax.f32 %v6145_v2, 0.0  ;;  %5983 = vmatprep.subr.bf16.mxu0 %v5982_v60  ;;  %v4508_v63 = vld [vmem:[%s8642_s8 + $0x198] sm:$0xff] }
 0x5a2   :  { %v1913_v4 = vpop.f32.mrb[80].mxu0  ;;  %5838 = vmatprep.subr.bf16.mxu1 %v6506_v54  ;;  %v5986_v1 = vpack.c.bf16 %v4508_v63, %v4507_v62  ;;  %v4565_v62 = vld [vmem:[%s8642_s8 + $0x270] sm:$0xff]  ;;  %v4566_v63 = vld [vmem:[%s8642_s8 + $0x278] sm:$0xff] }
 0x5a3   :  { %v6146_v5 = vadd.f32 %v1913_v4, %v1524_v3  ;;  %v1915_v6 = vpop.f32.mrb[81].mxu0  ;;  %v4509_v3 = vld [vmem:[%s8642_s8 + $0x1a0] sm:$0xff]  ;;  %v4510_v4 = vld [vmem:[%s8642_s8 + $0x1a8] sm:$0xff] }
 0x5a4   :  { %v5990_v6 = vpack.c.bf16 %v4510_v4, %v4509_v3 }
 0x5a5   :  { %v1936_v24 = vmax.f32 %v6146_v5, 0.0 }
 0x5a7   :  { %v5839_v12 = vpack.c.bf16 %v1936_v24, %v1935_v10  ;;  %v4512_v10 = vld [vmem:[%s8642_s8 + $0x1b8] sm:$0xff] }
 0x5a9   :  { %5840 = vmatpush1.bf16.msra.mxu1 %v5839_v12 }
 0x5aa   :  { %5842 = vmatprep.subr.bf16.mxu1 %v5841_v11 }
 0x5ac   :  { %2092 = vmatmul.mubr.f32.vlgmr.msra.gmra.mrb[44].mxu1 %v1957_v15 }
 0x5ad   :  { %4389 = vmatprep.mubr.msk.f32.mxu1 %vm408_vm0, %v1960_v16  ;;  %5844 = vmatpush3.bf16.msra.mxu1 %v5841_v11  ;;  %v5994_v11 = vpack.c.bf16 %v4512_v10, %v4511_v9  ;;  %v5998_v16 = vpack.c.bf16 %v4514_v14, %v4513_v13 }
 0x5ae   :  { %5846 = vmatprep.subr.bf16.mxu1 %v5845_v17 }
 0x5b0   :  { %2097 = vmatmul.mubr.f32.gmra.mrb[46].mxu1 %v1959_v20 }
 0x5b1   :  { %4390 = vmatprep.mubr.msk.f32.mxu1 %vm408_vm0, %v1962_v21  ;;  %5848 = vmatpush3.bf16.msra.mxu1 %v5845_v17  ;;  %v6002_v21 = vpack.c.bf16 %v4516_v19, %v4515_v18 }
 0x5b2   :  { %5850 = vmatprep.subr.bf16.mxu1 %v5849_v22 }
 0x5b4   :  { %2102 = vmatmul.mubr.f32.gmra.mrb[48].mxu1 %v1961_v26 }
 0x5b5   :  { %4391 = vmatprep.mubr.msk.f32.mxu1 %vm408_vm0, %v1964_v27  ;;  %5852 = vmatpush3.bf16.msra.mxu1 %v5849_v22  ;;  %v6006_v27 = vpack.c.bf16 %v4518_v25, %v4517_v23 }
 0x5b6   :  { %5854 = vmatprep.subr.bf16.mxu1 %v5853_v28 }
 0x5b8   :  { %2107 = vmatmul.mubr.f32.gmra.mrb[50].mxu1 %v1963_v31 }
 0x5b9   :  { %4392 = vmatprep.mubr.msk.f32.mxu1 %vm408_vm0, %v1966_v32  ;;  %5856 = vmatpush3.bf16.msra.mxu1 %v5853_v28  ;;  %v6010_v32 = vpack.c.bf16 %v4520_v30, %v4519_v29 }
 0x5ba   :  { %5858 = vmatprep.subr.bf16.mxu1 %v5857_v33 }
 0x5bc   :  { %2112 = vmatmul.mubr.f32.gmra.mrb[52].mxu1 %v1965_v36 }
 0x5bd   :  { %4393 = vmatprep.mubr.msk.f32.mxu1 %vm408_vm0, %v1968_v37  ;;  %5860 = vmatpush3.bf16.msra.mxu1 %v5857_v33  ;;  %v6029_v37 = vpack.c.bf16 %v4552_v35, %v4551_v34  ;;  %v4414_v34 = vld [vmem:[%s8642_s8 + $0x88] sm:$0xff] }
 0x5be   :  { %5862 = vmatprep.subr.bf16.mxu1 %v5861_v38 }
 0x5c0   :  { %2117 = vmatmul.mubr.f32.gmra.mrb[54].mxu1 %v1967_v41  ;;  %v4553_v41 = vld [vmem:[%s8642_s8 + $0x210] sm:$0xff] }
 0x5c1   :  { %4394 = vmatprep.mubr.msk.f32.mxu1 %vm408_vm0, %v1970_v42  ;;  %5864 = vmatpush3.bf16.msra.mxu1 %v5861_v38  ;;  %v4554_v42 = vld [vmem:[%s8642_s8 + $0x218] sm:$0xff] }
 0x5c2   :  { %5866 = vmatprep.subr.bf16.mxu1 %v5865_v43 }
 0x5c4   :  { %2122 = vmatmul.mubr.f32.gmra.mrb[56].mxu1 %v1969_v44  ;;  %v6033_v44 = vpack.c.bf16 %v4554_v42, %v4553_v41 }
 0x5c5   :  { %4395 = vmatprep.mubr.msk.f32.mxu1 %vm408_vm0, %v1972_v45  ;;  %5868 = vmatpush3.bf16.msra.mxu1 %v5865_v43  ;;  %v4555_v45 = vld [vmem:[%s8642_s8 + $0x220] sm:$0xff] }
 0x5c6   :  { %5870 = vmatprep.subr.bf16.mxu1 %v5869_v55 }
 0x5c8   :  { %2127 = vmatmul.mubr.f32.gmra.mrb[58].mxu1 %v1971_v46  ;;  %v4556_v46 = vld [vmem:[%s8642_s8 + $0x228] sm:$0xff] }
 0x5c9   :  { %4396 = vmatprep.mubr.msk.f32.mxu1 %vm408_vm0, %v1974_v47  ;;  %5872 = vmatpush3.bf16.msra.mxu1 %v5869_v55  ;;  %v6037_v47 = vpack.c.bf16 %v4556_v46, %v4555_v45  ;;  %v4561_v55 = vld [vmem:[%s8642_s8 + $0x250] sm:$0xff]  ;;  %v4416_v45 = vld [vmem:[%s8642_s8 + $0x98] sm:$0xff] }
 0x5ca   :  { %5873 = vmatprep.subr.bf16.mxu1 %v6506_v54  ;;  %v6049_v57 = vpack.c.bf16 %v4562_v56, %v4561_v55  ;;  %v2289_v55 = vld [vmem:[%s8643_s9 + $0x8] sm:$0xff] }
 0x5cc   :  { %2132 = vmatmul.mubr.f32.gmra.mrb[60].mxu1 %v1973_v48  ;;  %v4557_v48 = vld [vmem:[%s8642_s8 + $0x230] sm:$0xff] }
 0x5cd   :  { %4397 = vmatprep.mubr.msk.f32.mxu1 %vm408_vm0, %v1976_v49  ;;  %v4558_v49 = vld [vmem:[%s8642_s8 + $0x238] sm:$0xff] }
 0x5d0   :  { %2137 = vmatmul.mubr.f32.gmra.mrb[62].mxu1 %v1975_v50  ;;  %v6041_v50 = vpack.c.bf16 %v4558_v49, %v4557_v48 }
 0x67f   :  { %v7737_v61 = vpop.f32.mrb[44].mxu1 }
 0x680   :  { %v2095_v0 = vpop.f32.mrb[45].mxu1  ;;  %5002 = vmatprep.mubr.f32.mxu1 %v7737_v61  ;;  %5226 = vmatprep.mubr.f32.mxu0 %v7737_v61 }
 0x681   :  { %v6057_v0 = vpack.c.bf16 %v4566_v63, %v4565_v62  ;;  %v2290_v63 = vld [vmem:[%s8643_s9 + $0x10] sm:$0xff] }
 0x683   :  { %v7747_v2 = vpop.f32.mrb[46].mxu1 }
 0x684   :  { %v2100_v5 = vpop.f32.mrb[47].mxu1  ;;  %5003 = vmatmul.mubr.f32.vlgmr.msra.gmra.mrb[64].mxu1 %v7747_v2  ;;  %5227 = vmatmul.mubr.f32.vlgmr.msra.gmra.mrb[82].mxu0 %v7747_v2 }
 0x685   :  { %5985 = vmatpush3.bf16.msra.mxu0 %v5982_v60  ;;  %v6053_v60 = vpack.c.bf16 %v4564_v59, %v4563_v58  ;;  %v4419_v59 = vld [vmem:[%s8642_s8 + $0xb0] sm:$0xff] }
 0x686   :  { %5987 = vmatprep.subr.bf16.mxu0 %v5986_v1 }
 0x687   :  { %v7757_v8 = vpop.f32.mrb[48].mxu1 }
 0x688   :  { %v2105_v24 = vpop.f32.mrb[49].mxu1  ;;  %5005 = vmatprep.mubr.f32.mxu1 %v7757_v8  ;;  %5229 = vmatprep.mubr.f32.mxu0 %v7757_v8 }
 0x689   :  { %5989 = vmatpush3.bf16.msra.mxu0 %v5986_v1 }
 0x68a   :  { %5991 = vmatprep.subr.bf16.mxu0 %v5990_v6 }
 0x68b   :  { %v7767_v12 = vpop.f32.mrb[50].mxu1 }
 0x68c   :  { %v2110_v15 = vpop.f32.mrb[51].mxu1  ;;  %5006 = vmatmul.mubr.f32.gmra.mrb[66].mxu1 %v7767_v12  ;;  %5230 = vmatmul.mubr.f32.gmra.mrb[84].mxu0 %v7767_v12 }
 0x68d   :  { %5993 = vmatpush3.bf16.msra.mxu0 %v5990_v6 }
 0x68e   :  { %5995 = vmatprep.subr.bf16.mxu0 %v5994_v11 }
 0x68f   :  { %v7777_v17 = vpop.f32.mrb[52].mxu1 }
 0x690   :  { %v2115_v20 = vpop.f32.mrb[53].mxu1  ;;  %5008 = vmatprep.mubr.f32.mxu1 %v7777_v17  ;;  %5232 = vmatprep.mubr.f32.mxu0 %v7777_v17 }
 0x691   :  { %5997 = vmatpush3.bf16.msra.mxu0 %v5994_v11 }
 0x692   :  { %5999 = vmatprep.subr.bf16.mxu0 %v5998_v16 }
 0x693   :  { %v7787_v22 = vpop.f32.mrb[54].mxu1 }
 0x694   :  { %v2120_v26 = vpop.f32.mrb[55].mxu1  ;;  %5009 = vmatmul.mubr.f32.gmra.mrb[68].mxu1 %v7787_v22  ;;  %5233 = vmatmul.mubr.f32.gmra.mrb[86].mxu0 %v7787_v22 }
 0x695   :  { %6001 = vmatpush3.bf16.msra.mxu0 %v5998_v16 }
 0x696   :  { %6003 = vmatprep.subr.bf16.mxu0 %v6002_v21 }
 0x697   :  { %v7797_v28 = vpop.f32.mrb[56].mxu1 }
 0x698   :  { %v2125_v31 = vpop.f32.mrb[57].mxu1  ;;  %5011 = vmatprep.mubr.f32.mxu1 %v7797_v28  ;;  %5235 = vmatprep.mubr.f32.mxu0 %v7797_v28 }
 0x699   :  { %6005 = vmatpush3.bf16.msra.mxu0 %v6002_v21 }
 0x69a   :  { %6007 = vmatprep.subr.bf16.mxu0 %v6006_v27 }
 0x69b   :  { %v7807_v33 = vpop.f32.mrb[58].mxu1 }
 0x69c   :  { %v2130_v36 = vpop.f32.mrb[59].mxu1  ;;  %5012 = vmatmul.mubr.f32.gmra.mrb[70].mxu1 %v7807_v33  ;;  %5236 = vmatmul.mubr.f32.gmra.mrb[88].mxu0 %v7807_v33 }
 0x69d   :  { %6009 = vmatpush3.bf16.msra.mxu0 %v6006_v27 }
 0x69e   :  { %6011 = vmatprep.subr.bf16.mxu0 %v6010_v32 }
 0x69f   :  { %v7817_v38 = vpop.f32.mrb[60].mxu1 }
 0x6a0   :  { %v2135_v39 = vpop.f32.mrb[61].mxu1  ;;  %5014 = vmatprep.mubr.f32.mxu1 %v7817_v38  ;;  %5238 = vmatprep.mubr.f32.mxu0 %v7817_v38 }
 0x6a1   :  { %6013 = vmatpush3.bf16.msra.mxu0 %v6010_v32  ;;  %v4413_v32 = vld [vmem:[%s8642_s8 + $0x80] sm:$0xff] }
 0x6a2   :  { %6030 = vmatprep.subr.bf16.mxu0 %v6029_v37  ;;  %v5888_v41 = vpack.c.bf16 %v4414_v34, %v4413_v32  ;;  %v2292_v32 = vld [vmem:[%s8643_s9 + $0x20] sm:$0xff] }
 0x6a3   :  { %v7821_v40 = vpop.f32.mrb[62].mxu1 }
 0x6a4   :  { %v2140_v43 = vpop.f32.mrb[63].mxu1  ;;  %5015 = vmatmul.mubr.f32.gmra.mrb[72].mxu1 %v7821_v40  ;;  %5239 = vmatmul.mubr.f32.gmra.mrb[90].mxu0 %v7821_v40 }
 0x6a5   :  { %5338 = vmatprep.mubr.f32.mxu0 %v7737_v61  ;;  %5037 = vmatprep.mubr.msk.f32.mxu1 %vm6508_vm7, %v6507_v7 }
 0x6a8   :  { %5339 = vmatmul.mubr.f32.vlgmr.msra.gmra.mrb[92].mxu0 %v7747_v2 }
 0x6a9   :  { %6032 = vmatpush3.bf16.msra.mxu0 %v6029_v37  ;;  %5341 = vmatprep.mubr.f32.mxu0 %v7757_v8 }
 0x6aa   :  { %6034 = vmatprep.subr.bf16.mxu0 %v6033_v44 }
 0x6ac   :  { %5342 = vmatmul.mubr.f32.gmra.mrb[94].mxu0 %v7767_v12 }
 0x6ad   :  { %6036 = vmatpush3.bf16.msra.mxu0 %v6033_v44  ;;  %5344 = vmatprep.mubr.f32.mxu0 %v7777_v17  ;;  %v4415_v44 = vld [vmem:[%s8642_s8 + $0x90] sm:$0xff] }
 0x6ae   :  { %6038 = vmatprep.subr.bf16.mxu0 %v6037_v47  ;;  %v5892_v49 = vpack.c.bf16 %v4416_v45, %v4415_v44  ;;  %v2293_v44 = vld [vmem:[%s8643_s9 + $0x28] sm:$0xff] }
 0x6b0   :  { %5345 = vmatmul.mubr.f32.gmra.mrb[96].mxu0 %v7787_v22 }
 0x6b1   :  { %6040 = vmatpush3.bf16.msra.mxu0 %v6037_v47  ;;  %5347 = vmatprep.mubr.f32.mxu0 %v7797_v28  ;;  %v2288_v47 = vld [vmem:[%s8643_s9] sm:$0xff] }
 0x6b2   :  { %6042 = vmatprep.subr.bf16.mxu0 %v6041_v50 }
 0x6b4   :  { %5348 = vmatmul.mubr.f32.gmra.mrb[98].mxu0 %v7807_v33 }
 0x6b5   :  { %6044 = vmatpush3.bf16.msra.mxu0 %v6041_v50  ;;  %5350 = vmatprep.mubr.f32.mxu0 %v7817_v38 }
 0x6b6   :  { %6046 = vmatprep.subr.bf16.mxu0 %v6045_v53 }
 0x6b8   :  { %5351 = vmatmul.mubr.f32.gmra.mrb[100].mxu0 %v7821_v40 }
 0x6b9   :  { %6048 = vmatpush3.bf16.msra.mxu0 %v6045_v53  ;;  %5450 = vmatprep.mubr.f32.mxu0 %v7737_v61 }
 0x6ba   :  { %6050 = vmatprep.subr.bf16.mxu0 %v6049_v57 }
 0x6bd   :  { %6052 = vmatpush3.bf16.msra.mxu0 %v6049_v57  ;;  %v5896_v57 = vpack.c.bf16 %v4418_v52, %v4417_v51  ;;  %v2294_v51 = vld [vmem:[%s8643_s9 + $0x30] sm:$0xff] }
 0x6be   :  { %6054 = vmatprep.subr.bf16.mxu0 %v6053_v60 }
 0x6c1   :  { %6056 = vmatpush3.bf16.msra.mxu0 %v6053_v60  ;;  %v4420_v60 = vld [vmem:[%s8642_s8 + $0xb8] sm:$0xff] }
 0x6c2   :  { %6058 = vmatprep.subr.bf16.mxu0 %v6057_v0 }
 0x6c5   :  { %6060 = vmatpush3.bf16.msra.mxu0 %v6057_v0 }
 0x6c6   :  { %6061 = vmatprep.subr.bf16.mxu0 %v6506_v54 }
 0x6c8   :  { %5451 = vmatmul.mubr.f32.vlgmr.msra.gmra.mrb[102].mxu0 %v7747_v2 }
 0x6c9   :  { %5453 = vmatprep.mubr.f32.mxu0 %v7757_v8 }
 0x6cc   :  { %5454 = vmatmul.mubr.f32.gmra.mrb[104].mxu0 %v7767_v12 }
 0x6cd   :  { %5456 = vmatprep.mubr.f32.mxu0 %v7777_v17 }
 0x6d0   :  { %5457 = vmatmul.mubr.f32.gmra.mrb[106].mxu0 %v7787_v22 }
 0x6d1   :  { %5459 = vmatprep.mubr.f32.mxu0 %v7797_v28 }
 0x6d4   :  { %5460 = vmatmul.mubr.f32.gmra.mrb[108].mxu0 %v7807_v33 }
 0x6d5   :  { %5462 = vmatprep.mubr.f32.mxu0 %v7817_v38 }
 0x6d8   :  { %5463 = vmatmul.mubr.f32.gmra.mrb[110].mxu0 %v7821_v40 }
 0x6d9   :  { %5485 = vmatprep.mubr.msk.f32.mxu0 %vm6508_vm7, %v6507_v7 }
 0x757   :  { %v5004_v1 = vpop.f32.mrb[64].mxu1  ;;  %v7892_v3 = vpop.f32.mrb[82].mxu0 }
 0x758   :  { %v2239_v4 = vpop.f32.mrb[65].mxu1  ;;  %v7894_v5 = vpop.f32.mrb[83].mxu0 }
 0x759   :  { %v5874_v6 = vpack.c.bf16 %v5004_v1, %v2239_v4  ;;  %v5968_v9 = vpack.c.bf16 %v7892_v3, %v7894_v5  ;;  %v5900_v1 = vpack.c.bf16 %v4420_v60, %v4419_v59  ;;  %v2296_v59 = vld [vmem:[%s8643_s9 + $0x40] sm:$0xff]  ;;  %v4431_v3 = vld [vmem:[%s8643_s9 + $0x88] sm:$0xff]  ;;  %v4570_v5 = vld [vmem:[%s8643_s9 + $0x1f8] sm:$0xff] }
 0x75b   :  { %5875 = vmatpush3.bf16.msra.mxu1 %v5874_v6  ;;  %v4421_v6 = vld [vmem:[%s8642_s8 + $0xc0] sm:$0xff] }
 0x75c   :  { %5876 = vmatprep.subr.bf16.mxu1 %v6506_v54 }
 0x75f   :  { %v5007_v10 = vpop.f32.mrb[66].mxu1  ;;  %v7899_v24 = vpop.f32.mrb[84].mxu0 }
 0x760   :  { %v2249_v11 = vpop.f32.mrb[67].mxu1  ;;  %v7901_v13 = vpop.f32.mrb[85].mxu0 }
 0x761   :  { %v5877_v14 = vpack.c.bf16 %v5007_v10, %v2249_v11  ;;  %v5971_v15 = vpack.c.bf16 %v7899_v24, %v7901_v13  ;;  %v4422_v10 = vld [vmem:[%s8642_s8 + $0xc8] sm:$0xff]  ;;  %v4571_v24 = vld [vmem:[%s8643_s9 + $0x200] sm:$0xff] }
 0x762   :  { %v4572_v13 = vld [vmem:[%s8643_s9 + $0x208] sm:$0xff] }
 0x763   :  { %5878 = vmatpush3.bf16.msra.mxu1 %v5877_v14  ;;  %v2291_v14 = vld [vmem:[%s8643_s9 + $0x18] sm:$0xff] }
 0x764   :  { %5879 = vmatprep.subr.bf16.mxu1 %v6506_v54 }
 0x767   :  { %v5010_v16 = vpop.f32.mrb[68].mxu1  ;;  %v7906_v18 = vpop.f32.mrb[86].mxu0 }
 0x768   :  { %v2259_v19 = vpop.f32.mrb[69].mxu1  ;;  %v7908_v20 = vpop.f32.mrb[87].mxu0 }
 0x769   :  { %v5880_v21 = vpack.c.bf16 %v5010_v16, %v2259_v19  ;;  %v5974_v23 = vpack.c.bf16 %v7906_v18, %v7908_v20  ;;  %v5904_v19 = vpack.c.bf16 %v4422_v10, %v4421_v6  ;;  %v2297_v6 = vld [vmem:[%s8643_s9 + $0x48] sm:$0xff]  ;;  %v4573_v18 = vld [vmem:[%s8643_s9 + $0x210] sm:$0xff]  ;;  %v4434_v20 = vld [vmem:[%s8643_s9 + $0xa0] sm:$0xff] }
 0x76b   :  { %5881 = vmatpush3.bf16.msra.mxu1 %v5880_v21 }
 0x76c   :  { %5882 = vmatprep.subr.bf16.mxu1 %v6506_v54 }
 0x76f   :  { %v5013_v25 = vpop.f32.mrb[70].mxu1  ;;  %v7913_v26 = vpop.f32.mrb[88].mxu0 }
 0x770   :  { %v2269_v27 = vpop.f32.mrb[71].mxu1  ;;  %v7915_v29 = vpop.f32.mrb[89].mxu0 }
 0x771   :  { %v5883_v30 = vpack.c.bf16 %v5013_v25, %v2269_v27  ;;  %v5977_v31 = vpack.c.bf16 %v7913_v26, %v7915_v29  ;;  %v4423_v25 = vld [vmem:[%s8642_s8 + $0xd0] sm:$0xff]  ;;  %v4424_v27 = vld [vmem:[%s8642_s8 + $0xd8] sm:$0xff]  ;;  %v4435_v26 = vld [vmem:[%s8643_s9 + $0xa8] sm:$0xff] }
 0x772   :  { %v4575_v29 = vld [vmem:[%s8643_s9 + $0x220] sm:$0xff] }
 0x773   :  { %5884 = vmatpush3.bf16.msra.mxu1 %v5883_v30 }
 0x774   :  { %5885 = vmatprep.subr.bf16.mxu1 %v6506_v54 }
 0x777   :  { %v5016_v35 = vpop.f32.mrb[72].mxu1  ;;  %v7926_v36 = vpop.f32.mrb[90].mxu0 }
 0x778   :  { %v2279_v37 = vpop.f32.mrb[73].mxu1  ;;  %v7928_v39 = vpop.f32.mrb[91].mxu0 }
 0x779   :  { %v5886_v42 = vpack.c.bf16 %v5016_v35, %v2279_v37  ;;  %v5980_v43 = vpack.c.bf16 %v7926_v36, %v7928_v39  ;;  %v5908_v35 = vpack.c.bf16 %v4424_v27, %v4423_v25  ;;  %v2298_v25 = vld [vmem:[%s8643_s9 + $0x50] sm:$0xff]  ;;  %v4576_v36 = vld [vmem:[%s8643_s9 + $0x228] sm:$0xff]  ;;  %v4437_v39 = vld [vmem:[%s8643_s9 + $0xb8] sm:$0xff] }
 0x77b   :  { %5887 = vmatpush3.bf16.msra.mxu1 %v5886_v42  ;;  %v7938_v46 = vpop.f32.mrb[92].mxu0  ;;  %v4426_v42 = vld [vmem:[%s8642_s8 + $0xe8] sm:$0xff] }
 0x77c   :  { %v7943_v48 = vpop.f32.mrb[93].mxu0  ;;  %5889 = vmatprep.subr.bf16.mxu1 %v5888_v41 }
 0x77d   :  { %v6015_v50 = vpack.c.bf16 %v7938_v46, %v7943_v48  ;;  %v4477_v46 = vld [vmem:[%s8643_s9 + $0x100] sm:$0xff]  ;;  %v4478_v48 = vld [vmem:[%s8643_s9 + $0x108] sm:$0xff] }
 0x77e   :  { %5038 = vmatmul.mubr.msk.f32.vlgmr.msra.gmra.mrb[74].mxu1 %vm2303_vm8, %v2288_v47  ;;  %v4427_v47 = vld [vmem:[%s8642_s8 + $0xf0] sm:$0xff] }
 0x77f   :  { %v7954_v53 = vpop.f32.mrb[94].mxu0  ;;  %5040 = vmatprep.mubr.msk.f32.mxu1 %vm6508_vm7, %v6507_v7  ;;  %5891 = vmatpush3.bf16.msra.mxu1 %v5888_v41  ;;  %v4425_v41 = vld [vmem:[%s8642_s8 + $0xe0] sm:$0xff] }
 0x780   :  { %v7961_v56 = vpop.f32.mrb[95].mxu0  ;;  %5893 = vmatprep.subr.bf16.mxu1 %v5892_v49  ;;  %v5912_v45 = vpack.c.bf16 %v4426_v42, %v4425_v41  ;;  %v2299_v41 = vld [vmem:[%s8643_s9 + $0x58] sm:$0xff] }
 0x781   :  { %v6018_v58 = vpack.c.bf16 %v7954_v53, %v7961_v56  ;;  %v4480_v53 = vld [vmem:[%s8643_s9 + $0x118] sm:$0xff]  ;;  %v4481_v56 = vld [vmem:[%s8643_s9 + $0x120] sm:$0xff] }
 0x782   :  { %5041 = vmatmul.mubr.msk.f32.gmra.mrb[76].mxu1 %vm2303_vm8, %v2289_v55  ;;  %v2295_v55 = vld [vmem:[%s8643_s9 + $0x38] sm:$0xff] }
 0x783   :  { %v7972_v62 = vpop.f32.mrb[96].mxu0  ;;  %5043 = vmatprep.mubr.msk.f32.mxu1 %vm6508_vm7, %v6507_v7  ;;  %5895 = vmatpush3.bf16.msra.mxu1 %v5892_v49  ;;  %v4428_v49 = vld [vmem:[%s8642_s8 + $0xf8] sm:$0xff] }
 0x784   :  { %v7979_v0 = vpop.f32.mrb[97].mxu0  ;;  %5897 = vmatprep.subr.bf16.mxu1 %v5896_v57  ;;  %v5916_v52 = vpack.c.bf16 %v4428_v49, %v4427_v47  ;;  %v2300_v47 = vld [vmem:[%s8643_s9 + $0x60] sm:$0xff] }
 0x785   :  { %v6021_v4 = vpack.c.bf16 %v7972_v62, %v7979_v0  ;;  %v4483_v62 = vld [vmem:[%s8643_s9 + $0x130] sm:$0xff]  ;;  %v4484_v0 = vld [vmem:[%s8643_s9 + $0x138] sm:$0xff] }
 0x786   :  { %5044 = vmatmul.mubr.msk.f32.gmra.mrb[78].mxu1 %vm2303_vm8, %v2290_v63 }
 0x787   :  { %v7990_v11 = vpop.f32.mrb[98].mxu0  ;;  %5046 = vmatprep.mubr.msk.f32.mxu1 %vm6508_vm7, %v6507_v7  ;;  %5899 = vmatpush3.bf16.msra.mxu1 %v5896_v57 }
 0x788   :  { %v7997_v16 = vpop.f32.mrb[99].mxu0  ;;  %5901 = vmatprep.subr.bf16.mxu1 %v5900_v1 }
 0x789   :  { %v6024_v21 = vpack.c.bf16 %v7990_v11, %v7997_v16  ;;  %v4486_v11 = vld [vmem:[%s8643_s9 + $0x148] sm:$0xff]  ;;  %v4487_v16 = vld [vmem:[%s8643_s9 + $0x150] sm:$0xff] }
 0x78a   :  { %5047 = vmatmul.mubr.msk.f32.gmra.mrb[80].mxu1 %vm2303_vm8, %v2291_v14 }
 0x78b   :  { %v8008_v30 = vpop.f32.mrb[100].mxu0  ;;  %5049 = vmatprep.mubr.msk.f32.mxu1 %vm6508_vm7, %v6507_v7  ;;  %5903 = vmatpush3.bf16.msra.mxu1 %v5900_v1 }
 0x78c   :  { %v8015_v34 = vpop.f32.mrb[101].mxu0  ;;  %5905 = vmatprep.subr.bf16.mxu1 %v5904_v19 }
 0x78d   :  { %v6027_v37 = vpack.c.bf16 %v8008_v30, %v8015_v34  ;;  %v4489_v30 = vld [vmem:[%s8643_s9 + $0x160] sm:$0xff]  ;;  %v4521_v34 = vld [vmem:[%s8643_s9 + $0x168] sm:$0xff] }
 0x78e   :  { %5050 = vmatmul.mubr.msk.f32.gmra.mrb[82].mxu1 %vm2303_vm8, %v2292_v32 }
 0x78f   :  { %5052 = vmatprep.mubr.msk.f32.mxu1 %vm6508_vm7, %v6507_v7  ;;  %5907 = vmatpush3.bf16.msra.mxu1 %v5904_v19 }
 0x790   :  { %5909 = vmatprep.subr.bf16.mxu1 %v5908_v35 }
 0x792   :  { %5053 = vmatmul.mubr.msk.f32.gmra.mrb[84].mxu1 %vm2303_vm8, %v2293_v44 }
 0x793   :  { %5055 = vmatprep.mubr.msk.f32.mxu1 %vm6508_vm7, %v6507_v7  ;;  %5911 = vmatpush3.bf16.msra.mxu1 %v5908_v35 }
 0x794   :  { %5913 = vmatprep.subr.bf16.mxu1 %v5912_v45 }
 0x796   :  { %5056 = vmatmul.mubr.msk.f32.gmra.mrb[86].mxu1 %vm2303_vm8, %v2294_v51 }
 0x797   :  { %5058 = vmatprep.mubr.msk.f32.mxu1 %vm6508_vm7, %v6507_v7  ;;  %5915 = vmatpush3.bf16.msra.mxu1 %v5912_v45 }
 0x798   :  { %5917 = vmatprep.subr.bf16.mxu1 %v5916_v52 }
 0x79a   :  { %5059 = vmatmul.mubr.msk.f32.gmra.mrb[88].mxu1 %vm2303_vm8, %v2295_v55  ;;  %v2302_v55 = vld [vmem:[%s8643_s9 + $0x70] sm:$0xff] }
 0x79b   :  { %v5452_v57 = vpop.f32.mrb[102].mxu0  ;;  %5061 = vmatprep.mubr.msk.f32.mxu1 %vm6508_vm7, %v6507_v7  ;;  %5919 = vmatpush3.bf16.msra.mxu1 %v5916_v52  ;;  %v2301_v52 = vld [vmem:[%s8643_s9 + $0x68] sm:$0xff] }
 0x79c   :  { %v3706_v60 = vpop.f32.mrb[103].mxu0  ;;  %5920 = vmatprep.subr.bf16.mxu1 %v6506_v54 }
 0x79d   :  { %v8056_v63 = vpack.c.bf16 %v5452_v57, %v3706_v60 }
 0x79e   :  { %5062 = vmatmul.mubr.msk.f32.gmra.mrb[90].mxu1 %vm2303_vm8, %v2296_v59 }
 0x79f   :  { %v5455_v1 = vpop.f32.mrb[104].mxu0  ;;  %6063 = vmatpush3.bf16.msra.mxu0 %v8056_v63  ;;  %5064 = vmatprep.mubr.msk.f32.mxu1 %vm6508_vm7, %v6507_v7 }
 0x7a0   :  { %v3716_v10 = vpop.f32.mrb[105].mxu0  ;;  %6064 = vmatprep.subr.bf16.mxu0 %v6506_v54 }
 0x7a1   :  { %v8066_v14 = vpack.c.bf16 %v5455_v1, %v3716_v10  ;;  %v4567_v1 = vld [vmem:[%s8643_s9 + $0x1e0] sm:$0xff] }
 0x7a2   :  { %5065 = vmatmul.mubr.msk.f32.gmra.mrb[92].mxu1 %vm2303_vm8, %v2297_v6 }
 0x7a3   :  { %v5458_v19 = vpop.f32.mrb[106].mxu0  ;;  %6066 = vmatpush3.bf16.msra.mxu0 %v8066_v14  ;;  %5067 = vmatprep.mubr.msk.f32.mxu1 %vm6508_vm7, %v6507_v7 }
 0x7a4   :  { %v3726_v27 = vpop.f32.mrb[107].mxu0  ;;  %6067 = vmatprep.subr.bf16.mxu0 %v6506_v54 }
 0x7a5   :  { %v8076_v32 = vpack.c.bf16 %v5458_v19, %v3726_v27  ;;  %v4429_v19 = vld [vmem:[%s8643_s9 + $0x78] sm:$0xff]  ;;  %v4430_v27 = vld [vmem:[%s8643_s9 + $0x80] sm:$0xff] }
 0x7a6   :  { %5068 = vmatmul.mubr.msk.f32.gmra.mrb[94].mxu1 %vm2303_vm8, %v2298_v25  ;;  %v4568_v25 = vld [vmem:[%s8643_s9 + $0x1e8] sm:$0xff] }
 0x7a7   :  { %v5461_v35 = vpop.f32.mrb[108].mxu0  ;;  %6069 = vmatpush3.bf16.msra.mxu0 %v8076_v32  ;;  %5070 = vmatprep.mubr.msk.f32.mxu1 %vm6508_vm7, %v6507_v7 }
 0x7a8   :  { %v3736_v42 = vpop.f32.mrb[109].mxu0  ;;  %6070 = vmatprep.subr.bf16.mxu0 %v6506_v54 }
 0x7a9   :  { %v8086_v44 = vpack.c.bf16 %v5461_v35, %v3736_v42  ;;  %v4569_v35 = vld [vmem:[%s8643_s9 + $0x1f0] sm:$0xff]  ;;  %v4439_v42 = vld [vmem:[%s8643_s9 + $0xc8] sm:$0xff] }
 0x7aa   :  { %5071 = vmatmul.mubr.msk.f32.gmra.mrb[96].mxu1 %vm2303_vm8, %v2299_v41  ;;  %v4438_v41 = vld [vmem:[%s8643_s9 + $0xc0] sm:$0xff] }
 0x7ab   :  { %v5464_v45 = vpop.f32.mrb[110].mxu0  ;;  %6072 = vmatpush3.bf16.msra.mxu0 %v8086_v44  ;;  %5073 = vmatprep.mubr.msk.f32.mxu1 %vm6508_vm7, %v6507_v7 }
 0x7ac   :  { %v3746_v49 = vpop.f32.mrb[111].mxu0  ;;  %6073 = vmatprep.subr.bf16.mxu0 %v6506_v54 }
 0x7ad   :  { %v8096_v51 = vpack.c.bf16 %v5464_v45, %v3746_v49  ;;  %v4440_v45 = vld [vmem:[%s8643_s9 + $0xd0] sm:$0xff]  ;;  %v4442_v49 = vld [vmem:[%s8643_s9 + $0xe0] sm:$0xff] }
 0x7ae   :  { %5074 = vmatmul.mubr.msk.f32.gmra.mrb[98].mxu1 %vm2303_vm8, %v2300_v47  ;;  %v4441_v47 = vld [vmem:[%s8643_s9 + $0xd8] sm:$0xff] }
 0x7af   :  { %6075 = vmatpush3.bf16.msra.mxu0 %v8096_v51  ;;  %5076 = vmatprep.mubr.msk.f32.mxu1 %vm6508_vm7, %v6507_v7 }
 0x7b0   :  { %6076 = vmatprep.subr.bf16.mxu0 %v6506_v54 }
 0x7b2   :  { %5077 = vmatmul.mubr.msk.f32.gmra.mrb[100].mxu1 %vm2303_vm8, %v2301_v52  ;;  %5486 = vmatmul.mubr.msk.f32.vlgmr.msra.gmra.mrb[112].mxu0 %vm2303_vm8, %v4567_v1  ;;  %v4443_v52 = vld [vmem:[%s8643_s9 + $0xe8] sm:$0xff] }
 0x7b3   :  { %5079 = vmatprep.mubr.msk.f32.mxu1 %vm6508_vm7, %v6507_v7  ;;  %5488 = vmatprep.mubr.msk.f32.mxu0 %vm6508_vm7, %v6507_v7 }
 0x7b6   :  { %5080 = vmatmul.mubr.msk.f32.gmra.mrb[102].mxu1 %vm2303_vm8, %v2302_v55  ;;  %5489 = vmatmul.mubr.msk.f32.gmra.mrb[114].mxu0 %vm2303_vm8, %v4568_v25  ;;  %v4475_v55 = vld [vmem:[%s8643_s9 + $0xf0] sm:$0xff] }
 0x7b7   :  { %5114 = vmatprep.mubr.f32.mxu1 %v7737_v61  ;;  %5491 = vmatprep.mubr.msk.f32.mxu0 %vm6508_vm7, %v6507_v7 }
 0x7ba   :  { %5115 = vmatmul.mubr.f32.vlgmr.msra.gmra.mrb[104].mxu1 %v7747_v2  ;;  %5492 = vmatmul.mubr.msk.f32.gmra.mrb[116].mxu0 %vm2303_vm8, %v4569_v35 }
 0x7bb   :  { %5117 = vmatprep.mubr.f32.mxu1 %v7757_v8  ;;  %5494 = vmatprep.mubr.msk.f32.mxu0 %vm6508_vm7, %v6507_v7 }
 0x7be   :  { %5118 = vmatmul.mubr.f32.gmra.mrb[106].mxu1 %v7767_v12  ;;  %5495 = vmatmul.mubr.msk.f32.gmra.mrb[118].mxu0 %vm2303_vm8, %v4570_v5 }
 0x7bf   :  { %5120 = vmatprep.mubr.f32.mxu1 %v7777_v17  ;;  %5497 = vmatprep.mubr.msk.f32.mxu0 %vm6508_vm7, %v6507_v7 }
 0x7c2   :  { %5121 = vmatmul.mubr.f32.gmra.mrb[108].mxu1 %v7787_v22  ;;  %5498 = vmatmul.mubr.msk.f32.gmra.mrb[120].mxu0 %vm2303_vm8, %v4571_v24 }
 0x7c3   :  { %5123 = vmatprep.mubr.f32.mxu1 %v7797_v28  ;;  %5500 = vmatprep.mubr.msk.f32.mxu0 %vm6508_vm7, %v6507_v7 }
 0x7c6   :  { %5124 = vmatmul.mubr.f32.gmra.mrb[110].mxu1 %v7807_v33  ;;  %5501 = vmatmul.mubr.msk.f32.gmra.mrb[122].mxu0 %vm2303_vm8, %v4572_v13 }
 0x7c7   :  { %5126 = vmatprep.mubr.f32.mxu1 %v7817_v38  ;;  %5503 = vmatprep.mubr.msk.f32.mxu0 %vm6508_vm7, %v6507_v7 }
 0x7ca   :  { %5127 = vmatmul.mubr.f32.gmra.mrb[112].mxu1 %v7821_v40  ;;  %5504 = vmatmul.mubr.msk.f32.gmra.mrb[124].mxu0 %vm2303_vm8, %v4573_v18 }
 0x7cb   :  { %5149 = vmatprep.mubr.msk.f32.mxu1 %vm6508_vm7, %v6507_v7  ;;  %5506 = vmatprep.mubr.msk.f32.mxu0 %vm6508_vm7, %v6507_v7 }
 0x885   :  { %v3882_v1 = vpop.f32.mrb[112].mxu0 }
 0x88d   :  { %v5116_v61 = vpop.f32.mrb[104].mxu1 }
 0x88e   :  { %v2662_v2 = vpop.f32.mrb[105].mxu1 }
 0x88f   :  { %v5921_v8 = vpack.c.bf16 %v5116_v61, %v2662_v2  ;;  %v4476_v61 = vld [vmem:[%s8643_s9 + $0xf8] sm:$0xff] }
 0x890   :  { %v4527_v2 = vld [vmem:[%s8643_s9 + $0x198] sm:$0xff] }
 0x891   :  { %v5119_v57 = vpop.f32.mrb[106].mxu1  ;;  %5922 = vmatpush3.bf16.msra.mxu1 %v5921_v8  ;;  %v4529_v8 = vld [vmem:[%s8643_s9 + $0x1a8] sm:$0xff] }
 0x892   :  { %v2672_v12 = vpop.f32.mrb[107].mxu1  ;;  %5923 = vmatprep.subr.bf16.mxu1 %v6506_v54 }
 0x893   :  { %v5924_v17 = vpack.c.bf16 %v5119_v57, %v2672_v12  ;;  %v4530_v57 = vld [vmem:[%s8643_s9 + $0x1b0] sm:$0xff]  ;;  %v4531_v12 = vld [vmem:[%s8643_s9 + $0x1b8] sm:$0xff] }
 0x895   :  { %v5122_v22 = vpop.f32.mrb[108].mxu1  ;;  %5925 = vmatpush3.bf16.msra.mxu1 %v5924_v17  ;;  %v4532_v17 = vld [vmem:[%s8643_s9 + $0x1c0] sm:$0xff] }
 0x896   :  { %v2682_v28 = vpop.f32.mrb[109].mxu1  ;;  %5926 = vmatprep.subr.bf16.mxu1 %v6506_v54 }
 0x897   :  { %v5927_v33 = vpack.c.bf16 %v5122_v22, %v2682_v28  ;;  %v4533_v22 = vld [vmem:[%s8643_s9 + $0x1c8] sm:$0xff]  ;;  %v4534_v28 = vld [vmem:[%s8643_s9 + $0x1d0] sm:$0xff] }
 0x899   :  { %v5125_v38 = vpop.f32.mrb[110].mxu1  ;;  %5928 = vmatpush3.bf16.msra.mxu1 %v5927_v33  ;;  %v4535_v33 = vld [vmem:[%s8643_s9 + $0x1d8] sm:$0xff] }
 0x89a   :  { %v2692_v40 = vpop.f32.mrb[111].mxu1  ;;  %5929 = vmatprep.subr.bf16.mxu1 %v6506_v54 }
 0x89b   :  { %v5930_v59 = vpack.c.bf16 %v5125_v38, %v2692_v40  ;;  %v4578_v38 = vld [vmem:[%s8643_s9 + $0x238] sm:$0xff]  ;;  %v4579_v40 = vld [vmem:[%s8643_s9 + $0x240] sm:$0xff] }
 0x89d   :  { %v5128_v60 = vpop.f32.mrb[112].mxu1  ;;  %5931 = vmatpush3.bf16.msra.mxu1 %v5930_v59  ;;  %v4580_v59 = vld [vmem:[%s8643_s9 + $0x248] sm:$0xff] }
 0x89e   :  { %v2702_v6 = vpop.f32.mrb[113].mxu1  ;;  %5932 = vmatprep.subr.bf16.mxu1 %v6506_v54 }
 0x89f   :  { %v5933_v10 = vpack.c.bf16 %v5128_v60, %v2702_v6  ;;  %v4581_v60 = vld [vmem:[%s8643_s9 + $0x250] sm:$0xff]  ;;  %v5487_v6 = vpop.f32.mrb[113].mxu0 }
 0x8a1   :  { %5934 = vmatpush3.bf16.msra.mxu1 %v5933_v10  ;;  %v3887_v10 = vpop.f32.mrb[114].mxu0 }
 0x8a2   :  { %5967 = vmatprep.subr.bf16.mxu1 %v6506_v54 }
 0x8a4   :  { %5150 = vmatmul.mubr.msk.f32.vlgmr.msra.gmra.mrb[74].mxu1 %vm2303_vm8, %v4429_v19  ;;  %v5490_v19 = vpop.f32.mrb[115].mxu0 }
 0x8a5   :  { %5969 = vmatpush3.bf16.msra.mxu1 %v5968_v9  ;;  %5152 = vmatprep.mubr.msk.f32.mxu1 %vm6508_vm7, %v6507_v7  ;;  %v4432_v9 = vld [vmem:[%s8643_s9 + $0x90] sm:$0xff]  ;;  %v3892_v25 = vpop.f32.mrb[116].mxu0 }
 0x8a6   :  { %5970 = vmatprep.subr.bf16.mxu1 %v6506_v54 }
 0x8a8   :  { %5153 = vmatmul.mubr.msk.f32.gmra.mrb[76].mxu1 %vm2303_vm8, %v4430_v27  ;;  %v5493_v27 = vpop.f32.mrb[117].mxu0 }
 0x8a9   :  { %5972 = vmatpush3.bf16.msra.mxu1 %v5971_v15  ;;  %5155 = vmatprep.mubr.msk.f32.mxu1 %vm6508_vm7, %v6507_v7  ;;  %v4433_v15 = vld [vmem:[%s8643_s9 + $0x98] sm:$0xff]  ;;  %v3897_v35 = vpop.f32.mrb[118].mxu0 }
 0x8aa   :  { %5973 = vmatprep.subr.bf16.mxu1 %v6506_v54 }
 0x8ac   :  { %5156 = vmatmul.mubr.msk.f32.gmra.mrb[78].mxu1 %vm2303_vm8, %v4431_v3  ;;  %v5496_v3 = vpop.f32.mrb[119].mxu0 }
 0x8ad   :  { %5975 = vmatpush3.bf16.msra.mxu1 %v5974_v23  ;;  %5158 = vmatprep.mubr.msk.f32.mxu1 %vm6508_vm7, %v6507_v7  ;;  %v4574_v23 = vld [vmem:[%s8643_s9 + $0x218] sm:$0xff]  ;;  %v3902_v5 = vpop.f32.mrb[120].mxu0 }
 0x8ae   :  { %5976 = vmatprep.subr.bf16.mxu1 %v6506_v54  ;;  %5507 = vmatmul.mubr.msk.f32.gmra.mrb[126].mxu0 %vm2303_vm8, %v4574_v23 }
 0x8af   :  { %5509 = vmatprep.mubr.msk.f32.mxu0 %vm6508_vm7, %v6507_v7 }
 0x8b0   :  { %5159 = vmatmul.mubr.msk.f32.gmra.mrb[80].mxu1 %vm2303_vm8, %v4432_v9  ;;  %v5499_v9 = vpop.f32.mrb[121].mxu0 }
 0x8b1   :  { %5978 = vmatpush3.bf16.msra.mxu1 %v5977_v31  ;;  %5161 = vmatprep.mubr.msk.f32.mxu1 %vm6508_vm7, %v6507_v7  ;;  %v4436_v31 = vld [vmem:[%s8643_s9 + $0xb0] sm:$0xff]  ;;  %v3907_v24 = vpop.f32.mrb[122].mxu0 }
 0x8b2   :  { %5979 = vmatprep.subr.bf16.mxu1 %v6506_v54  ;;  %5510 = vmatmul.mubr.msk.f32.gmra.mrb[128].mxu0 %vm2303_vm8, %v4575_v29  ;;  %v5502_v13 = vpop.f32.mrb[123].mxu0 }
 0x8b3   :  { %5512 = vmatprep.mubr.msk.f32.mxu0 %vm6508_vm7, %v6507_v7 }
 0x8b4   :  { %5162 = vmatmul.mubr.msk.f32.gmra.mrb[82].mxu1 %vm2303_vm8, %v4433_v15  ;;  %v3912_v15 = vpop.f32.mrb[124].mxu0 }
 0x8b5   :  { %5981 = vmatpush3.bf16.msra.mxu1 %v5980_v43  ;;  %5164 = vmatprep.mubr.msk.f32.mxu1 %vm6508_vm7, %v6507_v7  ;;  %v4577_v43 = vld [vmem:[%s8643_s9 + $0x230] sm:$0xff]  ;;  %v5505_v18 = vpop.f32.mrb[125].mxu0 }
 0x8b6   :  { %6014 = vmatprep.subr.bf16.mxu1 %v6506_v54  ;;  %5513 = vmatmul.mubr.msk.f32.gmra.mrb[130].mxu0 %vm2303_vm8, %v4576_v36 }
 0x8b7   :  { %5515 = vmatprep.mubr.msk.f32.mxu0 %vm6508_vm7, %v6507_v7 }
 0x8b8   :  { %5165 = vmatmul.mubr.msk.f32.gmra.mrb[84].mxu1 %vm2303_vm8, %v4434_v20 }
 0x8b9   :  { %5167 = vmatprep.mubr.msk.f32.mxu1 %vm6508_vm7, %v6507_v7 }
 0x8ba   :  { %5516 = vmatmul.mubr.msk.f32.gmra.mrb[132].mxu0 %vm2303_vm8, %v4577_v43 }
 0x8bb   :  { %5560 = vmatprep.mubr.msk.f32.mxu0 %vm6508_vm7, %v6507_v7 }
 0x8bc   :  { %5168 = vmatmul.mubr.msk.f32.gmra.mrb[86].mxu1 %vm2303_vm8, %v4435_v26 }
 0x8bd   :  { %5170 = vmatprep.mubr.msk.f32.mxu1 %vm6508_vm7, %v6507_v7 }
 0x8c0   :  { %5171 = vmatmul.mubr.msk.f32.gmra.mrb[88].mxu1 %vm2303_vm8, %v4436_v31 }
 0x8c1   :  { %5173 = vmatprep.mubr.msk.f32.mxu1 %vm6508_vm7, %v6507_v7 }
 0x8c4   :  { %5174 = vmatmul.mubr.msk.f32.gmra.mrb[90].mxu1 %vm2303_vm8, %v4437_v39 }
 0x8c5   :  { %5176 = vmatprep.mubr.msk.f32.mxu1 %vm6508_vm7, %v6507_v7 }
 0x8c8   :  { %5177 = vmatmul.mubr.msk.f32.gmra.mrb[92].mxu1 %vm2303_vm8, %v4438_v41  ;;  %v2492_v41 = vpop.permute.xlu0 %2491 }
 0x8c9   :  { %5179 = vmatprep.mubr.msk.f32.mxu1 %vm6508_vm7, %v6507_v7 }
 0x8cc   :  { %5180 = vmatmul.mubr.msk.f32.gmra.mrb[94].mxu1 %vm2303_vm8, %v4439_v42 }
 0x8cd   :  { %5182 = vmatprep.mubr.msk.f32.mxu1 %vm6508_vm7, %v6507_v7 }
 0x8d0   :  { %5183 = vmatmul.mubr.msk.f32.gmra.mrb[96].mxu1 %vm2303_vm8, %v4440_v45 }
 0x8d1   :  { %5185 = vmatprep.mubr.msk.f32.mxu1 %vm6508_vm7, %v6507_v7 }
 0x8d4   :  { %5186 = vmatmul.mubr.msk.f32.gmra.mrb[98].mxu1 %vm2303_vm8, %v4441_v47 }
 0x8d5   :  { %5188 = vmatprep.mubr.msk.f32.mxu1 %vm6508_vm7, %v6507_v7 }
 0x8d8   :  { %5189 = vmatmul.mubr.msk.f32.gmra.mrb[100].mxu1 %vm2303_vm8, %v4442_v49 }
 0x8d9   :  { %5191 = vmatprep.mubr.msk.f32.mxu1 %vm6508_vm7, %v6507_v7 }
 0x8dc   :  { %5192 = vmatmul.mubr.msk.f32.gmra.mrb[102].mxu1 %vm2303_vm8, %v4443_v52  ;;  %v2497_v52 = vpop.permute.xlu1 %2496 }
 0x8dd   :  { %5261 = vmatprep.mubr.msk.f32.mxu1 %vm6508_vm7, %v6507_v7 }
 0x8e0   :  { %5262 = vmatmul.mubr.msk.f32.vlgmr.msra.gmra.mrb[74].mxu1 %vm2303_vm8, %v4475_v55 }
 0x8e1   :  { %6016 = vmatpush3.bf16.msra.mxu1 %v6015_v50  ;;  %5264 = vmatprep.mubr.msk.f32.mxu1 %vm6508_vm7, %v6507_v7  ;;  %v4479_v50 = vld [vmem:[%s8643_s9 + $0x110] sm:$0xff] }
 0x8e2   :  { %6017 = vmatprep.subr.bf16.mxu1 %v6506_v54 }
 0x8e4   :  { %5265 = vmatmul.mubr.msk.f32.gmra.mrb[76].mxu1 %vm2303_vm8, %v4476_v61 }
 0x8e5   :  { %6019 = vmatpush3.bf16.msra.mxu1 %v6018_v58  ;;  %5267 = vmatprep.mubr.msk.f32.mxu1 %vm6508_vm7, %v6507_v7  ;;  %v4482_v58 = vld [vmem:[%s8643_s9 + $0x128] sm:$0xff] }
 0x8e6   :  { %6020 = vmatprep.subr.bf16.mxu1 %v6506_v54 }
 0x8e8   :  { %5268 = vmatmul.mubr.msk.f32.gmra.mrb[78].mxu1 %vm2303_vm8, %v4477_v46 }
 0x8e9   :  { %6022 = vmatpush3.bf16.msra.mxu1 %v6021_v4  ;;  %5270 = vmatprep.mubr.msk.f32.mxu1 %vm6508_vm7, %v6507_v7  ;;  %v4485_v4 = vld [vmem:[%s8643_s9 + $0x140] sm:$0xff] }
 0x8ea   :  { %6023 = vmatprep.subr.bf16.mxu1 %v6506_v54 }
 0x8ec   :  { %5271 = vmatmul.mubr.msk.f32.gmra.mrb[80].mxu1 %vm2303_vm8, %v4478_v48 }
 0x8ed   :  { %6025 = vmatpush3.bf16.msra.mxu1 %v6024_v21  ;;  %5273 = vmatprep.mubr.msk.f32.mxu1 %vm6508_vm7, %v6507_v7  ;;  %v4488_v21 = vld [vmem:[%s8643_s9 + $0x158] sm:$0xff] }
 0x8ee   :  { %6026 = vmatprep.subr.bf16.mxu1 %v6506_v54 }
 0x8f0   :  { %5274 = vmatmul.mubr.msk.f32.gmra.mrb[82].mxu1 %vm2303_vm8, %v4479_v50  ;;  %v2502_v50 = vpop.permute.xlu0 %2501 }
 0x8f1   :  { %6028 = vmatpush3.bf16.msra.mxu1 %v6027_v37  ;;  %5276 = vmatprep.mubr.msk.f32.mxu1 %vm6508_vm7, %v6507_v7  ;;  %v4522_v37 = vld [vmem:[%s8643_s9 + $0x170] sm:$0xff] }
 0x8f2   :  { %6117 = vmatprep.subr.bf16.mxu1 %v6506_v54 }
 0x8f4   :  { %5277 = vmatmul.mubr.msk.f32.gmra.mrb[84].mxu1 %vm2303_vm8, %v4480_v53 }
 0x8f5   :  { %5279 = vmatprep.mubr.msk.f32.mxu1 %vm6508_vm7, %v6507_v7 }
 0x8f8   :  { %5280 = vmatmul.mubr.msk.f32.gmra.mrb[86].mxu1 %vm2303_vm8, %v4481_v56 }
 0x8f9   :  { %5282 = vmatprep.mubr.msk.f32.mxu1 %vm6508_vm7, %v6507_v7 }
 0x8fc   :  { %5283 = vmatmul.mubr.msk.f32.gmra.mrb[88].mxu1 %vm2303_vm8, %v4482_v58 }
 0x8fd   :  { %5285 = vmatprep.mubr.msk.f32.mxu1 %vm6508_vm7, %v6507_v7 }
 0x900   :  { %5286 = vmatmul.mubr.msk.f32.gmra.mrb[90].mxu1 %vm2303_vm8, %v4483_v62 }
 0x901   :  { %5288 = vmatprep.mubr.msk.f32.mxu1 %vm6508_vm7, %v6507_v7 }
 0x904   :  { %5289 = vmatmul.mubr.msk.f32.gmra.mrb[92].mxu1 %vm2303_vm8, %v4484_v0 }
 0x905   :  { %5291 = vmatprep.mubr.msk.f32.mxu1 %vm6508_vm7, %v6507_v7 }
 0x908   :  { %5292 = vmatmul.mubr.msk.f32.gmra.mrb[94].mxu1 %vm2303_vm8, %v4485_v4 }
 0x909   :  { %5294 = vmatprep.mubr.msk.f32.mxu1 %vm6508_vm7, %v6507_v7 }
 0x90c   :  { %5295 = vmatmul.mubr.msk.f32.gmra.mrb[96].mxu1 %vm2303_vm8, %v4486_v11 }
 0x90d   :  { %5297 = vmatprep.mubr.msk.f32.mxu1 %vm6508_vm7, %v6507_v7 }
 0x910   :  { %5298 = vmatmul.mubr.msk.f32.gmra.mrb[98].mxu1 %vm2303_vm8, %v4487_v16  ;;  %v2507_v16 = vpop.permute.xlu1 %2506 }
 0x911   :  { %5300 = vmatprep.mubr.msk.f32.mxu1 %vm6508_vm7, %v6507_v7 }
 0x914   :  { %5301 = vmatmul.mubr.msk.f32.gmra.mrb[100].mxu1 %vm2303_vm8, %v4488_v21 }
 0x915   :  { %5303 = vmatprep.mubr.msk.f32.mxu1 %vm6508_vm7, %v6507_v7 }
 0x918   :  { %5304 = vmatmul.mubr.msk.f32.gmra.mrb[102].mxu1 %vm2303_vm8, %v4489_v30 }
 0x919   :  { %5373 = vmatprep.mubr.msk.f32.mxu1 %vm6508_vm7, %v6507_v7 }
 0x91c   :  { %5374 = vmatmul.mubr.msk.f32.vlgmr.msra.gmra.mrb[74].mxu1 %vm2303_vm8, %v4521_v34 }
 0x91d   :  { %6122 = vmatpush3.bf16.msra.mxu1 %v8056_v63  ;;  %5376 = vmatprep.mubr.msk.f32.mxu1 %vm6508_vm7, %v6507_v7  ;;  %v4523_v63 = vld [vmem:[%s8643_s9 + $0x178] sm:$0xff] }
 0x91e   :  { %6118 = vmatprep.subr.bf16.mxu1 %v6506_v54 }
 0x920   :  { %5377 = vmatmul.mubr.msk.f32.gmra.mrb[76].mxu1 %vm2303_vm8, %v4522_v37 }
 0x921   :  { %6123 = vmatpush3.bf16.msra.mxu1 %v8066_v14  ;;  %5379 = vmatprep.mubr.msk.f32.mxu1 %vm6508_vm7, %v6507_v7  ;;  %v4524_v14 = vld [vmem:[%s8643_s9 + $0x180] sm:$0xff] }
 0x922   :  { %6119 = vmatprep.subr.bf16.mxu1 %v6506_v54 }
 0x924   :  { %5380 = vmatmul.mubr.msk.f32.gmra.mrb[78].mxu1 %vm2303_vm8, %v4523_v63  ;;  %v2512_v63 = vpop.permute.xlu0 %2511 }
 0x925   :  { %6124 = vmatpush3.bf16.msra.mxu1 %v8076_v32  ;;  %5382 = vmatprep.mubr.msk.f32.mxu1 %vm6508_vm7, %v6507_v7  ;;  %v4525_v32 = vld [vmem:[%s8643_s9 + $0x188] sm:$0xff] }
 0x926   :  { %6120 = vmatprep.subr.bf16.mxu1 %v6506_v54 }
 0x928   :  { %5383 = vmatmul.mubr.msk.f32.gmra.mrb[80].mxu1 %vm2303_vm8, %v4524_v14 }
 0x929   :  { %6125 = vmatpush3.bf16.msra.mxu1 %v8086_v44  ;;  %5385 = vmatprep.mubr.msk.f32.mxu1 %vm6508_vm7, %v6507_v7  ;;  %v4526_v44 = vld [vmem:[%s8643_s9 + $0x190] sm:$0xff] }
 0x92a   :  { %6121 = vmatprep.subr.bf16.mxu1 %v6506_v54 }
 0x92c   :  { %5386 = vmatmul.mubr.msk.f32.gmra.mrb[82].mxu1 %vm2303_vm8, %v4525_v32 }
 0x92d   :  { %6126 = vmatpush3.bf16.msra.mxu1 %v8096_v51  ;;  %5388 = vmatprep.mubr.msk.f32.mxu1 %vm6508_vm7, %v6507_v7  ;;  %v4528_v51 = vld [vmem:[%s8643_s9 + $0x1a0] sm:$0xff] }
 0x930   :  { %5389 = vmatmul.mubr.msk.f32.gmra.mrb[84].mxu1 %vm2303_vm8, %v4526_v44 }
 0x931   :  { %5391 = vmatprep.mubr.msk.f32.mxu1 %vm6508_vm7, %v6507_v7 }
 0x934   :  { %5392 = vmatmul.mubr.msk.f32.gmra.mrb[86].mxu1 %vm2303_vm8, %v4527_v2 }
 0x935   :  { %5394 = vmatprep.mubr.msk.f32.mxu1 %vm6508_vm7, %v6507_v7 }
 0x938   :  { %5395 = vmatmul.mubr.msk.f32.gmra.mrb[88].mxu1 %vm2303_vm8, %v4528_v51 }
 0x939   :  { %5397 = vmatprep.mubr.msk.f32.mxu1 %vm6508_vm7, %v6507_v7 }
 0x93c   :  { %5398 = vmatmul.mubr.msk.f32.gmra.mrb[90].mxu1 %vm2303_vm8, %v4529_v8 }
 0x93d   :  { %5400 = vmatprep.mubr.msk.f32.mxu1 %vm6508_vm7, %v6507_v7 }
 0x940   :  { %5401 = vmatmul.mubr.msk.f32.gmra.mrb[92].mxu1 %vm2303_vm8, %v4530_v57 }
 0x941   :  { %5403 = vmatprep.mubr.msk.f32.mxu1 %vm6508_vm7, %v6507_v7 }
 0x944   :  { %5404 = vmatmul.mubr.msk.f32.gmra.mrb[94].mxu1 %vm2303_vm8, %v4531_v12  ;;  %v2517_v12 = vpop.permute.xlu1 %2516 }
 0x945   :  { %5406 = vmatprep.mubr.msk.f32.mxu1 %vm6508_vm7, %v6507_v7 }
 0x948   :  { %5407 = vmatmul.mubr.msk.f32.gmra.mrb[96].mxu1 %vm2303_vm8, %v4532_v17 }
 0x949   :  { %5409 = vmatprep.mubr.msk.f32.mxu1 %vm6508_vm7, %v6507_v7 }
 0x94c   :  { %5410 = vmatmul.mubr.msk.f32.gmra.mrb[98].mxu1 %vm2303_vm8, %v4533_v22 }
 0x94d   :  { %5412 = vmatprep.mubr.msk.f32.mxu1 %vm6508_vm7, %v6507_v7 }
 0x950   :  { %5413 = vmatmul.mubr.msk.f32.gmra.mrb[100].mxu1 %vm2303_vm8, %v4534_v28 }
 0x951   :  { %5415 = vmatprep.mubr.msk.f32.mxu1 %vm6508_vm7, %v6507_v7 }
 0x954   :  { %5416 = vmatmul.mubr.msk.f32.gmra.mrb[102].mxu1 %vm2303_vm8, %v4535_v33 }
 0x955   :  { %5518 = vmatprep.mubr.msk.f32.mxu1 %vm6508_vm7, %v6507_v7 }
 0x958   :  { %5519 = vmatmul.mubr.msk.f32.vlgmr.msra.gmra.mrb[96].mxu1 %vm2303_vm8, %v4578_v38  ;;  %v2522_v38 = vpop.permute.xlu0 %2521 }
 0x959   :  { %5521 = vmatprep.mubr.msk.f32.mxu1 %vm6508_vm7, %v6507_v7 }
 0x95c   :  { %5522 = vmatmul.mubr.msk.f32.gmra.mrb[98].mxu1 %vm2303_vm8, %v4579_v40  ;;  %v2532_v9 = vpop.permute.xlu0 %2531 }
 0x95d   :  { %5524 = vmatprep.mubr.msk.f32.mxu1 %vm6508_vm7, %v6507_v7 }
 0x960   :  { %5525 = vmatmul.mubr.msk.f32.gmra.mrb[100].mxu1 %vm2303_vm8, %v4580_v59 }
 0x961   :  { %5527 = vmatprep.mubr.msk.f32.mxu1 %vm6508_vm7, %v6507_v7 }
 0x964   :  { %5528 = vmatmul.mubr.msk.f32.gmra.mrb[102].mxu1 %vm2303_vm8, %v4581_v60 }
 0x981   :  { %v3917_v20 = vpop.f32.mrb[126].mxu0 }
 0x982   :  { %v5508_v23 = vpop.f32.mrb[127].mxu0 }
 0x985   :  { %v8537_v26 = vpop.f32.mrb[128].mxu0 }
 0x986   :  { %v5511_v29 = vpop.f32.mrb[129].mxu0 }
 0x989   :  { %v8539_v31 = vpop.f32.mrb[130].mxu0 }
 0x98a   :  { %v5514_v36 = vpop.f32.mrb[131].mxu0 }
 0x98d   :  { %v8541_v39 = vpop.f32.mrb[132].mxu0 }
 0x98e   :  { %v5517_v43 = vpop.f32.mrb[133].mxu0 }
 0x9ef   :  { %v3534_v42 = vpop.f32.mrb[74].mxu1 }
 0x9f0   :  { %v6147_v45 = vadd.f32 %v3534_v42, %v2492_v41  ;;  %v5375_v47 = vpop.f32.mrb[75].mxu1 }
 0x9f2   :  { %v6148_v49 = vadd.f32 %v6147_v45, %v3882_v1 }
 0x9f3   :  { %v3539_v55 = vpop.f32.mrb[76].mxu1 }
 0x9f4   :  { %v6149_v61 = vadd.f32 %v3539_v55, %v2497_v52  ;;  %v5378_v46 = vpop.f32.mrb[77].mxu1  ;;  %v3971_v56 = vmax.f32 %v6148_v49, 0.0  ;;  %v2542_v49 = vpop.permute.xlu0 %2541 }
 0x9f6   :  { %v6150_v48 = vadd.f32 %v6149_v61, %v3887_v10 }
 0x9f7   :  { %v3544_v53 = vpop.f32.mrb[78].mxu1 }
 0x9f8   :  { %v3972_v58 = vmax.f32 %v6150_v48, 0.0  ;;  %v6151_v62 = vadd.f32 %v3544_v53, %v2502_v50  ;;  %v5381_v0 = vpop.f32.mrb[79].mxu1 }
 0x9fa   :  { %v6077_v4 = vpack.c.bf16 %v3972_v58, %v3971_v56  ;;  %v6152_v11 = vadd.f32 %v6151_v62, %v3892_v25  ;;  %v2527_v25 = vpop.permute.xlu1 %2526 }
 0x9fb   :  { %v3549_v21 = vpop.f32.mrb[80].mxu1 }
 0x9fc   :  { %v6153_v30 = vadd.f32 %v3549_v21, %v2507_v16  ;;  %v5384_v34 = vpop.f32.mrb[81].mxu1  ;;  %6078 = vmatpush3.bf16.msra.mxu0 %v6077_v4  ;;  %v3973_v32 = vmax.f32 %v6152_v11, 0.0  ;;  %v2552_v16 = vpop.permute.xlu0 %2551 }
 0x9fd   :  { %6079 = vmatprep.subr.bf16.mxu0 %v6506_v54 }
 0x9fe   :  { %v6154_v37 = vadd.f32 %v6153_v30, %v3897_v35  ;;  %v2537_v41 = vpop.permute.xlu1 %2536 }
 0x9ff   :  { %v3554_v14 = vpop.f32.mrb[82].mxu1 }
 0xa00   :  { %v3974_v44 = vmax.f32 %v6154_v37, 0.0  ;;  %v6155_v2 = vadd.f32 %v3554_v14, %v2512_v63  ;;  %v5387_v51 = vpop.f32.mrb[83].mxu1 }
 0xa02   :  { %v6080_v8 = vpack.c.bf16 %v3974_v44, %v3973_v32  ;;  %v6156_v57 = vadd.f32 %v6155_v2, %v3902_v5  ;;  %v2562_v32 = vpop.permute.xlu0 %2561 }
 0xa03   :  { %v3559_v17 = vpop.f32.mrb[84].mxu1 }
 0xa04   :  { %v6157_v22 = vadd.f32 %v3559_v17, %v2517_v12  ;;  %v5390_v28 = vpop.f32.mrb[85].mxu1  ;;  %6081 = vmatpush3.bf16.msra.mxu0 %v6080_v8  ;;  %v3975_v59 = vmax.f32 %v6156_v57, 0.0  ;;  %v3986_v12 = vld [vmem:[%s8644_s11] sm:$0xff]  ;;  %v3988_v17 = vld [vmem:[%s8644_s11 + $0x10] sm:$0xff] }
 0xa05   :  { %6082 = vmatprep.subr.bf16.mxu0 %v6506_v54  ;;  %v3990_v28 = vld [vmem:[%s8644_s11 + $0x20] sm:$0xff] }
 0xa06   :  { %v6158_v33 = vadd.f32 %v6157_v22, %v3907_v24  ;;  %v3989_v22 = vld [vmem:[%s8644_s11 + $0x18] sm:$0xff] }
 0xa07   :  { %v3564_v40 = vpop.f32.mrb[86].mxu1 }
 0xa08   :  { %v3976_v60 = vmax.f32 %v6158_v33, 0.0  ;;  %v6159_v1 = vadd.f32 %v3564_v40, %v2522_v38  ;;  %v5393_v6 = vpop.f32.mrb[87].mxu1  ;;  %v3991_v33 = vld [vmem:[%s8644_s11 + $0x28] sm:$0xff]  ;;  %v3992_v38 = vld [vmem:[%s8644_s11 + $0x30] sm:$0xff]  ;;  %v3993_v40 = vld [vmem:[%s8644_s11 + $0x38] sm:$0xff] }
 0xa09   :  { %v4228_v6 = vld [vmem:[%s8645_s13] sm:$0xff] }
 0xa0a   :  { %v6083_v10 = vpack.c.bf16 %v3976_v60, %v3975_v59  ;;  %v6160_v19 = vadd.f32 %v6159_v1, %v3912_v15  ;;  %v3994_v59 = vld [vmem:[%s8644_s11 + $0x40] sm:$0xff]  ;;  %v3995_v60 = vld [vmem:[%s8644_s11 + $0x48] sm:$0xff]  ;;  %v3996_v1 = vld [vmem:[%s8644_s11 + $0x50] sm:$0xf] }
 0xa0b   :  { %v3569_v27 = vpop.f32.mrb[88].mxu1 }
 0xa0c   :  { %v6161_v35 = vadd.f32 %v3569_v27, %v2527_v25  ;;  %v5396_v3 = vpop.f32.mrb[89].mxu1  ;;  %6084 = vmatpush3.bf16.msra.mxu0 %v6083_v10  ;;  %v3977_v18 = vmax.f32 %v6160_v19, 0.0 }
 0xa0d   :  { %6085 = vmatprep.subr.bf16.mxu0 %v6506_v54 }
 0xa0e   :  { %v6162_v5 = vadd.f32 %v6161_v35, %v3917_v20  ;;  %v4016_v35 = vpop.permute.xlu0 %4015 }
 0xa0f   :  { %v3574_v13 = vpop.f32.mrb[90].mxu1 }
 0xa10   :  { %v3978_v24 = vmax.f32 %v6162_v5, 0.0  ;;  %v6163_v23 = vadd.f32 %v3574_v13, %v2532_v9  ;;  %v5399_v29 = vpop.f32.mrb[91].mxu1 }
 0xa12   :  { %v6086_v36 = vpack.c.bf16 %v3978_v24, %v3977_v18  ;;  %v6164_v43 = vadd.f32 %v6163_v23, %v8537_v26  ;;  %v2547_v26 = vpop.permute.xlu1 %2546 }
 0xa13   :  { %v3579_v42 = vpop.f32.mrb[92].mxu1 }
 0xa14   :  { %v6165_v15 = vadd.f32 %v3579_v42, %v2537_v41  ;;  %v5402_v45 = vpop.f32.mrb[93].mxu1  ;;  %6087 = vmatpush3.bf16.msra.mxu0 %v6086_v36  ;;  %v3979_v52 = vmax.f32 %v6164_v43, 0.0  ;;  %v4026_v43 = vpop.permute.xlu0 %4025 }
 0xa15   :  { %6088 = vmatprep.subr.bf16.mxu0 %v6506_v54 }
 0xa16   :  { %v6166_v47 = vadd.f32 %v6165_v15, %v8539_v31  ;;  %v2557_v30 = vpop.permute.xlu1 %2556 }
 0xa17   :  { %v3584_v20 = vpop.f32.mrb[94].mxu1 }
 0xa18   :  { %v3980_v55 = vmax.f32 %v6166_v47, 0.0  ;;  %v6167_v61 = vadd.f32 %v3584_v20, %v2542_v49  ;;  %v5405_v46 = vpop.f32.mrb[95].mxu1 }
 0xa19   :  { %v4036_v46 = vpop.permute.xlu0 %4035 }
 0xa1a   :  { %v6089_v48 = vpack.c.bf16 %v3980_v55, %v3979_v52  ;;  %v6168_v50 = vadd.f32 %v6167_v61, %v8541_v39  ;;  %v4011_v25 = vpop.permute.xlu1 %4010 }
 0xa1c   :  { %6090 = vmatpush3.bf16.msra.mxu0 %v6089_v48  ;;  %v3981_v62 = vmax.f32 %v6168_v50, 0.0 }
 0xa1d   :  { %6091 = vmatprep.subr.bf16.mxu0 %v6506_v54 }
 0xa1e   :  { %v4021_v29 = vpop.permute.xlu1 %4020 }
 0xa22   :  { %v4031_v55 = vpop.permute.xlu1 %4030 }
 0xa2b   :  { %v3937_v53 = vpop.f32.mrb[96].mxu1 }
 0xa2c   :  { %v6169_v56 = vadd.f32 %v3937_v53, %v2547_v26  ;;  %v5520_v58 = vpop.f32.mrb[97].mxu1 }
 0xa2e   :  { %v3982_v0 = vmax.f32 %v6169_v56, 0.0 }
 0xa2f   :  { %v3942_v4 = vpop.f32.mrb[98].mxu1 }
 0xa30   :  { %v6092_v31 = vpack.c.bf16 %v3982_v0, %v3981_v62  ;;  %v5523_v11 = vpop.f32.mrb[99].mxu1  ;;  %v6170_v21 = vadd.f32 %v3942_v4, %v2552_v16  ;;  %v4041_v4 = vpop.permute.xlu1 %4040 }
 0xa31   :  { %v4046_v11 = vpop.permute.xlu0 %4045 }
 0xa32   :  { %6093 = vmatpush3.bf16.msra.mxu0 %v6092_v31  ;;  %v3983_v63 = vmax.f32 %v6170_v21, 0.0 }
 0xa33   :  { %v3947_v34 = vpop.f32.mrb[100].mxu1  ;;  %6094 = vmatprep.subr.bf16.mxu0 %v6506_v54  ;;  %v3987_v54 = vld [vmem:[%s8644_s11 + $0x8] sm:$0xff] }
 0xa34   :  { %v6171_v39 = vadd.f32 %v3947_v34, %v2557_v30  ;;  %v5526_v37 = vpop.f32.mrb[101].mxu1 }
 0xa36   :  { %v3984_v14 = vmax.f32 %v6171_v39, 0.0 }
 0xa37   :  { %v3952_v44 = vpop.f32.mrb[102].mxu1 }
 0xa38   :  { %v6095_v2 = vpack.c.bf16 %v3984_v14, %v3983_v63  ;;  %v6172_v51 = vadd.f32 %v3952_v44, %v2562_v32  ;;  %v5529_v8 = vpop.f32.mrb[103].mxu1  ;;  %v4051_v32 = vpop.permute.xlu1 %4050 }
 0xa3a   :  { %6096 = vmatpush3.bf16.msra.mxu0 %v6095_v2  ;;  %v3985_v57 = vmax.f32 %v6172_v51, 0.0  ;;  %v4056_v2 = vpop.permute.xlu0 %4055 }
 0xa3b   :  { %5558 = vmatprep.subr.mxu0 %v6507_v7 }
 0xa3e   :  { %5559 = vmatpush3.msra.mxu0 %v3985_v57 }
 0xa3f   :  { %5561 = vmatmul.mubr.msk.f32.vlgmr.msra.gmra.mrb[134].mxu0 %vm4063_vm9, %v3986_v12 }
 0xa40   :  { %5563 = vmatprep.mubr.msk.f32.mxu0 %vm6508_vm7, %v6507_v7 }
 0xa43   :  { %5564 = vmatmul.mubr.msk.f32.gmra.mrb[136].mxu0 %vm4063_vm9, %v3987_v54 }
 0xa44   :  { %5566 = vmatprep.mubr.msk.f32.mxu0 %vm6508_vm7, %v6507_v7 }
 0xa47   :  { %5567 = vmatmul.mubr.msk.f32.gmra.mrb[138].mxu0 %vm4063_vm9, %v3988_v17  ;;  %v4061_v17 = vpop.permute.xlu1 %4060 }
 0xa48   :  { %5569 = vmatprep.mubr.msk.f32.mxu0 %vm6508_vm7, %v6507_v7 }
 0xa4b   :  { %5570 = vmatmul.mubr.msk.f32.gmra.mrb[140].mxu0 %vm4063_vm9, %v3989_v22 }
 0xa4c   :  { %5572 = vmatprep.mubr.msk.f32.mxu0 %vm6508_vm7, %v6507_v7 }
 0xa4f   :  { %5573 = vmatmul.mubr.msk.f32.gmra.mrb[142].mxu0 %vm4063_vm9, %v3990_v28 }
 0xa50   :  { %5575 = vmatprep.mubr.msk.f32.mxu0 %vm6508_vm7, %v6507_v7 }
 0xa53   :  { %5576 = vmatmul.mubr.msk.f32.gmra.mrb[144].mxu0 %vm4063_vm9, %v3991_v33 }
 0xa54   :  { %5578 = vmatprep.mubr.msk.f32.mxu0 %vm6508_vm7, %v6507_v7 }
 0xa57   :  { %5579 = vmatmul.mubr.msk.f32.gmra.mrb[146].mxu0 %vm4063_vm9, %v3992_v38 }
 0xa58   :  { %5581 = vmatprep.mubr.msk.f32.mxu0 %vm6508_vm7, %v6507_v7 }
 0xa5b   :  { %5582 = vmatmul.mubr.msk.f32.gmra.mrb[148].mxu0 %vm4063_vm9, %v3993_v40 }
 0xa5c   :  { %5584 = vmatprep.mubr.msk.f32.mxu0 %vm6508_vm7, %v6507_v7 }
 0xa5f   :  { %5585 = vmatmul.mubr.msk.f32.gmra.mrb[150].mxu0 %vm4063_vm9, %v3994_v59  ;;  %v4229_v59 = vld [vmem:[%s8645_s13 + $0x8] sm:$0x3] }
 0xa60   :  { %5587 = vmatprep.mubr.msk.f32.mxu0 %vm6508_vm7, %v6507_v7 }
 0xa63   :  { %5588 = vmatmul.mubr.msk.f32.gmra.mrb[152].mxu0 %vm4063_vm9, %v3995_v60  ;;  %v4240_v60 = vpop.permute.xlu1 %4239 }
 0xa64   :  { %5590 = vmatprep.mubr.msk.f32.mxu0 %vm6508_vm7, %v6507_v7 }
 0xa67   :  { %5591 = vmatmul.mubr.msk.f32.gmra.mrb[154].mxu0 %vm4063_vm9, %v3996_v1 }
 0xa68   :  { %5615 = vmatprep.mubr.msk.f32.mxu0 %vm4242_vm10, %v4228_v6  ;;  %v4235_v6 = vpop.permute.xlu0 %4234 }
 0xb12   :  { %v4163_v10 = vpop.f32.mrb[134].mxu0 }
 0xb13   :  { %v5562_v19 = vpop.f32.mrb[135].mxu0  ;;  %v4164_v27 = vadd.f32 %v4163_v10, %v4011_v25 }
 0xb15   :  { %v4217_v9 = vmax.f32 %v4164_v27, 0.0 }
 0xb16   :  { %v4168_v3 = vpop.f32.mrb[136].mxu0 }
 0xb17   :  { %v4169_v7 = vadd.f32 %v4168_v3, %v4016_v35  ;;  %v5565_v5 = vpop.f32.mrb[137].mxu0 }
 0xb19   :  { %v4218_v13 = vmax.f32 %v4169_v7, 0.0 }
 0xb1a   :  { %v4173_v18 = vpop.f32.mrb[138].mxu0 }
 0xb1b   :  { %v6097_v24 = vpack.c.bf16 %v4218_v13, %v4217_v9  ;;  %v5568_v23 = vpop.f32.mrb[139].mxu0  ;;  %v4174_v36 = vadd.f32 %v4173_v18, %v4021_v29 }
 0xb1d   :  { %6098 = vmatprep.subr.bf16.mxu0 %v6097_v24  ;;  %v4219_v45 = vmax.f32 %v4174_v36, 0.0 }
 0xb1e   :  { %v4178_v41 = vpop.f32.mrb[140].mxu0  ;;  %6100 = vmatpush3.bf16.msra.mxu0 %v6097_v24 }
 0xb1f   :  { %v4179_v42 = vadd.f32 %v4178_v41, %v4026_v43  ;;  %v5571_v15 = vpop.f32.mrb[141].mxu0 }
 0xb21   :  { %v4220_v47 = vmax.f32 %v4179_v42, 0.0 }
 0xb22   :  { %v4183_v49 = vpop.f32.mrb[142].mxu0 }
 0xb23   :  { %v6101_v20 = vpack.c.bf16 %v4220_v47, %v4219_v45  ;;  %v5574_v52 = vpop.f32.mrb[143].mxu0  ;;  %v4184_v61 = vadd.f32 %v4183_v49, %v4031_v55 }
 0xb25   :  { %6102 = vmatprep.subr.bf16.mxu0 %v6101_v20  ;;  %v4221_v53 = vmax.f32 %v4184_v61, 0.0 }
 0xb26   :  { %v4188_v48 = vpop.f32.mrb[144].mxu0  ;;  %6104 = vmatpush3.bf16.msra.mxu0 %v6101_v20 }
 0xb27   :  { %v4189_v50 = vadd.f32 %v4188_v48, %v4036_v46  ;;  %v5577_v26 = vpop.f32.mrb[145].mxu0 }
 0xb29   :  { %v4222_v56 = vmax.f32 %v4189_v50, 0.0 }
 0xb2a   :  { %v4193_v58 = vpop.f32.mrb[146].mxu0 }
 0xb2b   :  { %v6105_v62 = vpack.c.bf16 %v4222_v56, %v4221_v53  ;;  %v5580_v0 = vpop.f32.mrb[147].mxu0  ;;  %v4194_v31 = vadd.f32 %v4193_v58, %v4041_v4 }
 0xb2d   :  { %6106 = vmatprep.subr.bf16.mxu0 %v6105_v62  ;;  %v4223_v34 = vmax.f32 %v4194_v31, 0.0 }
 0xb2e   :  { %v4198_v16 = vpop.f32.mrb[148].mxu0  ;;  %6108 = vmatpush3.bf16.msra.mxu0 %v6105_v62 }
 0xb2f   :  { %v4199_v21 = vadd.f32 %v4198_v16, %v4046_v11  ;;  %v5583_v30 = vpop.f32.mrb[149].mxu0 }
 0xb31   :  { %v4224_v39 = vmax.f32 %v4199_v21, 0.0 }
 0xb32   :  { %v4203_v37 = vpop.f32.mrb[150].mxu0 }
 0xb33   :  { %v6109_v63 = vpack.c.bf16 %v4224_v39, %v4223_v34  ;;  %v5586_v14 = vpop.f32.mrb[151].mxu0  ;;  %v4204_v44 = vadd.f32 %v4203_v37, %v4051_v32 }
 0xb35   :  { %6110 = vmatprep.subr.bf16.mxu0 %v6109_v63  ;;  %v4225_v12 = vmax.f32 %v4204_v44, 0.0 }
 0xb36   :  { %v4208_v51 = vpop.f32.mrb[152].mxu0  ;;  %6112 = vmatpush3.bf16.msra.mxu0 %v6109_v63 }
 0xb37   :  { %v4209_v8 = vadd.f32 %v4208_v51, %v4056_v2  ;;  %v5589_v57 = vpop.f32.mrb[153].mxu0 }
 0xb39   :  { %v4226_v54 = vmax.f32 %v4209_v8, 0.0 }
 0xb3a   :  { %v4213_v22 = vpop.f32.mrb[154].mxu0 }
 0xb3b   :  { %v6113_v28 = vpack.c.bf16 %v4226_v54, %v4225_v12  ;;  %v4214_v33 = vadd.f32 %v4213_v22, %v4061_v17  ;;  %v5592_v38 = vpop.f32.mrb[155].mxu0 }
 0xb3d   :  { %v4227_v40 = vmax.f32 %v4214_v33, 0.0  ;;  %6114 = vmatprep.subr.bf16.mxu0 %v6113_v28 }
 0xb3e   :  { %6116 = vmatpush3.bf16.msra.mxu0 %v6113_v28 }
 0xb3f   :  { %5613 = vmatprep.subr.msk.mxu0 %vm4249_vm11, %v4227_v40 }
 0xb42   :  { %5614 = vmatpush3.msk.msra.mxu0 %vm4249_vm11, %v4227_v40 }
 0xb43   :  { %5616 = vmatmul.mubr.msk.f32.vlgmr.msra.gmra.mrb[156].mxu0 %vm4242_vm10, %v4229_v59 }
 0xc16   :  { %v5617_v1 = vpop.f32.mrb[156].mxu0 }
 0xc17   :  { %v4325_v10 = vadd.f32 %v5617_v1, %v4240_v60  ;;  %v4319_v19 = vpop.f32.mrb[157].mxu0 }
 0xc18   :  { %v4320_v25 = vadd.f32 %v4319_v19, %v4235_v6 }
 0xc19   :  { %4331 = vst.msk [vmem:[%s8646_s15 + $0x8] sm:$0x3] %vm4330_vm12, %v4325_v10 }
 0xc1a   :  { %4329 = vst.msk [vmem:[%s8646_s15] sm:$0xff] %vm4328_vm13, %v4320_v25 }

</bundles_post_ra>
